<compile_context>
chip_gen: v7x
topology: tpu7x:2x2x1
jax: 0.10.0
libtpu: 0.0.40
codegen_flags: <defaults>
</compile_context>

<pallas_src>
import functools

import jax
import jax.numpy as jnp
from jax import lax
from jax.experimental import pallas as pl
from jax.experimental.pallas import tpu as pltpu

# ---------------- mini-BERT config (small, lane-friendly) ----------------
HIDDEN = 128          # bert hidden_size (reduced from 768)
N_HEADS = 4
HEAD_DIM = HIDDEN // N_HEADS
INTERMEDIATE = 512
N_LAYERS = 2
VOCAB = 512
MAX_POS = 16
N_CLASSES = 3
LOGIT_PAD = 128       # lane-dense classifier output (slice [:, :N_CLASSES] outside)
LN_EPS = 1e-12
ATTN_SCALE = 1.0 / (HEAD_DIM ** 0.5)


# ------------------------- single fused Pallas kernel ----------------------
def _fused_bert_kernel(
    x_ref,            # (M, D)  f32  word+pos+type embeddings (pre-LN)
    mask_ref,         # (B, S)  f32  attention mask (1 = keep, 0 = masked)
    emb_g_ref,        # (1, D)  f32
    emb_b_ref,        # (1, D)  f32
    wqkv_ref,         # (L, D, 3D)  bf16  fused Q/K/V weight
    bqkv_ref,         # (L, 1, 3D)  f32
    wo_ref,           # (L, D, D)   bf16
    bo_ref,           # (L, 1, D)   f32
    ln1g_ref,         # (L, 1, D)   f32
    ln1b_ref,         # (L, 1, D)   f32
    wi_ref,           # (L, D, I)   bf16
    bi_ref,           # (L, 1, I)   f32
    wf_ref,           # (L, I, D)   bf16
    bf_ref,           # (L, 1, D)   f32
    ln2g_ref,         # (L, 1, D)   f32
    ln2b_ref,         # (L, 1, D)   f32
    pool_w_ref,       # (D, D)      bf16
    pool_b_ref,       # (1, D)      f32
    out_w_ref,        # (D, 128)    bf16  (zero-padded from (D, N_CLASSES))
    out_b_ref,        # (1, 128)    f32   (zero-padded)
    logits_ref,       # out: (B, 128) f32
    *, batch, seq,
):
    B, S, D, H, Dh = batch, seq, HIDDEN, N_HEADS, HEAD_DIM

    def layernorm(x, g, b):
        mean = jnp.mean(x, axis=-1, keepdims=True)
        var = jnp.mean(jnp.square(x - mean), axis=-1, keepdims=True)
        return (x - mean) * lax.rsqrt(var + LN_EPS) * g + b

    def mm(x, w):
        # bf16 MXU operands, f32 accumulation
        return jnp.dot(x.astype(jnp.bfloat16), w, preferred_element_type=jnp.float32)

    def softmax_last(s):
        m = jnp.max(s, axis=-1, keepdims=True)
        p = jnp.exp(s - m)
        return p * pl.reciprocal(jnp.sum(p, axis=-1, keepdims=True), approx=True)

    # --- embedding LayerNorm (f32) ---
    x = layernorm(x_ref[...].astype(jnp.float32), emb_g_ref[...], emb_b_ref[...])

    # additive key mask, HF-BERT style
    mask_add = (1.0 - mask_ref[...].astype(jnp.float32)) * -10000.0    # (B, S)

    # --- encoder layers (statically unrolled, all weights VMEM-resident) ---
    for l in range(N_LAYERS):
        # fused Q/K/V projection: (M, 3D)
        qkv = mm(x, wqkv_ref[l]) + bqkv_ref[l]

        # multi-head self-attention, unrolled over (batch, head)
        ctx_rows = []
        for b in range(B):
            r0 = b * S
            mk = mask_add[b:b + 1, :]                                  # (1, S)
            head_out = []
            for h in range(H):
                c0 = h * Dh
                qh = qkv[r0:r0 + S, c0:c0 + Dh].astype(jnp.bfloat16)           # (S, Dh)
                kh = qkv[r0:r0 + S, D + c0:D + c0 + Dh].astype(jnp.bfloat16)   # (S, Dh)
                vh = qkv[r0:r0 + S, 2 * D + c0:2 * D + c0 + Dh].astype(jnp.bfloat16)
                # q @ k^T without an explicit transpose (contract head dims)
                s = lax.dot_general(
                    qh, kh, dimension_numbers=(((1,), (1,)), ((), ())),
                    preferred_element_type=jnp.float32) * ATTN_SCALE           # (S, S)
                s = s + mk                                                     # key mask
                p = softmax_last(s)
                c = jnp.dot(p.astype(jnp.bfloat16), vh,
                            preferred_element_type=jnp.float32)                # (S, Dh)
                head_out.append(c)
            ctx_rows.append(jnp.concatenate(head_out, axis=-1))                # (S, D)
        ctx = jnp.concatenate(ctx_rows, axis=0)                                # (M, D)

        # attention output projection + residual + LN (fused epilogue)
        attn_out = mm(ctx, wo_ref[l]) + bo_ref[l]
        x = layernorm(x + attn_out, ln1g_ref[l], ln1b_ref[l])

        # FFN + residual + LN
        inter = mm(x, wi_ref[l]) + bi_ref[l]
        # TODO(synk): BERT uses exact erf-GELU; tanh approximation (EUP) used here.
        inter = jax.nn.gelu(inter, approximate=True)
        ffn_out = mm(inter, wf_ref[l]) + bf_ref[l]
        x = layernorm(x + ffn_out, ln2g_ref[l], ln2b_ref[l])

    # --- pooler on [CLS] rows + classifier (lane-padded) ---
    cls = jnp.concatenate([x[b * S:b * S + 1, :] for b in range(B)], axis=0)   # (B, D)
    pooled = jnp.tanh(mm(cls, pool_w_ref[...]) + pool_b_ref[...])
    # nn.Dropout(p=0.3): identity in eval/inference mode.
    logits = mm(pooled, out_w_ref[...]) + out_b_ref[...]                       # (B, 128)
    logits_ref[...] = logits.astype(logits_ref.dtype)


# ------------------------------ model glue --------------------------------
def init_params(key):
    def init(k, shape):
        return 0.02 * jax.random.normal(k, shape, dtype=jnp.float32)

    keys = iter(jax.random.split(key, 5 + 4 * N_LAYERS))
    D, I = HIDDEN, INTERMEDIATE

    def stack_init(shape):
        return jnp.stack([init(next(keys), shape) for _ in range(N_LAYERS)])

    params = {
        "word_emb": init(next(keys), (VOCAB, D)),
        "pos_emb": init(next(keys), (MAX_POS, D)),
        "type_emb": init(next(keys), (2, D)),
        "emb_ln_g": jnp.ones((1, D), jnp.float32),
        "emb_ln_b": jnp.zeros((1, D), jnp.float32),
        # per-layer stacked weights; matmul weights stored in bf16 (MXU-native)
        "wqkv": stack_init((D, 3 * D)).astype(jnp.bfloat16),
        "bqkv": jnp.zeros((N_LAYERS, 1, 3 * D), jnp.float32),
        "wo": stack_init((D, D)).astype(jnp.bfloat16),
        "bo": jnp.zeros((N_LAYERS, 1, D), jnp.float32),
        "ln1_g": jnp.ones((N_LAYERS, 1, D), jnp.float32),
        "ln1_b": jnp.zeros((N_LAYERS, 1, D), jnp.float32),
        "wi": stack_init((D, I)).astype(jnp.bfloat16),
        "bi": jnp.zeros((N_LAYERS, 1, I), jnp.float32),
        "wf": stack_init((I, D)).astype(jnp.bfloat16),
        "bf": jnp.zeros((N_LAYERS, 1, D), jnp.float32),
        "ln2_g": jnp.ones((N_LAYERS, 1, D), jnp.float32),
        "ln2_b": jnp.zeros((N_LAYERS, 1, D), jnp.float32),
        "pool_w": init(next(keys), (D, D)).astype(jnp.bfloat16),
        "pool_b": jnp.zeros((1, D), jnp.float32),
    }
    # classifier head, zero-padded to a lane-dense 128-wide output
    out_w = init(next(keys), (D, N_CLASSES))
    params["out_w"] = (jnp.zeros((D, LOGIT_PAD), jnp.float32)
                       .at[:, :N_CLASSES].set(out_w)).astype(jnp.bfloat16)
    params["out_b"] = jnp.zeros((1, LOGIT_PAD), jnp.float32)
    return params


def _full_spec(shape):
    zeros = (0,) * len(shape)
    return pl.BlockSpec(shape, lambda i: zeros)


def sentiment_classifier_forward(params, input_ids, attention_mask):
    """_, pooled = bert(ids, mask); drop(pooled); out(pooled) -> logits (B, n_classes)."""
    B, S = input_ids.shape
    M = B * S

    # Embedding lookup (XLA gather) + sum; LayerNorm runs inside the fused kernel.
    we = jnp.take(params["word_emb"], input_ids, axis=0)          # (B, S, D)
    pe = params["pos_emb"][:S][None]                              # (1, S, D)
    te = params["type_emb"][0][None, None]                        # (1, 1, D)  token_type=0
    x0 = (we + pe + te).reshape(M, HIDDEN).astype(jnp.float32)
    mask_f = attention_mask.astype(jnp.float32)                   # (B, S)

    operands = (
        x0, mask_f,
        params["emb_ln_g"], params["emb_ln_b"],
        params["wqkv"], params["bqkv"], params["wo"], params["bo"],
        params["ln1_g"], params["ln1_b"],
        params["wi"], params["bi"], params["wf"], params["bf"],
        params["ln2_g"], params["ln2_b"],
        params["pool_w"], params["pool_b"],
        params["out_w"], params["out_b"],
    )

    kernel = functools.partial(_fused_bert_kernel, batch=B, seq=S)

    logits_pad = pl.pallas_call(
        kernel,
        out_shape=jax.ShapeDtypeStruct((B, LOGIT_PAD), jnp.float32),
        grid=(1,),   # everything fits VMEM; a real (tm,tn,tk) grid only needed if scaled to BERT-base
        in_specs=[_full_spec(a.shape) for a in operands],
        out_specs=pl.BlockSpec((B, LOGIT_PAD), lambda i: (0, 0)),
        compiler_params=pltpu.CompilerParams(
            dimension_semantics=("arbitrary",)),
    )(*operands)

    return logits_pad[:, :N_CLASSES]


if __name__ == "__main__":
    key = jax.random.PRNGKey(0)
    pkey, ikey = jax.random.split(key)
    params = init_params(pkey)

    B, S = 2, 8
    input_ids = jax.random.randint(ikey, (B, S), 0, VOCAB, dtype=jnp.int32)
    attention_mask = jnp.array([[1, 1, 1, 1, 1, 1, 1, 1],
                                [1, 1, 1, 1, 1, 1, 0, 0]], dtype=jnp.int32)

    logits = jax.jit(sentiment_classifier_forward)(params, input_ids, attention_mask)
    jax.block_until_ready(logits)
    assert logits.shape == (B, N_CLASSES) and logits.dtype == jnp.float32
    assert bool(jnp.all(jnp.isfinite(logits)))
    print("KERNEL_OK")
</pallas_src>

<mosaic_0001>
module attributes {stable_mosaic.version = 11 : i64} {
  func.func @_fused_bert_kernel(%arg0: i32, %arg1: memref<16x128xf32, #tpu.memory_space<vmem>>, %arg2: memref<2x8xf32, #tpu.memory_space<vmem>>, %arg3: memref<1x128xf32, #tpu.memory_space<vmem>>, %arg4: memref<1x128xf32, #tpu.memory_space<vmem>>, %arg5: memref<2x128x384xbf16, #tpu.memory_space<vmem>>, %arg6: memref<2x1x384xf32, #tpu.memory_space<vmem>>, %arg7: memref<2x128x128xbf16, #tpu.memory_space<vmem>>, %arg8: memref<2x1x128xf32, #tpu.memory_space<vmem>>, %arg9: memref<2x1x128xf32, #tpu.memory_space<vmem>>, %arg10: memref<2x1x128xf32, #tpu.memory_space<vmem>>, %arg11: memref<2x128x512xbf16, #tpu.memory_space<vmem>>, %arg12: memref<2x1x512xf32, #tpu.memory_space<vmem>>, %arg13: memref<2x512x128xbf16, #tpu.memory_space<vmem>>, %arg14: memref<2x1x128xf32, #tpu.memory_space<vmem>>, %arg15: memref<2x1x128xf32, #tpu.memory_space<vmem>>, %arg16: memref<2x1x128xf32, #tpu.memory_space<vmem>>, %arg17: memref<128x128xbf16, #tpu.memory_space<vmem>>, %arg18: memref<1x128xf32, #tpu.memory_space<vmem>>, %arg19: memref<128x128xbf16, #tpu.memory_space<vmem>>, %arg20: memref<1x128xf32, #tpu.memory_space<vmem>>, %arg21: memref<2x128xf32, #tpu.memory_space<vmem>>) attributes {dimension_semantics = [#tpu.dimension_semantics<arbitrary>], iteration_bounds = array<i64: 1>, scalar_prefetch = 0 : i64, scratch_operands = 0 : i64, tpu.core_type = #tpu.core_type<tc>, window_params = [{pipeline_mode = #tpu.pipeline_mode<synchronous>, transform_indices = @transform_0, window_bounds = array<i64: 16, 128>}, {pipeline_mode = #tpu.pipeline_mode<synchronous>, transform_indices = @transform_1, window_bounds = array<i64: 2, 8>}, {pipeline_mode = #tpu.pipeline_mode<synchronous>, transform_indices = @transform_2, window_bounds = array<i64: 1, 128>}, {pipeline_mode = #tpu.pipeline_mode<synchronous>, transform_indices = @transform_3, window_bounds = array<i64: 1, 128>}, {pipeline_mode = #tpu.pipeline_mode<synchronous>, transform_indices = @transform_4, window_bounds = array<i64: 2, 128, 384>}, {pipeline_mode = #tpu.pipeline_mode<synchronous>, transform_indices = @transform_5, window_bounds = array<i64: 2, 1, 384>}, {pipeline_mode = #tpu.pipeline_mode<synchronous>, transform_indices = @transform_6, window_bounds = array<i64: 2, 128, 128>}, {pipeline_mode = #tpu.pipeline_mode<synchronous>, transform_indices = @transform_7, window_bounds = array<i64: 2, 1, 128>}, {pipeline_mode = #tpu.pipeline_mode<synchronous>, transform_indices = @transform_8, window_bounds = array<i64: 2, 1, 128>}, {pipeline_mode = #tpu.pipeline_mode<synchronous>, transform_indices = @transform_9, window_bounds = array<i64: 2, 1, 128>}, {pipeline_mode = #tpu.pipeline_mode<synchronous>, transform_indices = @transform_10, window_bounds = array<i64: 2, 128, 512>}, {pipeline_mode = #tpu.pipeline_mode<synchronous>, transform_indices = @transform_11, window_bounds = array<i64: 2, 1, 512>}, {pipeline_mode = #tpu.pipeline_mode<synchronous>, transform_indices = @transform_12, window_bounds = array<i64: 2, 512, 128>}, {pipeline_mode = #tpu.pipeline_mode<synchronous>, transform_indices = @transform_13, window_bounds = array<i64: 2, 1, 128>}, {pipeline_mode = #tpu.pipeline_mode<synchronous>, transform_indices = @transform_14, window_bounds = array<i64: 2, 1, 128>}, {pipeline_mode = #tpu.pipeline_mode<synchronous>, transform_indices = @transform_15, window_bounds = array<i64: 2, 1, 128>}, {pipeline_mode = #tpu.pipeline_mode<synchronous>, transform_indices = @transform_16, window_bounds = array<i64: 128, 128>}, {pipeline_mode = #tpu.pipeline_mode<synchronous>, transform_indices = @transform_17, window_bounds = array<i64: 1, 128>}, {pipeline_mode = #tpu.pipeline_mode<synchronous>, transform_indices = @transform_18, window_bounds = array<i64: 128, 128>}, {pipeline_mode = #tpu.pipeline_mode<synchronous>, transform_indices = @transform_19, window_bounds = array<i64: 1, 128>}, {pipeline_mode = #tpu.pipeline_mode<synchronous>, transform_indices = @transform_20, window_bounds = array<i64: 2, 128>}]} {
    %c0 = arith.constant 0 : index
    %c0_0 = arith.constant 0 : index
    %0 = vector.load %arg1[%c0, %c0_0] : memref<16x128xf32, #tpu.memory_space<vmem>>, vector<16x128xf32>
    %c0_1 = arith.constant 0 : index
    %c0_2 = arith.constant 0 : index
    %1 = vector.load %arg3[%c0_1, %c0_2] : memref<1x128xf32, #tpu.memory_space<vmem>>, vector<1x128xf32>
    %c0_3 = arith.constant 0 : index
    %c0_4 = arith.constant 0 : index
    %2 = vector.load %arg4[%c0_3, %c0_4] : memref<1x128xf32, #tpu.memory_space<vmem>>, vector<1x128xf32>
    %cst = arith.constant dense<0.000000e+00> : vector<16xf32>
    %3 = vector.multi_reduction <add>, %0, %cst [1] : vector<16x128xf32> to vector<16xf32>
    %4 = vector.shape_cast %3 : vector<16xf32> to vector<16x1xf32>
    %cst_5 = arith.constant 1.280000e+02 : f32
    %5 = vector.broadcast %cst_5 : f32 to vector<16x1xf32>
    %6 = arith.divf %4, %5 : vector<16x1xf32>
    %7 = vector.broadcast %6 : vector<16x1xf32> to vector<16x128xf32>
    %8 = arith.subf %0, %7 : vector<16x128xf32>
    %9 = arith.mulf %8, %8 : vector<16x128xf32>
    %cst_6 = arith.constant dense<0.000000e+00> : vector<16xf32>
    %10 = vector.multi_reduction <add>, %9, %cst_6 [1] : vector<16x128xf32> to vector<16xf32>
    %11 = vector.shape_cast %10 : vector<16xf32> to vector<16x1xf32>
    %cst_7 = arith.constant 1.280000e+02 : f32
    %12 = vector.broadcast %cst_7 : f32 to vector<16x1xf32>
    %13 = arith.divf %11, %12 : vector<16x1xf32>
    %14 = vector.broadcast %6 : vector<16x1xf32> to vector<16x128xf32>
    %15 = arith.subf %0, %14 : vector<16x128xf32>
    %cst_8 = arith.constant 9.99999996E-13 : f32
    %16 = vector.broadcast %cst_8 : f32 to vector<16x1xf32>
    %17 = arith.addf %13, %16 : vector<16x1xf32>
    %18 = math.rsqrt %17 : vector<16x1xf32>
    %19 = vector.broadcast %18 : vector<16x1xf32> to vector<16x128xf32>
    %20 = arith.mulf %15, %19 : vector<16x128xf32>
    %21 = vector.broadcast %1 : vector<1x128xf32> to vector<16x128xf32>
    %22 = arith.mulf %20, %21 : vector<16x128xf32>
    %23 = vector.broadcast %2 : vector<1x128xf32> to vector<16x128xf32>
    %24 = arith.addf %22, %23 : vector<16x128xf32>
    %c0_9 = arith.constant 0 : index
    %c0_10 = arith.constant 0 : index
    %25 = vector.load %arg2[%c0_9, %c0_10] : memref<2x8xf32, #tpu.memory_space<vmem>>, vector<2x8xf32>
    %cst_11 = arith.constant 1.000000e+00 : f32
    %26 = vector.broadcast %cst_11 : f32 to vector<2x8xf32>
    %27 = arith.subf %26, %25 : vector<2x8xf32>
    %cst_12 = arith.constant -1.000000e+04 : f32
    %28 = vector.broadcast %cst_12 : f32 to vector<2x8xf32>
    %29 = arith.mulf %27, %28 : vector<2x8xf32>
    %c0_13 = arith.constant 0 : index
    %c0_14 = arith.constant 0 : index
    %c0_15 = arith.constant 0 : index
    %30 = vector.load %arg5[%c0_13, %c0_14, %c0_15] : memref<2x128x384xbf16, #tpu.memory_space<vmem>>, vector<1x128x384xbf16>
    %31 = vector.shape_cast %30 : vector<1x128x384xbf16> to vector<128x384xbf16>
    %32 = arith.truncf %24 : vector<16x128xf32> to vector<16x128xbf16>
    %cst_16 = arith.constant dense<0.000000e+00> : vector<16x384xf32>
    %33 = tpu.matmul %32, %31, %cst_16 {dimension_numbers = #tpu.dot_dimension_numbers<[1], [0], [0], [1], [0, 0, 1, 1], [], []>} : vector<16x128xbf16>, vector<128x384xbf16>, vector<16x384xf32> -> vector<16x384xf32>
    %c0_17 = arith.constant 0 : index
    %c0_18 = arith.constant 0 : index
    %c0_19 = arith.constant 0 : index
    %34 = vector.load %arg6[%c0_17, %c0_18, %c0_19] : memref<2x1x384xf32, #tpu.memory_space<vmem>>, vector<1x1x384xf32>
    %35 = vector.shape_cast %34 : vector<1x1x384xf32> to vector<1x384xf32>
    %36 = vector.broadcast %35 : vector<1x384xf32> to vector<16x384xf32>
    %37 = arith.addf %33, %36 : vector<16x384xf32>
    %38 = vector.extract_strided_slice %29 {offsets = [0, 0], sizes = [1, 8], strides = [1, 1]} : vector<2x8xf32> to vector<1x8xf32>
    %39 = vector.extract_strided_slice %37 {offsets = [0, 0], sizes = [8, 32], strides = [1, 1]} : vector<16x384xf32> to vector<8x32xf32>
    %40 = arith.truncf %39 : vector<8x32xf32> to vector<8x32xbf16>
    %41 = vector.extract_strided_slice %37 {offsets = [0, 128], sizes = [8, 32], strides = [1, 1]} : vector<16x384xf32> to vector<8x32xf32>
    %42 = arith.truncf %41 : vector<8x32xf32> to vector<8x32xbf16>
    %43 = vector.extract_strided_slice %37 {offsets = [0, 256], sizes = [8, 32], strides = [1, 1]} : vector<16x384xf32> to vector<8x32xf32>
    %44 = arith.truncf %43 : vector<8x32xf32> to vector<8x32xbf16>
    %cst_20 = arith.constant dense<0.000000e+00> : vector<8x8xf32>
    %45 = tpu.matmul %40, %42, %cst_20 {dimension_numbers = #tpu.dot_dimension_numbers<[1], [1], [0], [0], [0, 0, 1, 0], [], []>} : vector<8x32xbf16>, vector<8x32xbf16>, vector<8x8xf32> -> vector<8x8xf32>
    %cst_21 = arith.constant 0.176776692 : f32
    %46 = vector.broadcast %cst_21 : f32 to vector<8x8xf32>
    %47 = arith.mulf %45, %46 : vector<8x8xf32>
    %48 = vector.broadcast %38 : vector<1x8xf32> to vector<8x8xf32>
    %49 = arith.addf %47, %48 : vector<8x8xf32>
    %cst_22 = arith.constant dense<0xFF800000> : vector<8xf32>
    %50 = vector.multi_reduction <maximumf>, %49, %cst_22 [1] : vector<8x8xf32> to vector<8xf32>
    %51 = vector.shape_cast %50 : vector<8xf32> to vector<8x1xf32>
    %52 = vector.broadcast %51 : vector<8x1xf32> to vector<8x8xf32>
    %53 = arith.subf %49, %52 : vector<8x8xf32>
    %54 = math.exp %53 : vector<8x8xf32>
    %cst_23 = arith.constant dense<0.000000e+00> : vector<8xf32>
    %55 = vector.multi_reduction <add>, %54, %cst_23 [1] : vector<8x8xf32> to vector<8xf32>
    %56 = vector.shape_cast %55 : vector<8xf32> to vector<8x1xf32>
    %57 = tpu.reciprocal %56 {approx = true} : vector<8x1xf32> -> vector<8x1xf32>
    %58 = vector.broadcast %57 : vector<8x1xf32> to vector<8x8xf32>
    %59 = arith.mulf %54, %58 : vector<8x8xf32>
    %60 = arith.truncf %59 : vector<8x8xf32> to vector<8x8xbf16>
    %cst_24 = arith.constant dense<0.000000e+00> : vector<8x32xf32>
    %61 = tpu.matmul %60, %44, %cst_24 {dimension_numbers = #tpu.dot_dimension_numbers<[1], [0], [0], [1], [0, 0, 1, 1], [], []>} : vector<8x8xbf16>, vector<8x32xbf16>, vector<8x32xf32> -> vector<8x32xf32>
    %62 = vector.extract_strided_slice %37 {offsets = [0, 32], sizes = [8, 32], strides = [1, 1]} : vector<16x384xf32> to vector<8x32xf32>
    %63 = arith.truncf %62 : vector<8x32xf32> to vector<8x32xbf16>
    %64 = vector.extract_strided_slice %37 {offsets = [0, 160], sizes = [8, 32], strides = [1, 1]} : vector<16x384xf32> to vector<8x32xf32>
    %65 = arith.truncf %64 : vector<8x32xf32> to vector<8x32xbf16>
    %66 = vector.extract_strided_slice %37 {offsets = [0, 288], sizes = [8, 32], strides = [1, 1]} : vector<16x384xf32> to vector<8x32xf32>
    %67 = arith.truncf %66 : vector<8x32xf32> to vector<8x32xbf16>
    %cst_25 = arith.constant dense<0.000000e+00> : vector<8x8xf32>
    %68 = tpu.matmul %63, %65, %cst_25 {dimension_numbers = #tpu.dot_dimension_numbers<[1], [1], [0], [0], [0, 0, 1, 0], [], []>} : vector<8x32xbf16>, vector<8x32xbf16>, vector<8x8xf32> -> vector<8x8xf32>
    %cst_26 = arith.constant 0.176776692 : f32
    %69 = vector.broadcast %cst_26 : f32 to vector<8x8xf32>
    %70 = arith.mulf %68, %69 : vector<8x8xf32>
    %71 = vector.broadcast %38 : vector<1x8xf32> to vector<8x8xf32>
    %72 = arith.addf %70, %71 : vector<8x8xf32>
    %cst_27 = arith.constant dense<0xFF800000> : vector<8xf32>
    %73 = vector.multi_reduction <maximumf>, %72, %cst_27 [1] : vector<8x8xf32> to vector<8xf32>
    %74 = vector.shape_cast %73 : vector<8xf32> to vector<8x1xf32>
    %75 = vector.broadcast %74 : vector<8x1xf32> to vector<8x8xf32>
    %76 = arith.subf %72, %75 : vector<8x8xf32>
    %77 = math.exp %76 : vector<8x8xf32>
    %cst_28 = arith.constant dense<0.000000e+00> : vector<8xf32>
    %78 = vector.multi_reduction <add>, %77, %cst_28 [1] : vector<8x8xf32> to vector<8xf32>
    %79 = vector.shape_cast %78 : vector<8xf32> to vector<8x1xf32>
    %80 = tpu.reciprocal %79 {approx = true} : vector<8x1xf32> -> vector<8x1xf32>
    %81 = vector.broadcast %80 : vector<8x1xf32> to vector<8x8xf32>
    %82 = arith.mulf %77, %81 : vector<8x8xf32>
    %83 = arith.truncf %82 : vector<8x8xf32> to vector<8x8xbf16>
    %cst_29 = arith.constant dense<0.000000e+00> : vector<8x32xf32>
    %84 = tpu.matmul %83, %67, %cst_29 {dimension_numbers = #tpu.dot_dimension_numbers<[1], [0], [0], [1], [0, 0, 1, 1], [], []>} : vector<8x8xbf16>, vector<8x32xbf16>, vector<8x32xf32> -> vector<8x32xf32>
    %85 = vector.extract_strided_slice %37 {offsets = [0, 64], sizes = [8, 32], strides = [1, 1]} : vector<16x384xf32> to vector<8x32xf32>
    %86 = arith.truncf %85 : vector<8x32xf32> to vector<8x32xbf16>
    %87 = vector.extract_strided_slice %37 {offsets = [0, 192], sizes = [8, 32], strides = [1, 1]} : vector<16x384xf32> to vector<8x32xf32>
    %88 = arith.truncf %87 : vector<8x32xf32> to vector<8x32xbf16>
    %89 = vector.extract_strided_slice %37 {offsets = [0, 320], sizes = [8, 32], strides = [1, 1]} : vector<16x384xf32> to vector<8x32xf32>
    %90 = arith.truncf %89 : vector<8x32xf32> to vector<8x32xbf16>
    %cst_30 = arith.constant dense<0.000000e+00> : vector<8x8xf32>
    %91 = tpu.matmul %86, %88, %cst_30 {dimension_numbers = #tpu.dot_dimension_numbers<[1], [1], [0], [0], [0, 0, 1, 0], [], []>} : vector<8x32xbf16>, vector<8x32xbf16>, vector<8x8xf32> -> vector<8x8xf32>
    %cst_31 = arith.constant 0.176776692 : f32
    %92 = vector.broadcast %cst_31 : f32 to vector<8x8xf32>
    %93 = arith.mulf %91, %92 : vector<8x8xf32>
    %94 = vector.broadcast %38 : vector<1x8xf32> to vector<8x8xf32>
    %95 = arith.addf %93, %94 : vector<8x8xf32>
    %cst_32 = arith.constant dense<0xFF800000> : vector<8xf32>
    %96 = vector.multi_reduction <maximumf>, %95, %cst_32 [1] : vector<8x8xf32> to vector<8xf32>
    %97 = vector.shape_cast %96 : vector<8xf32> to vector<8x1xf32>
    %98 = vector.broadcast %97 : vector<8x1xf32> to vector<8x8xf32>
    %99 = arith.subf %95, %98 : vector<8x8xf32>
    %100 = math.exp %99 : vector<8x8xf32>
    %cst_33 = arith.constant dense<0.000000e+00> : vector<8xf32>
    %101 = vector.multi_reduction <add>, %100, %cst_33 [1] : vector<8x8xf32> to vector<8xf32>
    %102 = vector.shape_cast %101 : vector<8xf32> to vector<8x1xf32>
    %103 = tpu.reciprocal %102 {approx = true} : vector<8x1xf32> -> vector<8x1xf32>
    %104 = vector.broadcast %103 : vector<8x1xf32> to vector<8x8xf32>
    %105 = arith.mulf %100, %104 : vector<8x8xf32>
    %106 = arith.truncf %105 : vector<8x8xf32> to vector<8x8xbf16>
    %cst_34 = arith.constant dense<0.000000e+00> : vector<8x32xf32>
    %107 = tpu.matmul %106, %90, %cst_34 {dimension_numbers = #tpu.dot_dimension_numbers<[1], [0], [0], [1], [0, 0, 1, 1], [], []>} : vector<8x8xbf16>, vector<8x32xbf16>, vector<8x32xf32> -> vector<8x32xf32>
    %108 = vector.extract_strided_slice %37 {offsets = [0, 96], sizes = [8, 32], strides = [1, 1]} : vector<16x384xf32> to vector<8x32xf32>
    %109 = arith.truncf %108 : vector<8x32xf32> to vector<8x32xbf16>
    %110 = vector.extract_strided_slice %37 {offsets = [0, 224], sizes = [8, 32], strides = [1, 1]} : vector<16x384xf32> to vector<8x32xf32>
    %111 = arith.truncf %110 : vector<8x32xf32> to vector<8x32xbf16>
    %112 = vector.extract_strided_slice %37 {offsets = [0, 352], sizes = [8, 32], strides = [1, 1]} : vector<16x384xf32> to vector<8x32xf32>
    %113 = arith.truncf %112 : vector<8x32xf32> to vector<8x32xbf16>
    %cst_35 = arith.constant dense<0.000000e+00> : vector<8x8xf32>
    %114 = tpu.matmul %109, %111, %cst_35 {dimension_numbers = #tpu.dot_dimension_numbers<[1], [1], [0], [0], [0, 0, 1, 0], [], []>} : vector<8x32xbf16>, vector<8x32xbf16>, vector<8x8xf32> -> vector<8x8xf32>
    %cst_36 = arith.constant 0.176776692 : f32
    %115 = vector.broadcast %cst_36 : f32 to vector<8x8xf32>
    %116 = arith.mulf %114, %115 : vector<8x8xf32>
    %117 = vector.broadcast %38 : vector<1x8xf32> to vector<8x8xf32>
    %118 = arith.addf %116, %117 : vector<8x8xf32>
    %cst_37 = arith.constant dense<0xFF800000> : vector<8xf32>
    %119 = vector.multi_reduction <maximumf>, %118, %cst_37 [1] : vector<8x8xf32> to vector<8xf32>
    %120 = vector.shape_cast %119 : vector<8xf32> to vector<8x1xf32>
    %121 = vector.broadcast %120 : vector<8x1xf32> to vector<8x8xf32>
    %122 = arith.subf %118, %121 : vector<8x8xf32>
    %123 = math.exp %122 : vector<8x8xf32>
    %cst_38 = arith.constant dense<0.000000e+00> : vector<8xf32>
    %124 = vector.multi_reduction <add>, %123, %cst_38 [1] : vector<8x8xf32> to vector<8xf32>
    %125 = vector.shape_cast %124 : vector<8xf32> to vector<8x1xf32>
    %126 = tpu.reciprocal %125 {approx = true} : vector<8x1xf32> -> vector<8x1xf32>
    %127 = vector.broadcast %126 : vector<8x1xf32> to vector<8x8xf32>
    %128 = arith.mulf %123, %127 : vector<8x8xf32>
    %129 = arith.truncf %128 : vector<8x8xf32> to vector<8x8xbf16>
    %cst_39 = arith.constant dense<0.000000e+00> : vector<8x32xf32>
    %130 = tpu.matmul %129, %113, %cst_39 {dimension_numbers = #tpu.dot_dimension_numbers<[1], [0], [0], [1], [0, 0, 1, 1], [], []>} : vector<8x8xbf16>, vector<8x32xbf16>, vector<8x32xf32> -> vector<8x32xf32>
    %131 = tpu.concatenate %61, %84, %107, %130 in 1 : vector<8x32xf32>, vector<8x32xf32>, vector<8x32xf32>, vector<8x32xf32> -> vector<8x128xf32>
    %132 = vector.extract_strided_slice %29 {offsets = [1, 0], sizes = [1, 8], strides = [1, 1]} : vector<2x8xf32> to vector<1x8xf32>
    %133 = vector.extract_strided_slice %37 {offsets = [8, 0], sizes = [8, 32], strides = [1, 1]} : vector<16x384xf32> to vector<8x32xf32>
    %134 = arith.truncf %133 : vector<8x32xf32> to vector<8x32xbf16>
    %135 = vector.extract_strided_slice %37 {offsets = [8, 128], sizes = [8, 32], strides = [1, 1]} : vector<16x384xf32> to vector<8x32xf32>
    %136 = arith.truncf %135 : vector<8x32xf32> to vector<8x32xbf16>
    %137 = vector.extract_strided_slice %37 {offsets = [8, 256], sizes = [8, 32], strides = [1, 1]} : vector<16x384xf32> to vector<8x32xf32>
    %138 = arith.truncf %137 : vector<8x32xf32> to vector<8x32xbf16>
    %cst_40 = arith.constant dense<0.000000e+00> : vector<8x8xf32>
    %139 = tpu.matmul %134, %136, %cst_40 {dimension_numbers = #tpu.dot_dimension_numbers<[1], [1], [0], [0], [0, 0, 1, 0], [], []>} : vector<8x32xbf16>, vector<8x32xbf16>, vector<8x8xf32> -> vector<8x8xf32>
    %cst_41 = arith.constant 0.176776692 : f32
    %140 = vector.broadcast %cst_41 : f32 to vector<8x8xf32>
    %141 = arith.mulf %139, %140 : vector<8x8xf32>
    %142 = vector.broadcast %132 : vector<1x8xf32> to vector<8x8xf32>
    %143 = arith.addf %141, %142 : vector<8x8xf32>
    %cst_42 = arith.constant dense<0xFF800000> : vector<8xf32>
    %144 = vector.multi_reduction <maximumf>, %143, %cst_42 [1] : vector<8x8xf32> to vector<8xf32>
    %145 = vector.shape_cast %144 : vector<8xf32> to vector<8x1xf32>
    %146 = vector.broadcast %145 : vector<8x1xf32> to vector<8x8xf32>
    %147 = arith.subf %143, %146 : vector<8x8xf32>
    %148 = math.exp %147 : vector<8x8xf32>
    %cst_43 = arith.constant dense<0.000000e+00> : vector<8xf32>
    %149 = vector.multi_reduction <add>, %148, %cst_43 [1] : vector<8x8xf32> to vector<8xf32>
    %150 = vector.shape_cast %149 : vector<8xf32> to vector<8x1xf32>
    %151 = tpu.reciprocal %150 {approx = true} : vector<8x1xf32> -> vector<8x1xf32>
    %152 = vector.broadcast %151 : vector<8x1xf32> to vector<8x8xf32>
    %153 = arith.mulf %148, %152 : vector<8x8xf32>
    %154 = arith.truncf %153 : vector<8x8xf32> to vector<8x8xbf16>
    %cst_44 = arith.constant dense<0.000000e+00> : vector<8x32xf32>
    %155 = tpu.matmul %154, %138, %cst_44 {dimension_numbers = #tpu.dot_dimension_numbers<[1], [0], [0], [1], [0, 0, 1, 1], [], []>} : vector<8x8xbf16>, vector<8x32xbf16>, vector<8x32xf32> -> vector<8x32xf32>
    %156 = vector.extract_strided_slice %37 {offsets = [8, 32], sizes = [8, 32], strides = [1, 1]} : vector<16x384xf32> to vector<8x32xf32>
    %157 = arith.truncf %156 : vector<8x32xf32> to vector<8x32xbf16>
    %158 = vector.extract_strided_slice %37 {offsets = [8, 160], sizes = [8, 32], strides = [1, 1]} : vector<16x384xf32> to vector<8x32xf32>
    %159 = arith.truncf %158 : vector<8x32xf32> to vector<8x32xbf16>
    %160 = vector.extract_strided_slice %37 {offsets = [8, 288], sizes = [8, 32], strides = [1, 1]} : vector<16x384xf32> to vector<8x32xf32>
    %161 = arith.truncf %160 : vector<8x32xf32> to vector<8x32xbf16>
    %cst_45 = arith.constant dense<0.000000e+00> : vector<8x8xf32>
    %162 = tpu.matmul %157, %159, %cst_45 {dimension_numbers = #tpu.dot_dimension_numbers<[1], [1], [0], [0], [0, 0, 1, 0], [], []>} : vector<8x32xbf16>, vector<8x32xbf16>, vector<8x8xf32> -> vector<8x8xf32>
    %cst_46 = arith.constant 0.176776692 : f32
    %163 = vector.broadcast %cst_46 : f32 to vector<8x8xf32>
    %164 = arith.mulf %162, %163 : vector<8x8xf32>
    %165 = vector.broadcast %132 : vector<1x8xf32> to vector<8x8xf32>
    %166 = arith.addf %164, %165 : vector<8x8xf32>
    %cst_47 = arith.constant dense<0xFF800000> : vector<8xf32>
    %167 = vector.multi_reduction <maximumf>, %166, %cst_47 [1] : vector<8x8xf32> to vector<8xf32>
    %168 = vector.shape_cast %167 : vector<8xf32> to vector<8x1xf32>
    %169 = vector.broadcast %168 : vector<8x1xf32> to vector<8x8xf32>
    %170 = arith.subf %166, %169 : vector<8x8xf32>
    %171 = math.exp %170 : vector<8x8xf32>
    %cst_48 = arith.constant dense<0.000000e+00> : vector<8xf32>
    %172 = vector.multi_reduction <add>, %171, %cst_48 [1] : vector<8x8xf32> to vector<8xf32>
    %173 = vector.shape_cast %172 : vector<8xf32> to vector<8x1xf32>
    %174 = tpu.reciprocal %173 {approx = true} : vector<8x1xf32> -> vector<8x1xf32>
    %175 = vector.broadcast %174 : vector<8x1xf32> to vector<8x8xf32>
    %176 = arith.mulf %171, %175 : vector<8x8xf32>
    %177 = arith.truncf %176 : vector<8x8xf32> to vector<8x8xbf16>
    %cst_49 = arith.constant dense<0.000000e+00> : vector<8x32xf32>
    %178 = tpu.matmul %177, %161, %cst_49 {dimension_numbers = #tpu.dot_dimension_numbers<[1], [0], [0], [1], [0, 0, 1, 1], [], []>} : vector<8x8xbf16>, vector<8x32xbf16>, vector<8x32xf32> -> vector<8x32xf32>
    %179 = vector.extract_strided_slice %37 {offsets = [8, 64], sizes = [8, 32], strides = [1, 1]} : vector<16x384xf32> to vector<8x32xf32>
    %180 = arith.truncf %179 : vector<8x32xf32> to vector<8x32xbf16>
    %181 = vector.extract_strided_slice %37 {offsets = [8, 192], sizes = [8, 32], strides = [1, 1]} : vector<16x384xf32> to vector<8x32xf32>
    %182 = arith.truncf %181 : vector<8x32xf32> to vector<8x32xbf16>
    %183 = vector.extract_strided_slice %37 {offsets = [8, 320], sizes = [8, 32], strides = [1, 1]} : vector<16x384xf32> to vector<8x32xf32>
    %184 = arith.truncf %183 : vector<8x32xf32> to vector<8x32xbf16>
    %cst_50 = arith.constant dense<0.000000e+00> : vector<8x8xf32>
    %185 = tpu.matmul %180, %182, %cst_50 {dimension_numbers = #tpu.dot_dimension_numbers<[1], [1], [0], [0], [0, 0, 1, 0], [], []>} : vector<8x32xbf16>, vector<8x32xbf16>, vector<8x8xf32> -> vector<8x8xf32>
    %cst_51 = arith.constant 0.176776692 : f32
    %186 = vector.broadcast %cst_51 : f32 to vector<8x8xf32>
    %187 = arith.mulf %185, %186 : vector<8x8xf32>
    %188 = vector.broadcast %132 : vector<1x8xf32> to vector<8x8xf32>
    %189 = arith.addf %187, %188 : vector<8x8xf32>
    %cst_52 = arith.constant dense<0xFF800000> : vector<8xf32>
    %190 = vector.multi_reduction <maximumf>, %189, %cst_52 [1] : vector<8x8xf32> to vector<8xf32>
    %191 = vector.shape_cast %190 : vector<8xf32> to vector<8x1xf32>
    %192 = vector.broadcast %191 : vector<8x1xf32> to vector<8x8xf32>
    %193 = arith.subf %189, %192 : vector<8x8xf32>
    %194 = math.exp %193 : vector<8x8xf32>
    %cst_53 = arith.constant dense<0.000000e+00> : vector<8xf32>
    %195 = vector.multi_reduction <add>, %194, %cst_53 [1] : vector<8x8xf32> to vector<8xf32>
    %196 = vector.shape_cast %195 : vector<8xf32> to vector<8x1xf32>
    %197 = tpu.reciprocal %196 {approx = true} : vector<8x1xf32> -> vector<8x1xf32>
    %198 = vector.broadcast %197 : vector<8x1xf32> to vector<8x8xf32>
    %199 = arith.mulf %194, %198 : vector<8x8xf32>
    %200 = arith.truncf %199 : vector<8x8xf32> to vector<8x8xbf16>
    %cst_54 = arith.constant dense<0.000000e+00> : vector<8x32xf32>
    %201 = tpu.matmul %200, %184, %cst_54 {dimension_numbers = #tpu.dot_dimension_numbers<[1], [0], [0], [1], [0, 0, 1, 1], [], []>} : vector<8x8xbf16>, vector<8x32xbf16>, vector<8x32xf32> -> vector<8x32xf32>
    %202 = vector.extract_strided_slice %37 {offsets = [8, 96], sizes = [8, 32], strides = [1, 1]} : vector<16x384xf32> to vector<8x32xf32>
    %203 = arith.truncf %202 : vector<8x32xf32> to vector<8x32xbf16>
    %204 = vector.extract_strided_slice %37 {offsets = [8, 224], sizes = [8, 32], strides = [1, 1]} : vector<16x384xf32> to vector<8x32xf32>
    %205 = arith.truncf %204 : vector<8x32xf32> to vector<8x32xbf16>
    %206 = vector.extract_strided_slice %37 {offsets = [8, 352], sizes = [8, 32], strides = [1, 1]} : vector<16x384xf32> to vector<8x32xf32>
    %207 = arith.truncf %206 : vector<8x32xf32> to vector<8x32xbf16>
    %cst_55 = arith.constant dense<0.000000e+00> : vector<8x8xf32>
    %208 = tpu.matmul %203, %205, %cst_55 {dimension_numbers = #tpu.dot_dimension_numbers<[1], [1], [0], [0], [0, 0, 1, 0], [], []>} : vector<8x32xbf16>, vector<8x32xbf16>, vector<8x8xf32> -> vector<8x8xf32>
    %cst_56 = arith.constant 0.176776692 : f32
    %209 = vector.broadcast %cst_56 : f32 to vector<8x8xf32>
    %210 = arith.mulf %208, %209 : vector<8x8xf32>
    %211 = vector.broadcast %132 : vector<1x8xf32> to vector<8x8xf32>
    %212 = arith.addf %210, %211 : vector<8x8xf32>
    %cst_57 = arith.constant dense<0xFF800000> : vector<8xf32>
    %213 = vector.multi_reduction <maximumf>, %212, %cst_57 [1] : vector<8x8xf32> to vector<8xf32>
    %214 = vector.shape_cast %213 : vector<8xf32> to vector<8x1xf32>
    %215 = vector.broadcast %214 : vector<8x1xf32> to vector<8x8xf32>
    %216 = arith.subf %212, %215 : vector<8x8xf32>
    %217 = math.exp %216 : vector<8x8xf32>
    %cst_58 = arith.constant dense<0.000000e+00> : vector<8xf32>
    %218 = vector.multi_reduction <add>, %217, %cst_58 [1] : vector<8x8xf32> to vector<8xf32>
    %219 = vector.shape_cast %218 : vector<8xf32> to vector<8x1xf32>
    %220 = tpu.reciprocal %219 {approx = true} : vector<8x1xf32> -> vector<8x1xf32>
    %221 = vector.broadcast %220 : vector<8x1xf32> to vector<8x8xf32>
    %222 = arith.mulf %217, %221 : vector<8x8xf32>
    %223 = arith.truncf %222 : vector<8x8xf32> to vector<8x8xbf16>
    %cst_59 = arith.constant dense<0.000000e+00> : vector<8x32xf32>
    %224 = tpu.matmul %223, %207, %cst_59 {dimension_numbers = #tpu.dot_dimension_numbers<[1], [0], [0], [1], [0, 0, 1, 1], [], []>} : vector<8x8xbf16>, vector<8x32xbf16>, vector<8x32xf32> -> vector<8x32xf32>
    %225 = tpu.concatenate %155, %178, %201, %224 in 1 : vector<8x32xf32>, vector<8x32xf32>, vector<8x32xf32>, vector<8x32xf32> -> vector<8x128xf32>
    %226 = tpu.concatenate %131, %225 in 0 : vector<8x128xf32>, vector<8x128xf32> -> vector<16x128xf32>
    %c0_60 = arith.constant 0 : index
    %c0_61 = arith.constant 0 : index
    %c0_62 = arith.constant 0 : index
    %227 = vector.load %arg7[%c0_60, %c0_61, %c0_62] : memref<2x128x128xbf16, #tpu.memory_space<vmem>>, vector<1x128x128xbf16>
    %228 = vector.shape_cast %227 : vector<1x128x128xbf16> to vector<128x128xbf16>
    %229 = arith.truncf %226 : vector<16x128xf32> to vector<16x128xbf16>
    %cst_63 = arith.constant dense<0.000000e+00> : vector<16x128xf32>
    %230 = tpu.matmul %229, %228, %cst_63 {dimension_numbers = #tpu.dot_dimension_numbers<[1], [0], [0], [1], [0, 0, 1, 1], [], []>} : vector<16x128xbf16>, vector<128x128xbf16>, vector<16x128xf32> -> vector<16x128xf32>
    %c0_64 = arith.constant 0 : index
    %c0_65 = arith.constant 0 : index
    %c0_66 = arith.constant 0 : index
    %231 = vector.load %arg8[%c0_64, %c0_65, %c0_66] : memref<2x1x128xf32, #tpu.memory_space<vmem>>, vector<1x1x128xf32>
    %232 = vector.shape_cast %231 : vector<1x1x128xf32> to vector<1x128xf32>
    %233 = vector.broadcast %232 : vector<1x128xf32> to vector<16x128xf32>
    %234 = arith.addf %230, %233 : vector<16x128xf32>
    %235 = arith.addf %24, %234 : vector<16x128xf32>
    %c0_67 = arith.constant 0 : index
    %c0_68 = arith.constant 0 : index
    %c0_69 = arith.constant 0 : index
    %236 = vector.load %arg9[%c0_67, %c0_68, %c0_69] : memref<2x1x128xf32, #tpu.memory_space<vmem>>, vector<1x1x128xf32>
    %237 = vector.shape_cast %236 : vector<1x1x128xf32> to vector<1x128xf32>
    %c0_70 = arith.constant 0 : index
    %c0_71 = arith.constant 0 : index
    %c0_72 = arith.constant 0 : index
    %238 = vector.load %arg10[%c0_70, %c0_71, %c0_72] : memref<2x1x128xf32, #tpu.memory_space<vmem>>, vector<1x1x128xf32>
    %239 = vector.shape_cast %238 : vector<1x1x128xf32> to vector<1x128xf32>
    %cst_73 = arith.constant dense<0.000000e+00> : vector<16xf32>
    %240 = vector.multi_reduction <add>, %235, %cst_73 [1] : vector<16x128xf32> to vector<16xf32>
    %241 = vector.shape_cast %240 : vector<16xf32> to vector<16x1xf32>
    %cst_74 = arith.constant 1.280000e+02 : f32
    %242 = vector.broadcast %cst_74 : f32 to vector<16x1xf32>
    %243 = arith.divf %241, %242 : vector<16x1xf32>
    %244 = vector.broadcast %243 : vector<16x1xf32> to vector<16x128xf32>
    %245 = arith.subf %235, %244 : vector<16x128xf32>
    %246 = arith.mulf %245, %245 : vector<16x128xf32>
    %cst_75 = arith.constant dense<0.000000e+00> : vector<16xf32>
    %247 = vector.multi_reduction <add>, %246, %cst_75 [1] : vector<16x128xf32> to vector<16xf32>
    %248 = vector.shape_cast %247 : vector<16xf32> to vector<16x1xf32>
    %cst_76 = arith.constant 1.280000e+02 : f32
    %249 = vector.broadcast %cst_76 : f32 to vector<16x1xf32>
    %250 = arith.divf %248, %249 : vector<16x1xf32>
    %251 = vector.broadcast %243 : vector<16x1xf32> to vector<16x128xf32>
    %252 = arith.subf %235, %251 : vector<16x128xf32>
    %cst_77 = arith.constant 9.99999996E-13 : f32
    %253 = vector.broadcast %cst_77 : f32 to vector<16x1xf32>
    %254 = arith.addf %250, %253 : vector<16x1xf32>
    %255 = math.rsqrt %254 : vector<16x1xf32>
    %256 = vector.broadcast %255 : vector<16x1xf32> to vector<16x128xf32>
    %257 = arith.mulf %252, %256 : vector<16x128xf32>
    %258 = vector.broadcast %237 : vector<1x128xf32> to vector<16x128xf32>
    %259 = arith.mulf %257, %258 : vector<16x128xf32>
    %260 = vector.broadcast %239 : vector<1x128xf32> to vector<16x128xf32>
    %261 = arith.addf %259, %260 : vector<16x128xf32>
    %c0_78 = arith.constant 0 : index
    %c0_79 = arith.constant 0 : index
    %c0_80 = arith.constant 0 : index
    %262 = vector.load %arg11[%c0_78, %c0_79, %c0_80] : memref<2x128x512xbf16, #tpu.memory_space<vmem>>, vector<1x128x512xbf16>
    %263 = vector.shape_cast %262 : vector<1x128x512xbf16> to vector<128x512xbf16>
    %264 = arith.truncf %261 : vector<16x128xf32> to vector<16x128xbf16>
    %cst_81 = arith.constant dense<0.000000e+00> : vector<16x512xf32>
    %265 = tpu.matmul %264, %263, %cst_81 {dimension_numbers = #tpu.dot_dimension_numbers<[1], [0], [0], [1], [0, 0, 1, 1], [], []>} : vector<16x128xbf16>, vector<128x512xbf16>, vector<16x512xf32> -> vector<16x512xf32>
    %c0_82 = arith.constant 0 : index
    %c0_83 = arith.constant 0 : index
    %c0_84 = arith.constant 0 : index
    %266 = vector.load %arg12[%c0_82, %c0_83, %c0_84] : memref<2x1x512xf32, #tpu.memory_space<vmem>>, vector<1x1x512xf32>
    %267 = vector.shape_cast %266 : vector<1x1x512xf32> to vector<1x512xf32>
    %268 = vector.broadcast %267 : vector<1x512xf32> to vector<16x512xf32>
    %269 = arith.addf %265, %268 : vector<16x512xf32>
    %270 = arith.mulf %269, %269 : vector<16x512xf32>
    %271 = arith.mulf %269, %270 : vector<16x512xf32>
    %cst_85 = arith.constant 4.471500e-02 : f32
    %272 = vector.broadcast %cst_85 : f32 to vector<16x512xf32>
    %273 = arith.mulf %272, %271 : vector<16x512xf32>
    %274 = arith.addf %269, %273 : vector<16x512xf32>
    %cst_86 = arith.constant 0.797884583 : f32
    %275 = vector.broadcast %cst_86 : f32 to vector<16x512xf32>
    %276 = arith.mulf %275, %274 : vector<16x512xf32>
    %277 = math.tanh %276 : vector<16x512xf32>
    %cst_87 = arith.constant 1.000000e+00 : f32
    %278 = vector.broadcast %cst_87 : f32 to vector<16x512xf32>
    %279 = arith.addf %278, %277 : vector<16x512xf32>
    %cst_88 = arith.constant 5.000000e-01 : f32
    %280 = vector.broadcast %cst_88 : f32 to vector<16x512xf32>
    %281 = arith.mulf %280, %279 : vector<16x512xf32>
    %282 = arith.mulf %269, %281 : vector<16x512xf32>
    %c0_89 = arith.constant 0 : index
    %c0_90 = arith.constant 0 : index
    %c0_91 = arith.constant 0 : index
    %283 = vector.load %arg13[%c0_89, %c0_90, %c0_91] : memref<2x512x128xbf16, #tpu.memory_space<vmem>>, vector<1x512x128xbf16>
    %284 = vector.shape_cast %283 : vector<1x512x128xbf16> to vector<512x128xbf16>
    %285 = arith.truncf %282 : vector<16x512xf32> to vector<16x512xbf16>
    %cst_92 = arith.constant dense<0.000000e+00> : vector<16x128xf32>
    %286 = tpu.matmul %285, %284, %cst_92 {dimension_numbers = #tpu.dot_dimension_numbers<[1], [0], [0], [1], [0, 0, 1, 1], [], []>} : vector<16x512xbf16>, vector<512x128xbf16>, vector<16x128xf32> -> vector<16x128xf32>
    %c0_93 = arith.constant 0 : index
    %c0_94 = arith.constant 0 : index
    %c0_95 = arith.constant 0 : index
    %287 = vector.load %arg14[%c0_93, %c0_94, %c0_95] : memref<2x1x128xf32, #tpu.memory_space<vmem>>, vector<1x1x128xf32>
    %288 = vector.shape_cast %287 : vector<1x1x128xf32> to vector<1x128xf32>
    %289 = vector.broadcast %288 : vector<1x128xf32> to vector<16x128xf32>
    %290 = arith.addf %286, %289 : vector<16x128xf32>
    %291 = arith.addf %261, %290 : vector<16x128xf32>
    %c0_96 = arith.constant 0 : index
    %c0_97 = arith.constant 0 : index
    %c0_98 = arith.constant 0 : index
    %292 = vector.load %arg15[%c0_96, %c0_97, %c0_98] : memref<2x1x128xf32, #tpu.memory_space<vmem>>, vector<1x1x128xf32>
    %293 = vector.shape_cast %292 : vector<1x1x128xf32> to vector<1x128xf32>
    %c0_99 = arith.constant 0 : index
    %c0_100 = arith.constant 0 : index
    %c0_101 = arith.constant 0 : index
    %294 = vector.load %arg16[%c0_99, %c0_100, %c0_101] : memref<2x1x128xf32, #tpu.memory_space<vmem>>, vector<1x1x128xf32>
    %295 = vector.shape_cast %294 : vector<1x1x128xf32> to vector<1x128xf32>
    %cst_102 = arith.constant dense<0.000000e+00> : vector<16xf32>
    %296 = vector.multi_reduction <add>, %291, %cst_102 [1] : vector<16x128xf32> to vector<16xf32>
    %297 = vector.shape_cast %296 : vector<16xf32> to vector<16x1xf32>
    %cst_103 = arith.constant 1.280000e+02 : f32
    %298 = vector.broadcast %cst_103 : f32 to vector<16x1xf32>
    %299 = arith.divf %297, %298 : vector<16x1xf32>
    %300 = vector.broadcast %299 : vector<16x1xf32> to vector<16x128xf32>
    %301 = arith.subf %291, %300 : vector<16x128xf32>
    %302 = arith.mulf %301, %301 : vector<16x128xf32>
    %cst_104 = arith.constant dense<0.000000e+00> : vector<16xf32>
    %303 = vector.multi_reduction <add>, %302, %cst_104 [1] : vector<16x128xf32> to vector<16xf32>
    %304 = vector.shape_cast %303 : vector<16xf32> to vector<16x1xf32>
    %cst_105 = arith.constant 1.280000e+02 : f32
    %305 = vector.broadcast %cst_105 : f32 to vector<16x1xf32>
    %306 = arith.divf %304, %305 : vector<16x1xf32>
    %307 = vector.broadcast %299 : vector<16x1xf32> to vector<16x128xf32>
    %308 = arith.subf %291, %307 : vector<16x128xf32>
    %cst_106 = arith.constant 9.99999996E-13 : f32
    %309 = vector.broadcast %cst_106 : f32 to vector<16x1xf32>
    %310 = arith.addf %306, %309 : vector<16x1xf32>
    %311 = math.rsqrt %310 : vector<16x1xf32>
    %312 = vector.broadcast %311 : vector<16x1xf32> to vector<16x128xf32>
    %313 = arith.mulf %308, %312 : vector<16x128xf32>
    %314 = vector.broadcast %293 : vector<1x128xf32> to vector<16x128xf32>
    %315 = arith.mulf %313, %314 : vector<16x128xf32>
    %316 = vector.broadcast %295 : vector<1x128xf32> to vector<16x128xf32>
    %317 = arith.addf %315, %316 : vector<16x128xf32>
    %c1 = arith.constant 1 : index
    %c0_107 = arith.constant 0 : index
    %c0_108 = arith.constant 0 : index
    %318 = vector.load %arg5[%c1, %c0_107, %c0_108] : memref<2x128x384xbf16, #tpu.memory_space<vmem>>, vector<1x128x384xbf16>
    %319 = vector.shape_cast %318 : vector<1x128x384xbf16> to vector<128x384xbf16>
    %320 = arith.truncf %317 : vector<16x128xf32> to vector<16x128xbf16>
    %cst_109 = arith.constant dense<0.000000e+00> : vector<16x384xf32>
    %321 = tpu.matmul %320, %319, %cst_109 {dimension_numbers = #tpu.dot_dimension_numbers<[1], [0], [0], [1], [0, 0, 1, 1], [], []>} : vector<16x128xbf16>, vector<128x384xbf16>, vector<16x384xf32> -> vector<16x384xf32>
    %c1_110 = arith.constant 1 : index
    %c0_111 = arith.constant 0 : index
    %c0_112 = arith.constant 0 : index
    %322 = vector.load %arg6[%c1_110, %c0_111, %c0_112] : memref<2x1x384xf32, #tpu.memory_space<vmem>>, vector<1x1x384xf32>
    %323 = vector.shape_cast %322 : vector<1x1x384xf32> to vector<1x384xf32>
    %324 = vector.broadcast %323 : vector<1x384xf32> to vector<16x384xf32>
    %325 = arith.addf %321, %324 : vector<16x384xf32>
    %326 = vector.extract_strided_slice %29 {offsets = [0, 0], sizes = [1, 8], strides = [1, 1]} : vector<2x8xf32> to vector<1x8xf32>
    %327 = vector.extract_strided_slice %325 {offsets = [0, 0], sizes = [8, 32], strides = [1, 1]} : vector<16x384xf32> to vector<8x32xf32>
    %328 = arith.truncf %327 : vector<8x32xf32> to vector<8x32xbf16>
    %329 = vector.extract_strided_slice %325 {offsets = [0, 128], sizes = [8, 32], strides = [1, 1]} : vector<16x384xf32> to vector<8x32xf32>
    %330 = arith.truncf %329 : vector<8x32xf32> to vector<8x32xbf16>
    %331 = vector.extract_strided_slice %325 {offsets = [0, 256], sizes = [8, 32], strides = [1, 1]} : vector<16x384xf32> to vector<8x32xf32>
    %332 = arith.truncf %331 : vector<8x32xf32> to vector<8x32xbf16>
    %cst_113 = arith.constant dense<0.000000e+00> : vector<8x8xf32>
    %333 = tpu.matmul %328, %330, %cst_113 {dimension_numbers = #tpu.dot_dimension_numbers<[1], [1], [0], [0], [0, 0, 1, 0], [], []>} : vector<8x32xbf16>, vector<8x32xbf16>, vector<8x8xf32> -> vector<8x8xf32>
    %cst_114 = arith.constant 0.176776692 : f32
    %334 = vector.broadcast %cst_114 : f32 to vector<8x8xf32>
    %335 = arith.mulf %333, %334 : vector<8x8xf32>
    %336 = vector.broadcast %326 : vector<1x8xf32> to vector<8x8xf32>
    %337 = arith.addf %335, %336 : vector<8x8xf32>
    %cst_115 = arith.constant dense<0xFF800000> : vector<8xf32>
    %338 = vector.multi_reduction <maximumf>, %337, %cst_115 [1] : vector<8x8xf32> to vector<8xf32>
    %339 = vector.shape_cast %338 : vector<8xf32> to vector<8x1xf32>
    %340 = vector.broadcast %339 : vector<8x1xf32> to vector<8x8xf32>
    %341 = arith.subf %337, %340 : vector<8x8xf32>
    %342 = math.exp %341 : vector<8x8xf32>
    %cst_116 = arith.constant dense<0.000000e+00> : vector<8xf32>
    %343 = vector.multi_reduction <add>, %342, %cst_116 [1] : vector<8x8xf32> to vector<8xf32>
    %344 = vector.shape_cast %343 : vector<8xf32> to vector<8x1xf32>
    %345 = tpu.reciprocal %344 {approx = true} : vector<8x1xf32> -> vector<8x1xf32>
    %346 = vector.broadcast %345 : vector<8x1xf32> to vector<8x8xf32>
    %347 = arith.mulf %342, %346 : vector<8x8xf32>
    %348 = arith.truncf %347 : vector<8x8xf32> to vector<8x8xbf16>
    %cst_117 = arith.constant dense<0.000000e+00> : vector<8x32xf32>
    %349 = tpu.matmul %348, %332, %cst_117 {dimension_numbers = #tpu.dot_dimension_numbers<[1], [0], [0], [1], [0, 0, 1, 1], [], []>} : vector<8x8xbf16>, vector<8x32xbf16>, vector<8x32xf32> -> vector<8x32xf32>
    %350 = vector.extract_strided_slice %325 {offsets = [0, 32], sizes = [8, 32], strides = [1, 1]} : vector<16x384xf32> to vector<8x32xf32>
    %351 = arith.truncf %350 : vector<8x32xf32> to vector<8x32xbf16>
    %352 = vector.extract_strided_slice %325 {offsets = [0, 160], sizes = [8, 32], strides = [1, 1]} : vector<16x384xf32> to vector<8x32xf32>
    %353 = arith.truncf %352 : vector<8x32xf32> to vector<8x32xbf16>
    %354 = vector.extract_strided_slice %325 {offsets = [0, 288], sizes = [8, 32], strides = [1, 1]} : vector<16x384xf32> to vector<8x32xf32>
    %355 = arith.truncf %354 : vector<8x32xf32> to vector<8x32xbf16>
    %cst_118 = arith.constant dense<0.000000e+00> : vector<8x8xf32>
    %356 = tpu.matmul %351, %353, %cst_118 {dimension_numbers = #tpu.dot_dimension_numbers<[1], [1], [0], [0], [0, 0, 1, 0], [], []>} : vector<8x32xbf16>, vector<8x32xbf16>, vector<8x8xf32> -> vector<8x8xf32>
    %cst_119 = arith.constant 0.176776692 : f32
    %357 = vector.broadcast %cst_119 : f32 to vector<8x8xf32>
    %358 = arith.mulf %356, %357 : vector<8x8xf32>
    %359 = vector.broadcast %326 : vector<1x8xf32> to vector<8x8xf32>
    %360 = arith.addf %358, %359 : vector<8x8xf32>
    %cst_120 = arith.constant dense<0xFF800000> : vector<8xf32>
    %361 = vector.multi_reduction <maximumf>, %360, %cst_120 [1] : vector<8x8xf32> to vector<8xf32>
    %362 = vector.shape_cast %361 : vector<8xf32> to vector<8x1xf32>
    %363 = vector.broadcast %362 : vector<8x1xf32> to vector<8x8xf32>
    %364 = arith.subf %360, %363 : vector<8x8xf32>
    %365 = math.exp %364 : vector<8x8xf32>
    %cst_121 = arith.constant dense<0.000000e+00> : vector<8xf32>
    %366 = vector.multi_reduction <add>, %365, %cst_121 [1] : vector<8x8xf32> to vector<8xf32>
    %367 = vector.shape_cast %366 : vector<8xf32> to vector<8x1xf32>
    %368 = tpu.reciprocal %367 {approx = true} : vector<8x1xf32> -> vector<8x1xf32>
    %369 = vector.broadcast %368 : vector<8x1xf32> to vector<8x8xf32>
    %370 = arith.mulf %365, %369 : vector<8x8xf32>
    %371 = arith.truncf %370 : vector<8x8xf32> to vector<8x8xbf16>
    %cst_122 = arith.constant dense<0.000000e+00> : vector<8x32xf32>
    %372 = tpu.matmul %371, %355, %cst_122 {dimension_numbers = #tpu.dot_dimension_numbers<[1], [0], [0], [1], [0, 0, 1, 1], [], []>} : vector<8x8xbf16>, vector<8x32xbf16>, vector<8x32xf32> -> vector<8x32xf32>
    %373 = vector.extract_strided_slice %325 {offsets = [0, 64], sizes = [8, 32], strides = [1, 1]} : vector<16x384xf32> to vector<8x32xf32>
    %374 = arith.truncf %373 : vector<8x32xf32> to vector<8x32xbf16>
    %375 = vector.extract_strided_slice %325 {offsets = [0, 192], sizes = [8, 32], strides = [1, 1]} : vector<16x384xf32> to vector<8x32xf32>
    %376 = arith.truncf %375 : vector<8x32xf32> to vector<8x32xbf16>
    %377 = vector.extract_strided_slice %325 {offsets = [0, 320], sizes = [8, 32], strides = [1, 1]} : vector<16x384xf32> to vector<8x32xf32>
    %378 = arith.truncf %377 : vector<8x32xf32> to vector<8x32xbf16>
    %cst_123 = arith.constant dense<0.000000e+00> : vector<8x8xf32>
    %379 = tpu.matmul %374, %376, %cst_123 {dimension_numbers = #tpu.dot_dimension_numbers<[1], [1], [0], [0], [0, 0, 1, 0], [], []>} : vector<8x32xbf16>, vector<8x32xbf16>, vector<8x8xf32> -> vector<8x8xf32>
    %cst_124 = arith.constant 0.176776692 : f32
    %380 = vector.broadcast %cst_124 : f32 to vector<8x8xf32>
    %381 = arith.mulf %379, %380 : vector<8x8xf32>
    %382 = vector.broadcast %326 : vector<1x8xf32> to vector<8x8xf32>
    %383 = arith.addf %381, %382 : vector<8x8xf32>
    %cst_125 = arith.constant dense<0xFF800000> : vector<8xf32>
    %384 = vector.multi_reduction <maximumf>, %383, %cst_125 [1] : vector<8x8xf32> to vector<8xf32>
    %385 = vector.shape_cast %384 : vector<8xf32> to vector<8x1xf32>
    %386 = vector.broadcast %385 : vector<8x1xf32> to vector<8x8xf32>
    %387 = arith.subf %383, %386 : vector<8x8xf32>
    %388 = math.exp %387 : vector<8x8xf32>
    %cst_126 = arith.constant dense<0.000000e+00> : vector<8xf32>
    %389 = vector.multi_reduction <add>, %388, %cst_126 [1] : vector<8x8xf32> to vector<8xf32>
    %390 = vector.shape_cast %389 : vector<8xf32> to vector<8x1xf32>
    %391 = tpu.reciprocal %390 {approx = true} : vector<8x1xf32> -> vector<8x1xf32>
    %392 = vector.broadcast %391 : vector<8x1xf32> to vector<8x8xf32>
    %393 = arith.mulf %388, %392 : vector<8x8xf32>
    %394 = arith.truncf %393 : vector<8x8xf32> to vector<8x8xbf16>
    %cst_127 = arith.constant dense<0.000000e+00> : vector<8x32xf32>
    %395 = tpu.matmul %394, %378, %cst_127 {dimension_numbers = #tpu.dot_dimension_numbers<[1], [0], [0], [1], [0, 0, 1, 1], [], []>} : vector<8x8xbf16>, vector<8x32xbf16>, vector<8x32xf32> -> vector<8x32xf32>
    %396 = vector.extract_strided_slice %325 {offsets = [0, 96], sizes = [8, 32], strides = [1, 1]} : vector<16x384xf32> to vector<8x32xf32>
    %397 = arith.truncf %396 : vector<8x32xf32> to vector<8x32xbf16>
    %398 = vector.extract_strided_slice %325 {offsets = [0, 224], sizes = [8, 32], strides = [1, 1]} : vector<16x384xf32> to vector<8x32xf32>
    %399 = arith.truncf %398 : vector<8x32xf32> to vector<8x32xbf16>
    %400 = vector.extract_strided_slice %325 {offsets = [0, 352], sizes = [8, 32], strides = [1, 1]} : vector<16x384xf32> to vector<8x32xf32>
    %401 = arith.truncf %400 : vector<8x32xf32> to vector<8x32xbf16>
    %cst_128 = arith.constant dense<0.000000e+00> : vector<8x8xf32>
    %402 = tpu.matmul %397, %399, %cst_128 {dimension_numbers = #tpu.dot_dimension_numbers<[1], [1], [0], [0], [0, 0, 1, 0], [], []>} : vector<8x32xbf16>, vector<8x32xbf16>, vector<8x8xf32> -> vector<8x8xf32>
    %cst_129 = arith.constant 0.176776692 : f32
    %403 = vector.broadcast %cst_129 : f32 to vector<8x8xf32>
    %404 = arith.mulf %402, %403 : vector<8x8xf32>
    %405 = vector.broadcast %326 : vector<1x8xf32> to vector<8x8xf32>
    %406 = arith.addf %404, %405 : vector<8x8xf32>
    %cst_130 = arith.constant dense<0xFF800000> : vector<8xf32>
    %407 = vector.multi_reduction <maximumf>, %406, %cst_130 [1] : vector<8x8xf32> to vector<8xf32>
    %408 = vector.shape_cast %407 : vector<8xf32> to vector<8x1xf32>
    %409 = vector.broadcast %408 : vector<8x1xf32> to vector<8x8xf32>
    %410 = arith.subf %406, %409 : vector<8x8xf32>
    %411 = math.exp %410 : vector<8x8xf32>
    %cst_131 = arith.constant dense<0.000000e+00> : vector<8xf32>
    %412 = vector.multi_reduction <add>, %411, %cst_131 [1] : vector<8x8xf32> to vector<8xf32>
    %413 = vector.shape_cast %412 : vector<8xf32> to vector<8x1xf32>
    %414 = tpu.reciprocal %413 {approx = true} : vector<8x1xf32> -> vector<8x1xf32>
    %415 = vector.broadcast %414 : vector<8x1xf32> to vector<8x8xf32>
    %416 = arith.mulf %411, %415 : vector<8x8xf32>
    %417 = arith.truncf %416 : vector<8x8xf32> to vector<8x8xbf16>
    %cst_132 = arith.constant dense<0.000000e+00> : vector<8x32xf32>
    %418 = tpu.matmul %417, %401, %cst_132 {dimension_numbers = #tpu.dot_dimension_numbers<[1], [0], [0], [1], [0, 0, 1, 1], [], []>} : vector<8x8xbf16>, vector<8x32xbf16>, vector<8x32xf32> -> vector<8x32xf32>
    %419 = tpu.concatenate %349, %372, %395, %418 in 1 : vector<8x32xf32>, vector<8x32xf32>, vector<8x32xf32>, vector<8x32xf32> -> vector<8x128xf32>
    %420 = vector.extract_strided_slice %29 {offsets = [1, 0], sizes = [1, 8], strides = [1, 1]} : vector<2x8xf32> to vector<1x8xf32>
    %421 = vector.extract_strided_slice %325 {offsets = [8, 0], sizes = [8, 32], strides = [1, 1]} : vector<16x384xf32> to vector<8x32xf32>
    %422 = arith.truncf %421 : vector<8x32xf32> to vector<8x32xbf16>
    %423 = vector.extract_strided_slice %325 {offsets = [8, 128], sizes = [8, 32], strides = [1, 1]} : vector<16x384xf32> to vector<8x32xf32>
    %424 = arith.truncf %423 : vector<8x32xf32> to vector<8x32xbf16>
    %425 = vector.extract_strided_slice %325 {offsets = [8, 256], sizes = [8, 32], strides = [1, 1]} : vector<16x384xf32> to vector<8x32xf32>
    %426 = arith.truncf %425 : vector<8x32xf32> to vector<8x32xbf16>
    %cst_133 = arith.constant dense<0.000000e+00> : vector<8x8xf32>
    %427 = tpu.matmul %422, %424, %cst_133 {dimension_numbers = #tpu.dot_dimension_numbers<[1], [1], [0], [0], [0, 0, 1, 0], [], []>} : vector<8x32xbf16>, vector<8x32xbf16>, vector<8x8xf32> -> vector<8x8xf32>
    %cst_134 = arith.constant 0.176776692 : f32
    %428 = vector.broadcast %cst_134 : f32 to vector<8x8xf32>
    %429 = arith.mulf %427, %428 : vector<8x8xf32>
    %430 = vector.broadcast %420 : vector<1x8xf32> to vector<8x8xf32>
    %431 = arith.addf %429, %430 : vector<8x8xf32>
    %cst_135 = arith.constant dense<0xFF800000> : vector<8xf32>
    %432 = vector.multi_reduction <maximumf>, %431, %cst_135 [1] : vector<8x8xf32> to vector<8xf32>
    %433 = vector.shape_cast %432 : vector<8xf32> to vector<8x1xf32>
    %434 = vector.broadcast %433 : vector<8x1xf32> to vector<8x8xf32>
    %435 = arith.subf %431, %434 : vector<8x8xf32>
    %436 = math.exp %435 : vector<8x8xf32>
    %cst_136 = arith.constant dense<0.000000e+00> : vector<8xf32>
    %437 = vector.multi_reduction <add>, %436, %cst_136 [1] : vector<8x8xf32> to vector<8xf32>
    %438 = vector.shape_cast %437 : vector<8xf32> to vector<8x1xf32>
    %439 = tpu.reciprocal %438 {approx = true} : vector<8x1xf32> -> vector<8x1xf32>
    %440 = vector.broadcast %439 : vector<8x1xf32> to vector<8x8xf32>
    %441 = arith.mulf %436, %440 : vector<8x8xf32>
    %442 = arith.truncf %441 : vector<8x8xf32> to vector<8x8xbf16>
    %cst_137 = arith.constant dense<0.000000e+00> : vector<8x32xf32>
    %443 = tpu.matmul %442, %426, %cst_137 {dimension_numbers = #tpu.dot_dimension_numbers<[1], [0], [0], [1], [0, 0, 1, 1], [], []>} : vector<8x8xbf16>, vector<8x32xbf16>, vector<8x32xf32> -> vector<8x32xf32>
    %444 = vector.extract_strided_slice %325 {offsets = [8, 32], sizes = [8, 32], strides = [1, 1]} : vector<16x384xf32> to vector<8x32xf32>
    %445 = arith.truncf %444 : vector<8x32xf32> to vector<8x32xbf16>
    %446 = vector.extract_strided_slice %325 {offsets = [8, 160], sizes = [8, 32], strides = [1, 1]} : vector<16x384xf32> to vector<8x32xf32>
    %447 = arith.truncf %446 : vector<8x32xf32> to vector<8x32xbf16>
    %448 = vector.extract_strided_slice %325 {offsets = [8, 288], sizes = [8, 32], strides = [1, 1]} : vector<16x384xf32> to vector<8x32xf32>
    %449 = arith.truncf %448 : vector<8x32xf32> to vector<8x32xbf16>
    %cst_138 = arith.constant dense<0.000000e+00> : vector<8x8xf32>
    %450 = tpu.matmul %445, %447, %cst_138 {dimension_numbers = #tpu.dot_dimension_numbers<[1], [1], [0], [0], [0, 0, 1, 0], [], []>} : vector<8x32xbf16>, vector<8x32xbf16>, vector<8x8xf32> -> vector<8x8xf32>
    %cst_139 = arith.constant 0.176776692 : f32
    %451 = vector.broadcast %cst_139 : f32 to vector<8x8xf32>
    %452 = arith.mulf %450, %451 : vector<8x8xf32>
    %453 = vector.broadcast %420 : vector<1x8xf32> to vector<8x8xf32>
    %454 = arith.addf %452, %453 : vector<8x8xf32>
    %cst_140 = arith.constant dense<0xFF800000> : vector<8xf32>
    %455 = vector.multi_reduction <maximumf>, %454, %cst_140 [1] : vector<8x8xf32> to vector<8xf32>
    %456 = vector.shape_cast %455 : vector<8xf32> to vector<8x1xf32>
    %457 = vector.broadcast %456 : vector<8x1xf32> to vector<8x8xf32>
    %458 = arith.subf %454, %457 : vector<8x8xf32>
    %459 = math.exp %458 : vector<8x8xf32>
    %cst_141 = arith.constant dense<0.000000e+00> : vector<8xf32>
    %460 = vector.multi_reduction <add>, %459, %cst_141 [1] : vector<8x8xf32> to vector<8xf32>
    %461 = vector.shape_cast %460 : vector<8xf32> to vector<8x1xf32>
    %462 = tpu.reciprocal %461 {approx = true} : vector<8x1xf32> -> vector<8x1xf32>
    %463 = vector.broadcast %462 : vector<8x1xf32> to vector<8x8xf32>
    %464 = arith.mulf %459, %463 : vector<8x8xf32>
    %465 = arith.truncf %464 : vector<8x8xf32> to vector<8x8xbf16>
    %cst_142 = arith.constant dense<0.000000e+00> : vector<8x32xf32>
    %466 = tpu.matmul %465, %449, %cst_142 {dimension_numbers = #tpu.dot_dimension_numbers<[1], [0], [0], [1], [0, 0, 1, 1], [], []>} : vector<8x8xbf16>, vector<8x32xbf16>, vector<8x32xf32> -> vector<8x32xf32>
    %467 = vector.extract_strided_slice %325 {offsets = [8, 64], sizes = [8, 32], strides = [1, 1]} : vector<16x384xf32> to vector<8x32xf32>
    %468 = arith.truncf %467 : vector<8x32xf32> to vector<8x32xbf16>
    %469 = vector.extract_strided_slice %325 {offsets = [8, 192], sizes = [8, 32], strides = [1, 1]} : vector<16x384xf32> to vector<8x32xf32>
    %470 = arith.truncf %469 : vector<8x32xf32> to vector<8x32xbf16>
    %471 = vector.extract_strided_slice %325 {offsets = [8, 320], sizes = [8, 32], strides = [1, 1]} : vector<16x384xf32> to vector<8x32xf32>
    %472 = arith.truncf %471 : vector<8x32xf32> to vector<8x32xbf16>
    %cst_143 = arith.constant dense<0.000000e+00> : vector<8x8xf32>
    %473 = tpu.matmul %468, %470, %cst_143 {dimension_numbers = #tpu.dot_dimension_numbers<[1], [1], [0], [0], [0, 0, 1, 0], [], []>} : vector<8x32xbf16>, vector<8x32xbf16>, vector<8x8xf32> -> vector<8x8xf32>
    %cst_144 = arith.constant 0.176776692 : f32
    %474 = vector.broadcast %cst_144 : f32 to vector<8x8xf32>
    %475 = arith.mulf %473, %474 : vector<8x8xf32>
    %476 = vector.broadcast %420 : vector<1x8xf32> to vector<8x8xf32>
    %477 = arith.addf %475, %476 : vector<8x8xf32>
    %cst_145 = arith.constant dense<0xFF800000> : vector<8xf32>
    %478 = vector.multi_reduction <maximumf>, %477, %cst_145 [1] : vector<8x8xf32> to vector<8xf32>
    %479 = vector.shape_cast %478 : vector<8xf32> to vector<8x1xf32>
    %480 = vector.broadcast %479 : vector<8x1xf32> to vector<8x8xf32>
    %481 = arith.subf %477, %480 : vector<8x8xf32>
    %482 = math.exp %481 : vector<8x8xf32>
    %cst_146 = arith.constant dense<0.000000e+00> : vector<8xf32>
    %483 = vector.multi_reduction <add>, %482, %cst_146 [1] : vector<8x8xf32> to vector<8xf32>
    %484 = vector.shape_cast %483 : vector<8xf32> to vector<8x1xf32>
    %485 = tpu.reciprocal %484 {approx = true} : vector<8x1xf32> -> vector<8x1xf32>
    %486 = vector.broadcast %485 : vector<8x1xf32> to vector<8x8xf32>
    %487 = arith.mulf %482, %486 : vector<8x8xf32>
    %488 = arith.truncf %487 : vector<8x8xf32> to vector<8x8xbf16>
    %cst_147 = arith.constant dense<0.000000e+00> : vector<8x32xf32>
    %489 = tpu.matmul %488, %472, %cst_147 {dimension_numbers = #tpu.dot_dimension_numbers<[1], [0], [0], [1], [0, 0, 1, 1], [], []>} : vector<8x8xbf16>, vector<8x32xbf16>, vector<8x32xf32> -> vector<8x32xf32>
    %490 = vector.extract_strided_slice %325 {offsets = [8, 96], sizes = [8, 32], strides = [1, 1]} : vector<16x384xf32> to vector<8x32xf32>
    %491 = arith.truncf %490 : vector<8x32xf32> to vector<8x32xbf16>
    %492 = vector.extract_strided_slice %325 {offsets = [8, 224], sizes = [8, 32], strides = [1, 1]} : vector<16x384xf32> to vector<8x32xf32>
    %493 = arith.truncf %492 : vector<8x32xf32> to vector<8x32xbf16>
    %494 = vector.extract_strided_slice %325 {offsets = [8, 352], sizes = [8, 32], strides = [1, 1]} : vector<16x384xf32> to vector<8x32xf32>
    %495 = arith.truncf %494 : vector<8x32xf32> to vector<8x32xbf16>
    %cst_148 = arith.constant dense<0.000000e+00> : vector<8x8xf32>
    %496 = tpu.matmul %491, %493, %cst_148 {dimension_numbers = #tpu.dot_dimension_numbers<[1], [1], [0], [0], [0, 0, 1, 0], [], []>} : vector<8x32xbf16>, vector<8x32xbf16>, vector<8x8xf32> -> vector<8x8xf32>
    %cst_149 = arith.constant 0.176776692 : f32
    %497 = vector.broadcast %cst_149 : f32 to vector<8x8xf32>
    %498 = arith.mulf %496, %497 : vector<8x8xf32>
    %499 = vector.broadcast %420 : vector<1x8xf32> to vector<8x8xf32>
    %500 = arith.addf %498, %499 : vector<8x8xf32>
    %cst_150 = arith.constant dense<0xFF800000> : vector<8xf32>
    %501 = vector.multi_reduction <maximumf>, %500, %cst_150 [1] : vector<8x8xf32> to vector<8xf32>
    %502 = vector.shape_cast %501 : vector<8xf32> to vector<8x1xf32>
    %503 = vector.broadcast %502 : vector<8x1xf32> to vector<8x8xf32>
    %504 = arith.subf %500, %503 : vector<8x8xf32>
    %505 = math.exp %504 : vector<8x8xf32>
    %cst_151 = arith.constant dense<0.000000e+00> : vector<8xf32>
    %506 = vector.multi_reduction <add>, %505, %cst_151 [1] : vector<8x8xf32> to vector<8xf32>
    %507 = vector.shape_cast %506 : vector<8xf32> to vector<8x1xf32>
    %508 = tpu.reciprocal %507 {approx = true} : vector<8x1xf32> -> vector<8x1xf32>
    %509 = vector.broadcast %508 : vector<8x1xf32> to vector<8x8xf32>
    %510 = arith.mulf %505, %509 : vector<8x8xf32>
    %511 = arith.truncf %510 : vector<8x8xf32> to vector<8x8xbf16>
    %cst_152 = arith.constant dense<0.000000e+00> : vector<8x32xf32>
    %512 = tpu.matmul %511, %495, %cst_152 {dimension_numbers = #tpu.dot_dimension_numbers<[1], [0], [0], [1], [0, 0, 1, 1], [], []>} : vector<8x8xbf16>, vector<8x32xbf16>, vector<8x32xf32> -> vector<8x32xf32>
    %513 = tpu.concatenate %443, %466, %489, %512 in 1 : vector<8x32xf32>, vector<8x32xf32>, vector<8x32xf32>, vector<8x32xf32> -> vector<8x128xf32>
    %514 = tpu.concatenate %419, %513 in 0 : vector<8x128xf32>, vector<8x128xf32> -> vector<16x128xf32>
    %c1_153 = arith.constant 1 : index
    %c0_154 = arith.constant 0 : index
    %c0_155 = arith.constant 0 : index
    %515 = vector.load %arg7[%c1_153, %c0_154, %c0_155] : memref<2x128x128xbf16, #tpu.memory_space<vmem>>, vector<1x128x128xbf16>
    %516 = vector.shape_cast %515 : vector<1x128x128xbf16> to vector<128x128xbf16>
    %517 = arith.truncf %514 : vector<16x128xf32> to vector<16x128xbf16>
    %cst_156 = arith.constant dense<0.000000e+00> : vector<16x128xf32>
    %518 = tpu.matmul %517, %516, %cst_156 {dimension_numbers = #tpu.dot_dimension_numbers<[1], [0], [0], [1], [0, 0, 1, 1], [], []>} : vector<16x128xbf16>, vector<128x128xbf16>, vector<16x128xf32> -> vector<16x128xf32>
    %c1_157 = arith.constant 1 : index
    %c0_158 = arith.constant 0 : index
    %c0_159 = arith.constant 0 : index
    %519 = vector.load %arg8[%c1_157, %c0_158, %c0_159] : memref<2x1x128xf32, #tpu.memory_space<vmem>>, vector<1x1x128xf32>
    %520 = vector.shape_cast %519 : vector<1x1x128xf32> to vector<1x128xf32>
    %521 = vector.broadcast %520 : vector<1x128xf32> to vector<16x128xf32>
    %522 = arith.addf %518, %521 : vector<16x128xf32>
    %523 = arith.addf %317, %522 : vector<16x128xf32>
    %c1_160 = arith.constant 1 : index
    %c0_161 = arith.constant 0 : index
    %c0_162 = arith.constant 0 : index
    %524 = vector.load %arg9[%c1_160, %c0_161, %c0_162] : memref<2x1x128xf32, #tpu.memory_space<vmem>>, vector<1x1x128xf32>
    %525 = vector.shape_cast %524 : vector<1x1x128xf32> to vector<1x128xf32>
    %c1_163 = arith.constant 1 : index
    %c0_164 = arith.constant 0 : index
    %c0_165 = arith.constant 0 : index
    %526 = vector.load %arg10[%c1_163, %c0_164, %c0_165] : memref<2x1x128xf32, #tpu.memory_space<vmem>>, vector<1x1x128xf32>
    %527 = vector.shape_cast %526 : vector<1x1x128xf32> to vector<1x128xf32>
    %cst_166 = arith.constant dense<0.000000e+00> : vector<16xf32>
    %528 = vector.multi_reduction <add>, %523, %cst_166 [1] : vector<16x128xf32> to vector<16xf32>
    %529 = vector.shape_cast %528 : vector<16xf32> to vector<16x1xf32>
    %cst_167 = arith.constant 1.280000e+02 : f32
    %530 = vector.broadcast %cst_167 : f32 to vector<16x1xf32>
    %531 = arith.divf %529, %530 : vector<16x1xf32>
    %532 = vector.broadcast %531 : vector<16x1xf32> to vector<16x128xf32>
    %533 = arith.subf %523, %532 : vector<16x128xf32>
    %534 = arith.mulf %533, %533 : vector<16x128xf32>
    %cst_168 = arith.constant dense<0.000000e+00> : vector<16xf32>
    %535 = vector.multi_reduction <add>, %534, %cst_168 [1] : vector<16x128xf32> to vector<16xf32>
    %536 = vector.shape_cast %535 : vector<16xf32> to vector<16x1xf32>
    %cst_169 = arith.constant 1.280000e+02 : f32
    %537 = vector.broadcast %cst_169 : f32 to vector<16x1xf32>
    %538 = arith.divf %536, %537 : vector<16x1xf32>
    %539 = vector.broadcast %531 : vector<16x1xf32> to vector<16x128xf32>
    %540 = arith.subf %523, %539 : vector<16x128xf32>
    %cst_170 = arith.constant 9.99999996E-13 : f32
    %541 = vector.broadcast %cst_170 : f32 to vector<16x1xf32>
    %542 = arith.addf %538, %541 : vector<16x1xf32>
    %543 = math.rsqrt %542 : vector<16x1xf32>
    %544 = vector.broadcast %543 : vector<16x1xf32> to vector<16x128xf32>
    %545 = arith.mulf %540, %544 : vector<16x128xf32>
    %546 = vector.broadcast %525 : vector<1x128xf32> to vector<16x128xf32>
    %547 = arith.mulf %545, %546 : vector<16x128xf32>
    %548 = vector.broadcast %527 : vector<1x128xf32> to vector<16x128xf32>
    %549 = arith.addf %547, %548 : vector<16x128xf32>
    %c1_171 = arith.constant 1 : index
    %c0_172 = arith.constant 0 : index
    %c0_173 = arith.constant 0 : index
    %550 = vector.load %arg11[%c1_171, %c0_172, %c0_173] : memref<2x128x512xbf16, #tpu.memory_space<vmem>>, vector<1x128x512xbf16>
    %551 = vector.shape_cast %550 : vector<1x128x512xbf16> to vector<128x512xbf16>
    %552 = arith.truncf %549 : vector<16x128xf32> to vector<16x128xbf16>
    %cst_174 = arith.constant dense<0.000000e+00> : vector<16x512xf32>
    %553 = tpu.matmul %552, %551, %cst_174 {dimension_numbers = #tpu.dot_dimension_numbers<[1], [0], [0], [1], [0, 0, 1, 1], [], []>} : vector<16x128xbf16>, vector<128x512xbf16>, vector<16x512xf32> -> vector<16x512xf32>
    %c1_175 = arith.constant 1 : index
    %c0_176 = arith.constant 0 : index
    %c0_177 = arith.constant 0 : index
    %554 = vector.load %arg12[%c1_175, %c0_176, %c0_177] : memref<2x1x512xf32, #tpu.memory_space<vmem>>, vector<1x1x512xf32>
    %555 = vector.shape_cast %554 : vector<1x1x512xf32> to vector<1x512xf32>
    %556 = vector.broadcast %555 : vector<1x512xf32> to vector<16x512xf32>
    %557 = arith.addf %553, %556 : vector<16x512xf32>
    %558 = arith.mulf %557, %557 : vector<16x512xf32>
    %559 = arith.mulf %557, %558 : vector<16x512xf32>
    %cst_178 = arith.constant 4.471500e-02 : f32
    %560 = vector.broadcast %cst_178 : f32 to vector<16x512xf32>
    %561 = arith.mulf %560, %559 : vector<16x512xf32>
    %562 = arith.addf %557, %561 : vector<16x512xf32>
    %cst_179 = arith.constant 0.797884583 : f32
    %563 = vector.broadcast %cst_179 : f32 to vector<16x512xf32>
    %564 = arith.mulf %563, %562 : vector<16x512xf32>
    %565 = math.tanh %564 : vector<16x512xf32>
    %cst_180 = arith.constant 1.000000e+00 : f32
    %566 = vector.broadcast %cst_180 : f32 to vector<16x512xf32>
    %567 = arith.addf %566, %565 : vector<16x512xf32>
    %cst_181 = arith.constant 5.000000e-01 : f32
    %568 = vector.broadcast %cst_181 : f32 to vector<16x512xf32>
    %569 = arith.mulf %568, %567 : vector<16x512xf32>
    %570 = arith.mulf %557, %569 : vector<16x512xf32>
    %c1_182 = arith.constant 1 : index
    %c0_183 = arith.constant 0 : index
    %c0_184 = arith.constant 0 : index
    %571 = vector.load %arg13[%c1_182, %c0_183, %c0_184] : memref<2x512x128xbf16, #tpu.memory_space<vmem>>, vector<1x512x128xbf16>
    %572 = vector.shape_cast %571 : vector<1x512x128xbf16> to vector<512x128xbf16>
    %573 = arith.truncf %570 : vector<16x512xf32> to vector<16x512xbf16>
    %cst_185 = arith.constant dense<0.000000e+00> : vector<16x128xf32>
    %574 = tpu.matmul %573, %572, %cst_185 {dimension_numbers = #tpu.dot_dimension_numbers<[1], [0], [0], [1], [0, 0, 1, 1], [], []>} : vector<16x512xbf16>, vector<512x128xbf16>, vector<16x128xf32> -> vector<16x128xf32>
    %c1_186 = arith.constant 1 : index
    %c0_187 = arith.constant 0 : index
    %c0_188 = arith.constant 0 : index
    %575 = vector.load %arg14[%c1_186, %c0_187, %c0_188] : memref<2x1x128xf32, #tpu.memory_space<vmem>>, vector<1x1x128xf32>
    %576 = vector.shape_cast %575 : vector<1x1x128xf32> to vector<1x128xf32>
    %577 = vector.broadcast %576 : vector<1x128xf32> to vector<16x128xf32>
    %578 = arith.addf %574, %577 : vector<16x128xf32>
    %579 = arith.addf %549, %578 : vector<16x128xf32>
    %c1_189 = arith.constant 1 : index
    %c0_190 = arith.constant 0 : index
    %c0_191 = arith.constant 0 : index
    %580 = vector.load %arg15[%c1_189, %c0_190, %c0_191] : memref<2x1x128xf32, #tpu.memory_space<vmem>>, vector<1x1x128xf32>
    %581 = vector.shape_cast %580 : vector<1x1x128xf32> to vector<1x128xf32>
    %c1_192 = arith.constant 1 : index
    %c0_193 = arith.constant 0 : index
    %c0_194 = arith.constant 0 : index
    %582 = vector.load %arg16[%c1_192, %c0_193, %c0_194] : memref<2x1x128xf32, #tpu.memory_space<vmem>>, vector<1x1x128xf32>
    %583 = vector.shape_cast %582 : vector<1x1x128xf32> to vector<1x128xf32>
    %cst_195 = arith.constant dense<0.000000e+00> : vector<16xf32>
    %584 = vector.multi_reduction <add>, %579, %cst_195 [1] : vector<16x128xf32> to vector<16xf32>
    %585 = vector.shape_cast %584 : vector<16xf32> to vector<16x1xf32>
    %cst_196 = arith.constant 1.280000e+02 : f32
    %586 = vector.broadcast %cst_196 : f32 to vector<16x1xf32>
    %587 = arith.divf %585, %586 : vector<16x1xf32>
    %588 = vector.broadcast %587 : vector<16x1xf32> to vector<16x128xf32>
    %589 = arith.subf %579, %588 : vector<16x128xf32>
    %590 = arith.mulf %589, %589 : vector<16x128xf32>
    %cst_197 = arith.constant dense<0.000000e+00> : vector<16xf32>
    %591 = vector.multi_reduction <add>, %590, %cst_197 [1] : vector<16x128xf32> to vector<16xf32>
    %592 = vector.shape_cast %591 : vector<16xf32> to vector<16x1xf32>
    %cst_198 = arith.constant 1.280000e+02 : f32
    %593 = vector.broadcast %cst_198 : f32 to vector<16x1xf32>
    %594 = arith.divf %592, %593 : vector<16x1xf32>
    %595 = vector.broadcast %587 : vector<16x1xf32> to vector<16x128xf32>
    %596 = arith.subf %579, %595 : vector<16x128xf32>
    %cst_199 = arith.constant 9.99999996E-13 : f32
    %597 = vector.broadcast %cst_199 : f32 to vector<16x1xf32>
    %598 = arith.addf %594, %597 : vector<16x1xf32>
    %599 = math.rsqrt %598 : vector<16x1xf32>
    %600 = vector.broadcast %599 : vector<16x1xf32> to vector<16x128xf32>
    %601 = arith.mulf %596, %600 : vector<16x128xf32>
    %602 = vector.broadcast %581 : vector<1x128xf32> to vector<16x128xf32>
    %603 = arith.mulf %601, %602 : vector<16x128xf32>
    %604 = vector.broadcast %583 : vector<1x128xf32> to vector<16x128xf32>
    %605 = arith.addf %603, %604 : vector<16x128xf32>
    %606 = vector.extract_strided_slice %605 {offsets = [0, 0], sizes = [1, 128], strides = [1, 1]} : vector<16x128xf32> to vector<1x128xf32>
    %607 = vector.extract_strided_slice %605 {offsets = [8, 0], sizes = [1, 128], strides = [1, 1]} : vector<16x128xf32> to vector<1x128xf32>
    %608 = tpu.concatenate %606, %607 in 0 : vector<1x128xf32>, vector<1x128xf32> -> vector<2x128xf32>
    %c0_200 = arith.constant 0 : index
    %c0_201 = arith.constant 0 : index
    %609 = vector.load %arg17[%c0_200, %c0_201] : memref<128x128xbf16, #tpu.memory_space<vmem>>, vector<128x128xbf16>
    %610 = arith.truncf %608 : vector<2x128xf32> to vector<2x128xbf16>
    %cst_202 = arith.constant dense<0.000000e+00> : vector<2x128xf32>
    %611 = tpu.matmul %610, %609, %cst_202 {dimension_numbers = #tpu.dot_dimension_numbers<[1], [0], [0], [1], [0, 0, 1, 1], [], []>} : vector<2x128xbf16>, vector<128x128xbf16>, vector<2x128xf32> -> vector<2x128xf32>
    %c0_203 = arith.constant 0 : index
    %c0_204 = arith.constant 0 : index
    %612 = vector.load %arg18[%c0_203, %c0_204] : memref<1x128xf32, #tpu.memory_space<vmem>>, vector<1x128xf32>
    %613 = vector.broadcast %612 : vector<1x128xf32> to vector<2x128xf32>
    %614 = arith.addf %611, %613 : vector<2x128xf32>
    %615 = math.tanh %614 : vector<2x128xf32>
    %c0_205 = arith.constant 0 : index
    %c0_206 = arith.constant 0 : index
    %616 = vector.load %arg19[%c0_205, %c0_206] : memref<128x128xbf16, #tpu.memory_space<vmem>>, vector<128x128xbf16>
    %617 = arith.truncf %615 : vector<2x128xf32> to vector<2x128xbf16>
    %cst_207 = arith.constant dense<0.000000e+00> : vector<2x128xf32>
    %618 = tpu.matmul %617, %616, %cst_207 {dimension_numbers = #tpu.dot_dimension_numbers<[1], [0], [0], [1], [0, 0, 1, 1], [], []>} : vector<2x128xbf16>, vector<128x128xbf16>, vector<2x128xf32> -> vector<2x128xf32>
    %c0_208 = arith.constant 0 : index
    %c0_209 = arith.constant 0 : index
    %619 = vector.load %arg20[%c0_208, %c0_209] : memref<1x128xf32, #tpu.memory_space<vmem>>, vector<1x128xf32>
    %620 = vector.broadcast %619 : vector<1x128xf32> to vector<2x128xf32>
    %621 = arith.addf %618, %620 : vector<2x128xf32>
    %c0_210 = arith.constant 0 : index
    %c0_211 = arith.constant 0 : index
    %622 = vector.load %arg21[%c0_210, %c0_211] : memref<2x128xf32, #tpu.memory_space<vmem>>, vector<2x128xf32>
    tpu.vector_store %arg21[%c0_210, %c0_211], %621 {strides = array<i32>} : memref<2x128xf32, #tpu.memory_space<vmem>>, vector<2x128xf32>,
    return
  }
  func.func @transform_0(%arg0: i32) -> (i32, i32) {
    %c0_i32 = arith.constant 0 : i32
    %c0_i32_0 = arith.constant 0 : i32
    %c0_i32_1 = arith.constant 0 : i32
    return %c0_i32, %c0_i32_0 : i32, i32
  }
  func.func @transform_1(%arg0: i32) -> (i32, i32) {
    %c0_i32 = arith.constant 0 : i32
    %c0_i32_0 = arith.constant 0 : i32
    %c0_i32_1 = arith.constant 0 : i32
    return %c0_i32, %c0_i32_0 : i32, i32
  }
  func.func @transform_2(%arg0: i32) -> (i32, i32) {
    %c0_i32 = arith.constant 0 : i32
    %c0_i32_0 = arith.constant 0 : i32
    %c0_i32_1 = arith.constant 0 : i32
    return %c0_i32, %c0_i32_0 : i32, i32
  }
  func.func @transform_3(%arg0: i32) -> (i32, i32) {
    %c0_i32 = arith.constant 0 : i32
    %c0_i32_0 = arith.constant 0 : i32
    %c0_i32_1 = arith.constant 0 : i32
    return %c0_i32, %c0_i32_0 : i32, i32
  }
  func.func @transform_4(%arg0: i32) -> (i32, i32, i32) {
    %c0_i32 = arith.constant 0 : i32
    %c0_i32_0 = arith.constant 0 : i32
    %c0_i32_1 = arith.constant 0 : i32
    %c0_i32_2 = arith.constant 0 : i32
    return %c0_i32, %c0_i32_0, %c0_i32_1 : i32, i32, i32
  }
  func.func @transform_5(%arg0: i32) -> (i32, i32, i32) {
    %c0_i32 = arith.constant 0 : i32
    %c0_i32_0 = arith.constant 0 : i32
    %c0_i32_1 = arith.constant 0 : i32
    %c0_i32_2 = arith.constant 0 : i32
    return %c0_i32, %c0_i32_0, %c0_i32_1 : i32, i32, i32
  }
  func.func @transform_6(%arg0: i32) -> (i32, i32, i32) {
    %c0_i32 = arith.constant 0 : i32
    %c0_i32_0 = arith.constant 0 : i32
    %c0_i32_1 = arith.constant 0 : i32
    %c0_i32_2 = arith.constant 0 : i32
    return %c0_i32, %c0_i32_0, %c0_i32_1 : i32, i32, i32
  }
  func.func @transform_7(%arg0: i32) -> (i32, i32, i32) {
    %c0_i32 = arith.constant 0 : i32
    %c0_i32_0 = arith.constant 0 : i32
    %c0_i32_1 = arith.constant 0 : i32
    %c0_i32_2 = arith.constant 0 : i32
    return %c0_i32, %c0_i32_0, %c0_i32_1 : i32, i32, i32
  }
  func.func @transform_8(%arg0: i32) -> (i32, i32, i32) {
    %c0_i32 = arith.constant 0 : i32
    %c0_i32_0 = arith.constant 0 : i32
    %c0_i32_1 = arith.constant 0 : i32
    %c0_i32_2 = arith.constant 0 : i32
    return %c0_i32, %c0_i32_0, %c0_i32_1 : i32, i32, i32
  }
  func.func @transform_9(%arg0: i32) -> (i32, i32, i32) {
    %c0_i32 = arith.constant 0 : i32
    %c0_i32_0 = arith.constant 0 : i32
    %c0_i32_1 = arith.constant 0 : i32
    %c0_i32_2 = arith.constant 0 : i32
    return %c0_i32, %c0_i32_0, %c0_i32_1 : i32, i32, i32
  }
  func.func @transform_10(%arg0: i32) -> (i32, i32, i32) {
    %c0_i32 = arith.constant 0 : i32
    %c0_i32_0 = arith.constant 0 : i32
    %c0_i32_1 = arith.constant 0 : i32
    %c0_i32_2 = arith.constant 0 : i32
    return %c0_i32, %c0_i32_0, %c0_i32_1 : i32, i32, i32
  }
  func.func @transform_11(%arg0: i32) -> (i32, i32, i32) {
    %c0_i32 = arith.constant 0 : i32
    %c0_i32_0 = arith.constant 0 : i32
    %c0_i32_1 = arith.constant 0 : i32
    %c0_i32_2 = arith.constant 0 : i32
    return %c0_i32, %c0_i32_0, %c0_i32_1 : i32, i32, i32
  }
  func.func @transform_12(%arg0: i32) -> (i32, i32, i32) {
    %c0_i32 = arith.constant 0 : i32
    %c0_i32_0 = arith.constant 0 : i32
    %c0_i32_1 = arith.constant 0 : i32
    %c0_i32_2 = arith.constant 0 : i32
    return %c0_i32, %c0_i32_0, %c0_i32_1 : i32, i32, i32
  }
  func.func @transform_13(%arg0: i32) -> (i32, i32, i32) {
    %c0_i32 = arith.constant 0 : i32
    %c0_i32_0 = arith.constant 0 : i32
    %c0_i32_1 = arith.constant 0 : i32
    %c0_i32_2 = arith.constant 0 : i32
    return %c0_i32, %c0_i32_0, %c0_i32_1 : i32, i32, i32
  }
  func.func @transform_14(%arg0: i32) -> (i32, i32, i32) {
    %c0_i32 = arith.constant 0 : i32
    %c0_i32_0 = arith.constant 0 : i32
    %c0_i32_1 = arith.constant 0 : i32
    %c0_i32_2 = arith.constant 0 : i32
    return %c0_i32, %c0_i32_0, %c0_i32_1 : i32, i32, i32
  }
  func.func @transform_15(%arg0: i32) -> (i32, i32, i32) {
    %c0_i32 = arith.constant 0 : i32
    %c0_i32_0 = arith.constant 0 : i32
    %c0_i32_1 = arith.constant 0 : i32
    %c0_i32_2 = arith.constant 0 : i32
    return %c0_i32, %c0_i32_0, %c0_i32_1 : i32, i32, i32
  }
  func.func @transform_16(%arg0: i32) -> (i32, i32) {
    %c0_i32 = arith.constant 0 : i32
    %c0_i32_0 = arith.constant 0 : i32
    %c0_i32_1 = arith.constant 0 : i32
    return %c0_i32, %c0_i32_0 : i32, i32
  }
  func.func @transform_17(%arg0: i32) -> (i32, i32) {
    %c0_i32 = arith.constant 0 : i32
    %c0_i32_0 = arith.constant 0 : i32
    %c0_i32_1 = arith.constant 0 : i32
    return %c0_i32, %c0_i32_0 : i32, i32
  }
  func.func @transform_18(%arg0: i32) -> (i32, i32) {
    %c0_i32 = arith.constant 0 : i32
    %c0_i32_0 = arith.constant 0 : i32
    %c0_i32_1 = arith.constant 0 : i32
    return %c0_i32, %c0_i32_0 : i32, i32
  }
  func.func @transform_19(%arg0: i32) -> (i32, i32) {
    %c0_i32 = arith.constant 0 : i32
    %c0_i32_0 = arith.constant 0 : i32
    %c0_i32_1 = arith.constant 0 : i32
    return %c0_i32, %c0_i32_0 : i32, i32
  }
  func.func @transform_20(%arg0: i32) -> (i32, i32) {
    %c0_i32 = arith.constant 0 : i32
    %c0_i32_0 = arith.constant 0 : i32
    %c0_i32_1 = arith.constant 0 : i32
    return %c0_i32, %c0_i32_0 : i32, i32
  }
}

</mosaic_0001>

<bundles_post_ra>
// kernel: sentiment_classifier_forward.1
= control target key start
LH: loop header
LB: loop body
LE: loop exit
PB: predicated region body
PF: predicated region fallthrough
CT: control target
= control target key end

     0   :  { %s7231_s0 = inlined_call_operand.vmem [shape: f32[16,128], index: 0, kind: input, shape index: {}]   ;;  %s7232_s1 = inlined_call_operand.vmem [shape: f32[2,8], index: 1, kind: input, shape index: {}]   ;;  %s7233_s2 = inlined_call_operand.vmem [shape: f32[1,128], index: 2, kind: input, shape index: {}]   ;;  %s7234_s3 = inlined_call_operand.hbm [shape: f32[1,128], index: 3, kind: input, shape index: {}]   ;;  %s7235_s4 = inlined_call_operand.hbm [shape: bf16[2,128,384], index: 4, kind: input, shape index: {}]   ;;  %s7236_s5 = inlined_call_operand.vmem [shape: f32[2,1,384], index: 5, kind: input, shape index: {}]   ;;  %s7237_s6 = inlined_call_operand.vmem [shape: bf16[2,128,128], index: 6, kind: input, shape index: {}]   ;;  %s7238_s7 = inlined_call_operand.vmem [shape: f32[2,1,128], index: 7, kind: input, shape index: {}]   ;;  %s7239_s8 = inlined_call_operand.hbm [shape: f32[2,1,128], index: 8, kind: input, shape index: {}]   ;;  %s7240_s9 = inlined_call_operand.hbm [shape: f32[2,1,128], index: 9, kind: input, shape index: {}]   ;;  %s7241_s10 = inlined_call_operand.hbm [shape: bf16[2,128,512], index: 10, kind: input, shape index: {}]   ;;  %s7242_s11 = inlined_call_operand.vmem [shape: f32[2,1,512], index: 11, kind: input, shape index: {}]   ;;  %s7243_s12 = inlined_call_operand.hbm [shape: bf16[2,512,128], index: 12, kind: input, shape index: {}]   ;;  %s7244_s13 = inlined_call_operand.vmem [shape: f32[2,1,128], index: 13, kind: input, shape index: {}]   ;;  %s7245_s14 = inlined_call_operand.hbm [shape: f32[2,1,128], index: 14, kind: input, shape index: {}]   ;;  %s7246_s15 = inlined_call_operand.hbm [shape: f32[2,1,128], index: 15, kind: input, shape index: {}]   ;;  %s7247_s16 = inlined_call_operand.vmem [shape: bf16[128,128], index: 16, kind: input, shape index: {}]   ;;  %s7248_s17 = inlined_call_operand.hbm [shape: f32[1,128], index: 17, kind: input, shape index: {}]   ;;  %s7249_s18 = inlined_call_operand.vmem [shape: bf16[128,128], index: 18, kind: input, shape index: {}]   ;;  %s7250_s19 = inlined_call_operand.hbm [shape: f32[1,128], index: 19, kind: input, shape index: {}]   ;;  %s7251_s20 = inlined_call_operand.hbm [shape: f32[2,128], index: 20, kind: output, shape index: {}]  }
   0x1   :  { %7257 = sst [smem:[#allocation27_spill]] %s7231_s0 }
   0x2   :  { %7258 = sst [smem:[#allocation28_spill]] %s7232_s1 }
   0x3   :  { %7259 = sst [smem:[#allocation29_spill]] %s7233_s2 }
   0x4   :  { %7260 = sst [smem:[#allocation30_spill]] %s7234_s3 }
   0x5   :  { %7261 = sst [smem:[#allocation31_spill]] %s7235_s4 }
   0x6   :  { %7262 = sst [smem:[#allocation32_spill]] %s7249_s18 }
   0x7   :  { %7263 = sst [smem:[#allocation33_spill]] %s7251_s20 }
   0x8   :  { %25 = vsyncpa [#allocation3], 0 }
   0x9   :  { %26 = vsyncpa [#allocation6], 0 }
   0xa   :  { %27 = vsyncpa [#allocation9], 0 }
   0xb   :  { %28 = vsyncpa [#allocation12], 0 }
   0xc   :  { %29 = vsyncpa [#allocation15], 0 }
   0xd   :  { %30 = vsyncpa [#allocation18], 0 }
   0xe   :  { %31 = vsyncpa [#allocation4], 0  ;;  %s6210_s1 = smov [#allocation5]   ;;  %s7264_s2 = sld [smem:[#allocation31_spill]] }
   0xf   :  { %s53_s22 = sshll.u32 %s6210_s1, 4  ;;  %s54_s22 = int_to_ptr.vmem [resolvable:$true] %s53_s22 }
  0x14   :  { %s5954_s25 = scalar_lea.hbm %s7264_s2, 6144 }
  0x15   :  { %p5955_p0 = scmp.ne.s32.totalorder %s7264_s2, %s5954_s25  ;;  %p5958_p1 = scmp.lt.u32.totalorder %s5954_s25, %s7264_s2 }
  0x17   :  { %p5960_p2 = pnand %p5958_p1, %p5955_p0 }
  0x19   :  { %5963 = shalt.err (!%p5960_p2)
}
  0x1a   :  { %s5964_s4 = scalar_lea.vmem %s54_s22, 6144  ;;  %p5969_p4 = scmp.lt.s32.totalorder %s54_s22, %s54_s22 }
  0x1b   :  { %p5965_p3 = scmp.ne.s32.totalorder %s54_s22, %s5964_s4  ;;  %p5970_p5 = scmp.lt.s32.totalorder %s5964_s4, %s5964_s4 }
  0x1d   :  { %p5971_p6 = por %p5970_p5, %p5969_p4 }
  0x1f   :  { %p5972_p7 = pnand %p5971_p6, %p5965_p3 }
  0x21   :  { %5975 = shalt.err (!%p5972_p7)
}
  0x22   :  { %s6211_s29 = smov 192   ;;  %s6212_s30 = smov 12  }
  0x23   :  { %59 = dma.hbm_to_vmem [thread:$0]  %s7264_s2, 6144, %s54_s22, [#allocation6], %s6211_s29, %s6211_s29, %s6212_s30  }
  0x24   :  { %s6213_s1 = smov [#allocation8]   ;;  %s6214_s24 = smov [#allocation11]  }
  0x25   :  { %s83_s23 = sshll.u32 %s6213_s1, 4  ;;  %s109_s25 = sshll.u32 %s6214_s24, 4  ;;  %s84_s23 = int_to_ptr.vmem [resolvable:$true] %s83_s23  ;;  %s110_s25 = int_to_ptr.vmem [resolvable:$true] %s109_s25 }
  0x26   :  { %s5976_s27 = scalar_lea.hbm %s7240_s9, 32 }
  0x27   :  { %p5977_p8 = scmp.ne.s32.totalorder %s7240_s9, %s5976_s27  ;;  %p5980_p9 = scmp.lt.u32.totalorder %s5976_s27, %s7240_s9 }
  0x29   :  { %p5982_p10 = pnand %p5980_p9, %p5977_p8 }
  0x2b   :  { %5985 = shalt.err (!%p5982_p10)
}
  0x2c   :  { %s5986_s22 = scalar_lea.vmem %s84_s23, 32  ;;  %p5991_p12 = scmp.lt.s32.totalorder %s84_s23, %s84_s23 }
  0x2d   :  { %p5987_p11 = scmp.ne.s32.totalorder %s84_s23, %s5986_s22  ;;  %p5992_p13 = scmp.lt.s32.totalorder %s5986_s22, %s5986_s22 }
  0x2f   :  { %p5993_p0 = por %p5992_p13, %p5991_p12 }
  0x31   :  { %p5994_p1 = pnand %p5993_p0, %p5987_p11 }
  0x33   :  { %5997 = shalt.err (!%p5994_p1)
}
  0x34   :  { %s6215_s2 = smov 16   ;;  %s6216_s29 = smov 1  }
  0x35   :  { %89 = dma.hbm_to_vmem [thread:$0]  %s7240_s9, 32, %s84_s23, [#allocation9], %s6215_s2, %s6215_s2, %s6216_s29  }
  0x36   :  { %s5998_s21 = scalar_lea.hbm %s7243_s12, 8192 }
  0x37   :  { %p5999_p2 = scmp.ne.s32.totalorder %s7243_s12, %s5998_s21  ;;  %p6002_p3 = scmp.lt.u32.totalorder %s5998_s21, %s7243_s12 }
  0x39   :  { %p6004_p4 = pnand %p6002_p3, %p5999_p2 }
  0x3b   :  { %6007 = shalt.err (!%p6004_p4)
}
  0x3c   :  { %s6008_s27 = scalar_lea.vmem %s110_s25, 8192  ;;  %p6013_p6 = scmp.lt.s32.totalorder %s110_s25, %s110_s25 }
  0x3d   :  { %p6009_p5 = scmp.ne.s32.totalorder %s110_s25, %s6008_s27  ;;  %p6014_p7 = scmp.lt.s32.totalorder %s6008_s27, %s6008_s27 }
  0x3f   :  { %p6015_p8 = por %p6014_p7, %p6013_p6 }
  0x41   :  { %p6016_p9 = pnand %p6015_p8, %p6009_p5 }
  0x43   :  { %6019 = shalt.err (!%p6016_p9)
}
  0x44   :  { %s6217_s9 = smov 64   ;;  %s6218_s23 = smov 4  }
  0x45   :  { %115 = dma.hbm_to_vmem [thread:$0]  %s7243_s12, 8192, %s110_s25, [#allocation12], %s6217_s9, %s6217_s9, %s6218_s23  }
  0x46   :  { %s6219_s22 = smov [#allocation14]   ;;  %s6220_s0 = smov [#allocation2]  }
  0x47   :  { %s135_s30 = sshll.u32 %s6219_s22, 4  ;;  %s44_s18 = sshll.u32 %s6220_s0, 4  ;;  %s136_s30 = int_to_ptr.vmem [resolvable:$true] %s135_s30  ;;  %s45_s18 = int_to_ptr.vmem [resolvable:$true] %s44_s18 }
  0x48   :  { %s6020_s1 = scalar_lea.hbm %s7246_s15, 32 }
  0x49   :  { %p6021_p10 = scmp.ne.s32.totalorder %s7246_s15, %s6020_s1  ;;  %p6024_p11 = scmp.lt.u32.totalorder %s6020_s1, %s7246_s15 }
  0x4b   :  { %p6026_p12 = pnand %p6024_p11, %p6021_p10 }
  0x4d   :  { %6029 = shalt.err (!%p6026_p12)
}
  0x4e   :  { %s6030_s12 = scalar_lea.vmem %s136_s30, 32  ;;  %p6035_p0 = scmp.lt.s32.totalorder %s136_s30, %s136_s30 }
  0x4f   :  { %p6031_p13 = scmp.ne.s32.totalorder %s136_s30, %s6030_s12  ;;  %p6036_p1 = scmp.lt.s32.totalorder %s6030_s12, %s6030_s12 }
  0x51   :  { %p6037_p2 = por %p6036_p1, %p6035_p0 }
  0x53   :  { %p6038_p3 = pnand %p6037_p2, %p6031_p13 }
  0x55   :  { %6041 = shalt.err (!%p6038_p3)
}
  0x56   :  { %141 = dma.hbm_to_vmem [thread:$0]  %s7246_s15, 32, %s136_s30, [#allocation15], %s6215_s2, %s6215_s2, %s6216_s29  }
  0x57   :  { %s7265_s22 = sld [smem:[#allocation30_spill]] }
  0x5d   :  { %s6042_s0 = scalar_lea.hbm %s7265_s22, 16 }
  0x5e   :  { %p6043_p4 = scmp.ne.s32.totalorder %s7265_s22, %s6042_s0  ;;  %p6046_p5 = scmp.lt.u32.totalorder %s6042_s0, %s7265_s22 }
  0x60   :  { %p6048_p6 = pnand %p6046_p5, %p6043_p4 }
  0x62   :  { %6051 = shalt.err (!%p6048_p6)
}
  0x63   :  { %s6052_s3 = scalar_lea.vmem %s45_s18, 16  ;;  %s6056_s26 = scalar_lea.vmem %s45_s18, 32 }
  0x64   :  { %p6053_p7 = scmp.ne.s32.totalorder %s45_s18, %s6052_s3  ;;  %p6057_p8 = scmp.lt.s32.totalorder %s45_s18, %s45_s18 }
  0x65   :  { %p6058_p9 = scmp.lt.s32.totalorder %s6056_s26, %s6052_s3 }
  0x67   :  { %p6059_p10 = por %p6058_p9, %p6057_p8 }
  0x69   :  { %p6060_p11 = pnand %p6059_p10, %p6053_p7 }
  0x6b   :  { %6063 = shalt.err (!%p6060_p11)
}
  0x6c   :  { %47 = dma.hbm_to_vmem [thread:$0]  %s7265_s22, 16, %s45_s18, [#allocation3]  }
  0x6d   :  { %s6221_s27 = smov [#allocation7]   ;;  %s6222_s25 = smov [#allocation10]  }
  0x6e   :  { %s71_s12 = sshll.u32 %s6221_s27, 4  ;;  %s95_s23 = sshll.u32 %s6222_s25, 4  ;;  %s72_s12 = int_to_ptr.vmem [resolvable:$true] %s71_s12  ;;  %s96_s23 = int_to_ptr.vmem [resolvable:$true] %s95_s23 }
  0x6f   :  { %s6064_s0 = scalar_lea.hbm %s7239_s8, 32 }
  0x70   :  { %p6065_p12 = scmp.ne.s32.totalorder %s7239_s8, %s6064_s0  ;;  %p6068_p13 = scmp.lt.u32.totalorder %s6064_s0, %s7239_s8 }
  0x72   :  { %p6070_p0 = pnand %p6068_p13, %p6065_p12 }
  0x74   :  { %6073 = shalt.err (!%p6070_p0)
}
  0x75   :  { %s6074_s18 = scalar_lea.vmem %s72_s12, 32  ;;  %p6079_p2 = scmp.lt.s32.totalorder %s72_s12, %s72_s12 }
  0x76   :  { %p6075_p1 = scmp.ne.s32.totalorder %s72_s12, %s6074_s18  ;;  %p6080_p3 = scmp.lt.s32.totalorder %s6074_s18, %s6074_s18 }
  0x78   :  { %p6081_p4 = por %p6080_p3, %p6079_p2 }
  0x7a   :  { %p6082_p5 = pnand %p6081_p4, %p6075_p1 }
  0x7c   :  { %6085 = shalt.err (!%p6082_p5)
}
  0x7d   :  { %77 = dma.hbm_to_vmem [thread:$0]  %s7239_s8, 32, %s72_s12, [#allocation6], %s6215_s2, %s6215_s2, %s6216_s29  }
  0x7e   :  { %s6086_s30 = scalar_lea.hbm %s7241_s10, 8192 }
  0x7f   :  { %p6087_p6 = scmp.ne.s32.totalorder %s7241_s10, %s6086_s30  ;;  %p6090_p7 = scmp.lt.u32.totalorder %s6086_s30, %s7241_s10 }
  0x81   :  { %p6092_p8 = pnand %p6090_p7, %p6087_p6 }
  0x83   :  { %6095 = shalt.err (!%p6092_p8)
}
  0x84   :  { %s6096_s0 = scalar_lea.vmem %s96_s23, 8192  ;;  %p6101_p10 = scmp.lt.s32.totalorder %s96_s23, %s96_s23 }
  0x85   :  { %p6097_p9 = scmp.ne.s32.totalorder %s96_s23, %s6096_s0  ;;  %p6102_p11 = scmp.lt.s32.totalorder %s6096_s0, %s6096_s0 }
  0x87   :  { %p6103_p12 = por %p6102_p11, %p6101_p10 }
  0x89   :  { %p6104_p13 = pnand %p6103_p12, %p6097_p9 }
  0x8b   :  { %6107 = shalt.err (!%p6104_p13)
}
  0x8c   :  { %s6223_s8 = smov 256   ;;  %s6224_s21 = smov [#allocation13]  }
  0x8d   :  { %101 = dma.hbm_to_vmem [thread:$0]  %s7241_s10, 8192, %s96_s23, [#allocation9], %s6223_s8, %s6223_s8, %s6215_s2  }
  0x8e   :  { %s123_s1 = sshll.u32 %s6224_s21, 4  ;;  %s6225_s24 = smov [#allocation16]   ;;  %s124_s1 = int_to_ptr.vmem [resolvable:$true] %s123_s1 }
  0x8f   :  { %s150_s18 = sshll.u32 %s6225_s24, 4  ;;  %s6108_s26 = scalar_lea.hbm %s7245_s14, 32  ;;  %s151_s18 = int_to_ptr.vmem [resolvable:$true] %s150_s18 }
  0x90   :  { %p6109_p0 = scmp.ne.s32.totalorder %s7245_s14, %s6108_s26  ;;  %p6112_p1 = scmp.lt.u32.totalorder %s6108_s26, %s7245_s14 }
  0x92   :  { %p6114_p2 = pnand %p6112_p1, %p6109_p0 }
  0x94   :  { %6117 = shalt.err (!%p6114_p2)
}
  0x95   :  { %s6118_s10 = scalar_lea.vmem %s124_s1, 32  ;;  %p6123_p4 = scmp.lt.s32.totalorder %s124_s1, %s124_s1 }
  0x96   :  { %p6119_p3 = scmp.ne.s32.totalorder %s124_s1, %s6118_s10  ;;  %p6124_p5 = scmp.lt.s32.totalorder %s6118_s10, %s6118_s10 }
  0x98   :  { %p6125_p6 = por %p6124_p5, %p6123_p4 }
  0x9a   :  { %p6126_p7 = pnand %p6125_p6, %p6119_p3 }
  0x9c   :  { %6129 = shalt.err (!%p6126_p7)
}
  0x9d   :  { %129 = dma.hbm_to_vmem [thread:$0]  %s7245_s14, 32, %s124_s1, [#allocation12], %s6215_s2, %s6215_s2, %s6216_s29  }
  0x9e   :  { %s6130_s8 = scalar_lea.hbm %s7248_s17, 16 }
  0x9f   :  { %p6131_p8 = scmp.ne.s32.totalorder %s7248_s17, %s6130_s8  ;;  %p6134_p9 = scmp.lt.u32.totalorder %s6130_s8, %s7248_s17 }
  0xa1   :  { %p6136_p10 = pnand %p6134_p9, %p6131_p8 }
  0xa3   :  { %6139 = shalt.err (!%p6136_p10)
}
  0xa4   :  { %s6140_s22 = scalar_lea.vmem %s151_s18, 16  ;;  %s6144_s3 = scalar_lea.vmem %s151_s18, 32 }
  0xa5   :  { %p6141_p11 = scmp.ne.s32.totalorder %s151_s18, %s6140_s22  ;;  %p6145_p12 = scmp.lt.s32.totalorder %s151_s18, %s151_s18 }
  0xa6   :  { %p6146_p13 = scmp.lt.s32.totalorder %s6144_s3, %s6140_s22 }
  0xa8   :  { %p6147_p0 = por %p6146_p13, %p6145_p12 }
  0xaa   :  { %p6148_p1 = pnand %p6147_p0, %p6141_p11 }
  0xac   :  { %6151 = shalt.err (!%p6148_p1)
}
  0xad   :  { %153 = dma.hbm_to_vmem [thread:$0]  %s7248_s17, 16, %s151_s18, [#allocation15]  }
  0xae   :  { %s6226_s29 = smov [#allocation17]   ;;  %s6152_s30 = scalar_lea.hbm %s7250_s19, 16 }
  0xaf   :  { %s162_s1 = sshll.u32 %s6226_s29, 4  ;;  %p6153_p2 = scmp.ne.s32.totalorder %s7250_s19, %s6152_s30  ;;  %s163_s1 = int_to_ptr.vmem [resolvable:$true] %s162_s1 }
  0xb0   :  { %p6156_p3 = scmp.lt.u32.totalorder %s6152_s30, %s7250_s19 }
  0xb2   :  { %p6158_p4 = pnand %p6156_p3, %p6153_p2 }
  0xb4   :  { %6161 = shalt.err (!%p6158_p4)
}
  0xb5   :  { %s6162_s28 = scalar_lea.vmem %s163_s1, 16  ;;  %s6166_s17 = scalar_lea.vmem %s163_s1, 32 }
  0xb6   :  { %p6163_p5 = scmp.ne.s32.totalorder %s163_s1, %s6162_s28  ;;  %p6167_p6 = scmp.lt.s32.totalorder %s163_s1, %s163_s1 }
  0xb7   :  { %p6168_p7 = scmp.lt.s32.totalorder %s6166_s17, %s6162_s28 }
  0xb9   :  { %p6169_p8 = por %p6168_p7, %p6167_p6 }
  0xbb   :  { %p6170_p9 = pnand %p6169_p8, %p6163_p5 }
  0xbd   :  { %6173 = shalt.err (!%p6170_p9)
}
  0xbe   :  { %165 = dma.hbm_to_vmem [thread:$0]  %s7250_s19, 16, %s163_s1, [#allocation18]  }
  0xbf   :  { %6196 = dma.done.wait [#allocation3], 16  }
  0xc0   :  { %6197 = vsyncadd [#allocation3], 4294967280 }
  0xc1   :  { %6198 = dma.done.wait [#allocation6], 6176  }
  0xc2   :  { %6199 = vsyncadd [#allocation6], 4294961120 }
  0xc3   :  { %6200 = dma.done.wait [#allocation9], 8224  }
  0xc4   :  { %6201 = vsyncadd [#allocation9], 4294959072 }
  0xc5   :  { %6202 = dma.done.wait [#allocation12], 8224  }
  0xc6   :  { %6203 = vsyncadd [#allocation12], 4294959072 }
  0xc7   :  { %6204 = dma.done.wait [#allocation15], 48  }
  0xc8   :  { %6205 = vsyncadd [#allocation15], 4294967248 }
  0xc9   :  { %6206 = dma.done.wait [#allocation18], 16  }
  0xca   :  { %6207 = vsyncadd [#allocation18], 4294967280  ;;  %s7266_s12 = sld [smem:[#allocation27_spill]]  ;;  %v5580_v2 = vld [vmem:[#allocation5 + $0x4] ss:$12 sps:$4 sm:$0xff]   ;;  %v6227_v4 = vmov 0.0   ;;  %v278_v53 = vlaneseq }
  0xcb   :  { %v5582_v3 = vld [vmem:[#allocation5] ss:$12 sps:$4 sm:$0xff]   ;;  %5215 = vmatprep.subr.bf16.mxu1 %v6227_v4  ;;  %v5583_v5 = vld [vmem:[#allocation5 + $0x8] ss:$12 sps:$4 sm:$0xff]   ;;  %421 = vmatprep.subr.bf16.mxu0 %v5580_v2  ;;  %v5586_v15 = vld [vmem:[#allocation5 + $0x18] ss:$12 sps:$4 sm:$0xff]  }
  0xcc   :  { %v5584_v6 = vld [vmem:[#allocation5 + $0x1c] ss:$12 sps:$4 sm:$0xff]   ;;  %422 = vmatpush1.bf16.msra.mxu0 %v5582_v3  ;;  %5216 = vmatpush3.bf16.msra.mxu1 %v5583_v5  ;;  %v5587_v16 = vld [vmem:[#allocation5 + $0x20] ss:$12 sps:$4 sm:$0xff]   ;;  %v5591_v19 = vld [vmem:[#allocation5 + $0x38] ss:$12 sps:$4 sm:$0xff]  }
  0xcd   :  { %423 = vmatprep.subr.bf16.mxu0 %v5584_v6  ;;  %5217 = vmatprep.subr.bf16.mxu1 %v6227_v4  ;;  %v5588_v17 = vld [vmem:[#allocation5 + $0x34] ss:$12 sps:$4 sm:$0xff]   ;;  %v5590_v18 = vld [vmem:[#allocation5 + $0x30] ss:$12 sps:$4 sm:$0xff]   ;;  %v5592_v20 = vld [vmem:[#allocation5 + $0x4c] ss:$12 sps:$4 sm:$0xff]  }
  0xce   :  { %v5594_v21 = vld [vmem:[#allocation5 + $0x48] ss:$12 sps:$4 sm:$0xff]   ;;  %v5595_v22 = vld [vmem:[#allocation5 + $0x50] ss:$12 sps:$4 sm:$0xff]   ;;  %v5598_v24 = vld [vmem:[#allocation5 + $0x60] ss:$12 sps:$4 sm:$0xff]  }
  0xcf   :  { %v5596_v23 = vld [vmem:[#allocation5 + $0x64] ss:$12 sps:$4 sm:$0xff]   ;;  %v5599_v25 = vld [vmem:[#allocation5 + $0x68] ss:$12 sps:$4 sm:$0xff]   ;;  %v5603_v28 = vld [vmem:[#allocation5 + $0x80] ss:$12 sps:$4 sm:$0xff]  }
  0xd0   :  { %v197_v0 = vld [vmem:[%s7266_s12] sm:$0xff]  ;;  %v198_v1 = vld [vmem:[%s7266_s12 + $0x8] sm:$0xff]  ;;  %424 = vmatpush1.bf16.msra.mxu0 %v5586_v15  ;;  %5218 = vmatpush3.bf16.msra.mxu1 %v5587_v16  ;;  %v6228_v30 = vmov 0   ;;  %vm6229_vm0 = vmmov 0   ;;  %s7267_s22 = sld [smem:[#allocation29_spill]]  ;;  %v6515_v54 = vshrl.u32 %v278_v53, 7 }
  0xd1   :  { %201 = vadd.xlane.f32.xlu0 %v197_v0  ;;  %5219 = vmatprep.subr.bf16.mxu1 %v6227_v4  ;;  %v5600_v26 = vld [vmem:[#allocation5 + $0x7c] ss:$12 sps:$4 sm:$0xff]   ;;  %v5602_v27 = vld [vmem:[#allocation5 + $0x78] ss:$12 sps:$4 sm:$0xff]   ;;  %v5604_v29 = vld [vmem:[#allocation5 + $0x94] ss:$12 sps:$4 sm:$0xff]  }
  0xd2   :  { %425 = vmatprep.subr.bf16.mxu0 %v5588_v17  ;;  %453 = vmatprep.mubr.bf16.mxu0 %v6228_v30  ;;  %v5606_v31 = vld [vmem:[#allocation5 + $0x90] ss:$12 sps:$4 sm:$0xff]   ;;  %v5607_v32 = vld [vmem:[#allocation5 + $0x98] ss:$12 sps:$4 sm:$0xff]   ;;  %v5610_v34 = vld [vmem:[#allocation5 + $0xa8] ss:$12 sps:$4 sm:$0xff]  }
  0xd3   :  { %5231 = vmatprep.mubr.msk.bf16.mxu1 %vm6229_vm0, %v6227_v4  ;;  %v5608_v33 = vld [vmem:[#allocation5 + $0xac] ss:$12 sps:$4 sm:$0xff]   ;;  %v5611_v35 = vld [vmem:[#allocation5 + $0xb0] ss:$12 sps:$4 sm:$0xff]   ;;  %v6518_v55 = vsub.s32 1, %v6515_v54  ;;  %v6524_v57 = vsub.s32 0, %v6515_v54 }
  0xd4   :  { %426 = vmatpush1.bf16.msra.mxu0 %v5590_v18  ;;  %5220 = vmatpush3.bf16.msra.mxu1 %v5591_v19  ;;  %v4734_v48 = vld [vmem:[#allocation2] ss:$0 sm:$0xff]  ;;  %v6527_v58 = vsub.s32 2, %v6515_v54  ;;  %vm508_vm1 = vcmask 261120   ;;  %vm577_vm2 = vcmask 1043456   ;;  %s7268_s1 = sld [smem:[#allocation28_spill]] }
  0xd5   :  { %203 = vadd.xlane.f32.xlu0 %v198_v1  ;;  %5221 = vmatprep.subr.bf16.mxu1 %v6227_v4  ;;  %v276_v56 = vld [vmem:[%s7236_s5] sm:$0x7]  ;;  %vm561_vm3 = vcmask 64512   ;;  %s6230_s26 = smov 96   ;;  %s6231_s15 = smov 32   ;;  %vm973_vm4 = vcmask 523264  }
  0xd6   :  { %427 = vmatprep.subr.bf16.mxu0 %v5592_v20  ;;  %v4733_v44 = vld [vmem:[%s7267_s22] ss:$0 sm:$0xff]  ;;  %v285_v59 = vrot.slane %v276_v56, %v6518_v55  ;;  %v281_v62 = vrot.slane %v276_v56, %v6524_v57  ;;  %v289_v63 = vrot.slane %v276_v56, %v6527_v58  ;;  %vm975_vm5 = vcmask 785408   ;;  %s7269_s12 = sld [smem:[#allocation32_spill]]  ;;  %s6232_s14 = smov [#allocation19]  }
  0xd7   :  { %vm4485_vm6 = vcmask 1040384   ;;  %s4719_s2 = sshll.u32 %s6232_s14, 4  ;;  %s4720_s2 = int_to_ptr.vmem [resolvable:$true] %s4719_s2 }
  0xd8   :  { %428 = vmatpush1.bf16.msra.mxu0 %v5594_v21  ;;  %5222 = vmatpush3.bf16.msra.mxu1 %v5595_v22  ;;  %s6174_s29 = scalar_lea.vmem %s4720_s2, 32  ;;  %p6179_p11 = scmp.lt.s32.totalorder %s4720_s2, %s4720_s2 }
  0xd9   :  { %5223 = vmatprep.subr.bf16.mxu1 %v6227_v4  ;;  %429 = vmatprep.subr.bf16.mxu0 %v5596_v23  ;;  %p6175_p10 = scmp.ne.s32.totalorder %s4720_s2, %s6174_s29  ;;  %p6180_p12 = scmp.lt.s32.totalorder %s6174_s29, %s6174_s29 }
  0xda   :  { %v240_v18 = vld [vmem:[%s7268_s1] sm:$0x3] }
  0xdb   :  { %v241_v19 = vsub.f32 1.0, %v240_v18  ;;  %p6181_p13 = por %p6180_p12, %p6179_p11 }
  0xdc   :  { %430 = vmatpush1.bf16.msra.mxu0 %v5598_v24  ;;  %5224 = vmatpush3.bf16.msra.mxu1 %v5599_v25 }
  0xdd   :  { %431 = vmatprep.subr.bf16.mxu0 %v5600_v26  ;;  %5225 = vmatprep.subr.bf16.mxu1 %v6227_v4  ;;  %v6547_v20 = vmul.f32 -10000.0, %v241_v19  ;;  %p6182_p0 = pnand %p6181_p13, %p6175_p10 }
  0xdf   :  { %v6551_v21 = vrot.slane %v6547_v20, %v6524_v57 }
  0xe0   :  { %432 = vmatpush1.bf16.msra.mxu0 %v5602_v27  ;;  %5226 = vmatpush3.bf16.msra.mxu1 %v5603_v28 }
  0xe1   :  { %433 = vmatprep.subr.bf16.mxu0 %v5604_v29  ;;  %5227 = vmatprep.subr.bf16.mxu1 %v6227_v4 }
  0xe4   :  { %434 = vmatpush1.bf16.msra.mxu0 %v5606_v31  ;;  %5228 = vmatpush3.bf16.msra.mxu1 %v5607_v32 }
  0xe5   :  { %435 = vmatprep.subr.bf16.mxu0 %v5608_v33  ;;  %5229 = vmatprep.subr.bf16.mxu1 %v6227_v4 }
  0xe8   :  { %436 = vmatpush1.bf16.msra.mxu0 %v5610_v34  ;;  %5230 = vmatpush3.bf16.msra.mxu1 %v5611_v35 }
  0xe9   :  { %5235 = vmatprep.subr.bf16.mxu1 %v6227_v4  ;;  %5259 = vmatprep.subr.bf16.mxu0 %v6227_v4 }
 0x15e   :  { %v202_v7 = vpop.xlane.xlu0 %201 }
 0x15f   :  { %v206_v8 = vmul.f32 0.0078125, %v202_v7 }
 0x161   :  { %v6481_v9 = vsub.f32 %v197_v0, %v206_v8 }
 0x162   :  { %v204_v10 = vpop.xlane.xlu0 %203 }
 0x163   :  { %v207_v11 = vmul.f32 0.0078125, %v204_v10  ;;  %v210_v12 = vmul.f32 %v6481_v9, %v6481_v9 }
 0x165   :  { %v6485_v13 = vsub.f32 %v198_v1, %v207_v11  ;;  %212 = vadd.xlane.f32.xlu1 %v210_v12 }
 0x167   :  { %v211_v14 = vmul.f32 %v6485_v13, %v6485_v13 }
 0x169   :  { %214 = vadd.xlane.f32.xlu1 %v211_v14 }
 0x1f2   :  { %v213_v36 = vpop.xlane.xlu1 %212 }
 0x1f3   :  { %v216_v37 = vmul.f32 0.0078125, %v213_v36 }
 0x1f5   :  { %v218_v38 = vadd.f32 1e-12, %v216_v37 }
 0x1f6   :  { %v215_v39 = vpop.xlane.xlu1 %214 }
 0x1f7   :  { %5836 = vrsqrt.f32 %v218_v38  ;;  %v217_v40 = vmul.f32 0.0078125, %v215_v39 }
 0x1f9   :  { %v219_v41 = vadd.f32 1e-12, %v217_v40 }
 0x1fb   :  { %5838 = vrsqrt.f32 %v219_v41 }
 0x201   :  { %v5837_v42 = vpop.eup %5836 }
 0x202   :  { %v222_v43 = vmul.f32 %v5837_v42, %v6481_v9 }
 0x204   :  { %v230_v47 = vmul.f32 %v4733_v44, %v222_v43 }
 0x205   :  { %v5839_v45 = vpop.eup %5838 }
 0x206   :  { %v223_v46 = vmul.f32 %v5839_v45, %v6485_v13  ;;  %v6505_v50 = vadd.f32 %v4734_v48, %v230_v47 }
 0x208   :  { %v231_v49 = vmul.f32 %v4733_v44, %v223_v46 }
 0x20a   :  { %v6507_v51 = vadd.f32 %v4734_v48, %v231_v49 }
 0x20c   :  { %v275_v52 = vpack.c.bf16 %v6507_v51, %v6505_v50 }
 0x20e   :  { %454 = vmatmul.mubr.bf16.vlgmr.msra.gmra.mrb[0].mxu0 %v275_v52  ;;  %5232 = vmatmul.mubr.bf16.vlgmr.msra.gmra.mrb[0].mxu1 %v275_v52 }
 0x20f   :  { %5237 = vmatprep.mubr.msk.bf16.mxu1 %vm6229_vm0, %v6227_v4  ;;  %5261 = vmatprep.mubr.msk.bf16.mxu0 %vm6229_vm0, %v6227_v4 }
 0x2e1   :  { %v455_v60 = vpop.f32.mrb[0].mxu0  ;;  %v498_v61 = vpop.f32.mrb[0].mxu1 }
 0x2e2   :  { %v457_v0 = vpop.f32.mrb[1].mxu0  ;;  %v5233_v1 = vpop.f32.mrb[1].mxu1  ;;  %v499_v12 = vadd.f32 %v498_v61, %v289_v63  ;;  %v456_v14 = vadd.f32 %v455_v60, %v281_v62 }
 0x2e3   :  { %v458_v2 = vadd.f32 %v457_v0, %v285_v59  ;;  %v459_v3 = vpop.f32.mrb[2].mxu0  ;;  %v501_v5 = vpop.f32.mrb[2].mxu1 }
 0x2e4   :  { %v460_v6 = vadd.f32 %v459_v3, %v281_v62  ;;  %v6532_v7 = vadd.f32 %v501_v5, %v289_v63  ;;  %v461_v8 = vpop.f32.mrb[3].mxu0  ;;  %v5234_v9 = vpop.f32.mrb[3].mxu1  ;;  %v6536_v15 = vpack.c.bf16 %v499_v12, %v499_v12  ;;  %v505_v16 = vpack.c.bf16 %v456_v14, %v456_v14 }
 0x2e5   :  { %v506_v10 = vpack.c.bf16 %v458_v2, %v458_v2  ;;  %v462_v11 = vadd.f32 %v461_v8, %v285_v59 }
 0x2e6   :  { %v579_v17 = vsel %vm577_vm2, %v6536_v15, 0  ;;  %v977_v36 = vpack.c.bf16 %v460_v6, %v460_v6 }
 0x2e7   :  { %v513_v13 = vsel %vm508_vm1, %v506_v10, 0  ;;  %v978_v29 = vpack.c.bf16 %v462_v11, %v462_v11 }
 0x2e8   :  { %5236 = vmatpush3.bf16.xpose.msra.mxu1 %v513_v13 }
 0x2e9   :  { %5241 = vmatprep.subr.bf16.mxu1 %v6227_v4  ;;  %v984_v52 = vsel %vm508_vm1, %v978_v29, 0 }
 0x2ef   :  { %5238 = vmatmul.mubr.msk.bf16.vlgmr.msra.gmra.mrb[4].mxu1 %vm508_vm1, %v505_v16 }
 0x2f0   :  { %5242 = vmatpush3.bf16.msra.mxu1 %v579_v17  ;;  %5243 = vmatprep.mubr.msk.bf16.mxu1 %vm6229_vm0, %v6227_v4 }
 0x2f1   :  { %5247 = vmatprep.subr.bf16.mxu1 %v6227_v4 }
 0x3c2   :  { %v549_v22 = vpop.f32.mrb[4].mxu1 }
 0x3c3   :  { %v555_v23 = vmul.f32 0.17677669, %v549_v22  ;;  %v5239_v24 = vpop.f32.mrb[5].mxu1 }
 0x3c4   :  { %v552_v25 = vpop.f32.mrb[6].mxu1 }
 0x3c5   :  { %v5240_v26 = vpop.f32.mrb[7].mxu1  ;;  %v560_v27 = vadd.f32 %v6551_v21, %v555_v23 }
 0x3c7   :  { %v562_v28 = vsel %vm561_vm3, %v560_v27, -inf }
 0x3c8   :  { %563 = vmax.xlane.f32.xlu0 %v562_v28 }
 0x3de   :  { %625 = vrot.lane.b32.xlu0 %v506_v10, %s6230_s26 }
 0x3e2   :  { %850 = vrot.lane.b32.xlu0 %v506_v10, %s6231_s15 }
 0x3e6   :  { %1094 = vrot.lane.b32.xlu0 %v978_v29, %s6230_s26 }
 0x3ea   :  { %1207 = vrot.lane.b32.xlu0 %v978_v29, %s6217_s9 }
 0x3ee   :  { %1319 = vrot.lane.b32.xlu0 %v978_v29, %s6231_s15 }
 0x455   :  { %v564_v31 = vpop.xlane.xlu0 %563 }
 0x456   :  { %v565_v32 = vsub.f32 %v560_v27, %v564_v31 }
 0x458   :  { %v566_v33 = vmul.f32 1.442695, %v565_v32  ;;  %v6615_v32 = vrot.slane %v6547_v20, %v6518_v55 }
 0x459   :  { %v626_v39 = vpop.permute.xlu0 %625 }
 0x45a   :  { %5840 = vpow2.f32 %v566_v33  ;;  %v631_v46 = vsel %vm508_vm1, %v626_v39, 0 }
 0x45d   :  { %v851_v44 = vpop.permute.xlu0 %850 }
 0x45e   :  { %v856_v48 = vsel %vm508_vm1, %v851_v44, 0 }
 0x461   :  { %v1095_v53 = vpop.permute.xlu0 %1094 }
 0x462   :  { %v1100_v56 = vsel %vm508_vm1, %v1095_v53, 0 }
 0x464   :  { %v5841_v34 = vpop.eup %5840 }
 0x465   :  { %v568_v35 = vsel %vm561_vm3, %v5841_v34, 0.0  ;;  %v1208_v59 = vpop.permute.xlu0 %1207 }
 0x466   :  { %569 = vadd.xlane.f32.xlu1 %v568_v35  ;;  %v1213_v61 = vsel %vm508_vm1, %v1208_v59, 0 }
 0x469   :  { %v1320_v62 = vpop.permute.xlu0 %1319 }
 0x46a   :  { %v1325_v0 = vsel %vm508_vm1, %v1320_v62, 0 }
 0x477   :  { %622 = vrot.lane.b32.xlu1 %v505_v16, %s6230_s26 }
 0x47b   :  { %738 = vrot.lane.b32.xlu1 %v506_v10, %s6217_s9 }
 0x47f   :  { %736 = vrot.lane.b32.xlu1 %v505_v16, %s6217_s9 }
 0x483   :  { %848 = vrot.lane.b32.xlu1 %v505_v16, %s6231_s15 }
 0x487   :  { %1091 = vrot.lane.b32.xlu1 %v977_v36, %s6230_s26 }
 0x48b   :  { %1205 = vrot.lane.b32.xlu1 %v977_v36, %s6217_s9 }
 0x48f   :  { %1317 = vrot.lane.b32.xlu1 %v977_v36, %s6231_s15 }
 0x4f3   :  { %v570_v37 = vpop.xlane.xlu1 %569 }
 0x4f4   :  { %5842 = vrcp.f32 %v570_v37 }
 0x4f7   :  { %v623_v38 = vpop.permute.xlu1 %622 }
 0x4fb   :  { %v739_v40 = vpop.permute.xlu1 %738 }
 0x4fc   :  { %v744_v41 = vsel %vm508_vm1, %v739_v40, 0 }
 0x4fd   :  { %5260 = vmatpush3.bf16.xpose.msra.mxu0 %v744_v41 }
 0x4fe   :  { %v5843_v42 = vpop.eup %5842  ;;  %5271 = vmatprep.subr.bf16.mxu0 %v6227_v4 }
 0x4ff   :  { %v572_v43 = vmul.f32 %v5843_v42, %v5841_v34  ;;  %v737_v47 = vpop.permute.xlu1 %736 }
 0x501   :  { %v573_v45 = vpack.c.bf16 %v572_v43, %v572_v43 }
 0x503   :  { %5244 = vmatmul.mubr.msk.bf16.vlgmr.msra.gmra.mrb[8].mxu1 %vm561_vm3, %v573_v45  ;;  %v849_v49 = vpop.permute.xlu1 %848 }
 0x504   :  { %5248 = vmatpush3.bf16.xpose.msra.mxu1 %v631_v46  ;;  %5262 = vmatmul.mubr.msk.bf16.vlgmr.msra.gmra.mrb[4].mxu0 %vm508_vm1, %v737_v47 }
 0x505   :  { %5272 = vmatpush3.bf16.xpose.msra.mxu0 %v856_v48  ;;  %5249 = vmatprep.mubr.msk.bf16.mxu1 %vm6229_vm0, %v6227_v4 }
 0x506   :  { %5273 = vmatprep.mubr.msk.bf16.mxu0 %vm6229_vm0, %v6227_v4  ;;  %5283 = vmatprep.subr.bf16.mxu0 %v6227_v4 }
 0x507   :  { %5253 = vmatprep.subr.bf16.mxu1 %v6227_v4  ;;  %v1092_v60 = vpop.permute.xlu1 %1091 }
 0x50b   :  { %5250 = vmatmul.mubr.msk.bf16.vlgmr.msra.gmra.mrb[12].mxu1 %vm508_vm1, %v623_v38  ;;  %v1206_v63 = vpop.permute.xlu1 %1205 }
 0x50c   :  { %5274 = vmatmul.mubr.msk.bf16.vlgmr.msra.gmra.mrb[8].mxu0 %vm508_vm1, %v849_v49  ;;  %5255 = vmatprep.mubr.msk.bf16.mxu1 %vm6229_vm0, %v6227_v4 }
 0x50d   :  { %5284 = vmatpush3.bf16.xpose.msra.mxu0 %v984_v52  ;;  %5285 = vmatprep.mubr.msk.bf16.mxu0 %vm6229_vm0, %v6227_v4 }
 0x50e   :  { %5295 = vmatprep.subr.bf16.mxu0 %v6227_v4 }
 0x50f   :  { %v1318_v1 = vpop.permute.xlu1 %1317 }
 0x514   :  { %5286 = vmatmul.mubr.msk.bf16.vlgmr.msra.gmra.mrb[12].mxu0 %vm508_vm1, %v977_v36 }
 0x515   :  { %5296 = vmatpush3.bf16.xpose.msra.mxu0 %v1100_v56  ;;  %5297 = vmatprep.mubr.msk.bf16.mxu0 %vm6229_vm0, %v6227_v4 }
 0x516   :  { %5307 = vmatprep.subr.bf16.mxu0 %v6227_v4 }
 0x51c   :  { %5298 = vmatmul.mubr.msk.bf16.vlgmr.msra.gmra.mrb[16].mxu0 %vm508_vm1, %v1092_v60 }
 0x51d   :  { %5308 = vmatpush3.bf16.xpose.msra.mxu0 %v1213_v61  ;;  %5309 = vmatprep.mubr.msk.bf16.mxu0 %vm6229_vm0, %v6227_v4 }
 0x51e   :  { %5319 = vmatprep.subr.bf16.mxu0 %v6227_v4 }
 0x524   :  { %5310 = vmatmul.mubr.msk.bf16.vlgmr.msra.gmra.mrb[20].mxu0 %vm508_vm1, %v1206_v63 }
 0x525   :  { %5320 = vmatpush3.bf16.xpose.msra.mxu0 %v1325_v0  ;;  %5321 = vmatprep.mubr.msk.bf16.mxu0 %vm6229_vm0, %v6227_v4 }
 0x526   :  { %5331 = vmatprep.subr.bf16.mxu0 %v6227_v4 }
 0x52c   :  { %5322 = vmatmul.mubr.msk.bf16.vlgmr.msra.gmra.mrb[24].mxu0 %vm508_vm1, %v1318_v1 }
 0x52d   :  { %5347 = vmatprep.mubr.msk.bf16.mxu0 %vm6229_vm0, %v6227_v4 }
 0x5d6   :  { %v6606_v2 = vpop.f32.mrb[8].mxu1 }
 0x5d7   :  { %v5245_v3 = vpop.f32.mrb[9].mxu1  ;;  %v780_v5 = vpop.f32.mrb[4].mxu0 }
 0x5d8   :  { %v786_v6 = vmul.f32 0.17677669, %v780_v5  ;;  %v618_v8 = vpop.f32.mrb[10].mxu1  ;;  %v5263_v9 = vpop.f32.mrb[5].mxu0 }
 0x5d9   :  { %v5246_v10 = vpop.f32.mrb[11].mxu1  ;;  %v783_v11 = vpop.f32.mrb[6].mxu0 }
 0x5da   :  { %v5264_v12 = vpop.f32.mrb[7].mxu0  ;;  %v787_v13 = vadd.f32 %v786_v6, %v6551_v21 }
 0x5dc   :  { %v788_v14 = vsel %vm561_vm3, %v787_v13, -inf }
 0x5dd   :  { %789 = vmax.xlane.f32.xlu1 %v788_v14 }
 0x5de   :  { %v667_v16 = vpop.f32.mrb[12].mxu1 }
 0x5df   :  { %v673_v17 = vmul.f32 0.17677669, %v667_v16  ;;  %v5251_v18 = vpop.f32.mrb[13].mxu1  ;;  %v892_v19 = vpop.f32.mrb[8].mxu0 }
 0x5e0   :  { %v898_v22 = vmul.f32 0.17677669, %v892_v19  ;;  %v670_v23 = vpop.f32.mrb[14].mxu1  ;;  %v5275_v24 = vpop.f32.mrb[9].mxu0 }
 0x5e1   :  { %v5252_v25 = vpop.f32.mrb[15].mxu1  ;;  %v895_v26 = vpop.f32.mrb[10].mxu0  ;;  %v674_v27 = vadd.f32 %v673_v17, %v6551_v21 }
 0x5e2   :  { %v5276_v28 = vpop.f32.mrb[11].mxu0  ;;  %v899_v31 = vadd.f32 %v898_v22, %v6551_v21 }
 0x5e3   :  { %v675_v29 = vsel %vm561_vm3, %v674_v27, -inf }
 0x5e4   :  { %676 = vmax.xlane.f32.xlu0 %v675_v29  ;;  %v900_v34 = vsel %vm561_vm3, %v899_v31, -inf }
 0x5e7   :  { %v1020_v33 = vpop.f32.mrb[12].mxu0 }
 0x5e8   :  { %v1026_v35 = vmul.f32 0.17677669, %v1020_v33  ;;  %v5287_v36 = vpop.f32.mrb[13].mxu0  ;;  %901 = vmax.xlane.f32.xlu0 %v900_v34 }
 0x5e9   :  { %v1023_v37 = vpop.f32.mrb[14].mxu0 }
 0x5ea   :  { %v5288_v38 = vpop.f32.mrb[15].mxu0  ;;  %v1031_v39 = vadd.f32 %v6615_v32, %v1026_v35 }
 0x5ec   :  { %v1032_v40 = vsel %vm561_vm3, %v1031_v39, -inf }
 0x5ed   :  { %1033 = vmax.xlane.f32.xlu0 %v1032_v40 }
 0x5ef   :  { %v1136_v41 = vpop.f32.mrb[16].mxu0 }
 0x5f0   :  { %v1142_v42 = vmul.f32 0.17677669, %v1136_v41  ;;  %v5299_v43 = vpop.f32.mrb[17].mxu0 }
 0x5f1   :  { %v1139_v44 = vpop.f32.mrb[18].mxu0 }
 0x5f2   :  { %v5300_v45 = vpop.f32.mrb[19].mxu0  ;;  %v1143_v20 = vadd.f32 %v1142_v42, %v6615_v32 }
 0x5f4   :  { %v1144_v46 = vsel %vm561_vm3, %v1143_v20, -inf }
 0x5f5   :  { %1145 = vmax.xlane.f32.xlu0 %v1144_v46 }
 0x5f7   :  { %v1249_v47 = vpop.f32.mrb[20].mxu0 }
 0x5f8   :  { %v1255_v48 = vmul.f32 0.17677669, %v1249_v47  ;;  %v5311_v49 = vpop.f32.mrb[21].mxu0 }
 0x5f9   :  { %v1252_v52 = vpop.f32.mrb[22].mxu0 }
 0x5fa   :  { %v5312_v53 = vpop.f32.mrb[23].mxu0  ;;  %v1256_v56 = vadd.f32 %v1255_v48, %v6615_v32 }
 0x5fc   :  { %v1257_v59 = vsel %vm561_vm3, %v1256_v56, -inf }
 0x5fd   :  { %1258 = vmax.xlane.f32.xlu1 %v1257_v59 }
 0x5ff   :  { %v1361_v60 = vpop.f32.mrb[24].mxu0 }
 0x600   :  { %v1367_v61 = vmul.f32 0.17677669, %v1361_v60  ;;  %v5323_v62 = vpop.f32.mrb[25].mxu0 }
 0x601   :  { %v1364_v63 = vpop.f32.mrb[26].mxu0 }
 0x602   :  { %v5324_v0 = vpop.f32.mrb[27].mxu0  ;;  %v1368_v1 = vadd.f32 %v1367_v61, %v6615_v32 }
 0x604   :  { %v1369_v3 = vsel %vm561_vm3, %v1368_v1, -inf }
 0x605   :  { %1370 = vmax.xlane.f32.xlu0 %v1369_v3 }
 0x66a   :  { %v790_v5 = vpop.xlane.xlu1 %789 }
 0x66b   :  { %v791_v6 = vsub.f32 %v787_v13, %v790_v5 }
 0x66d   :  { %v792_v8 = vmul.f32 1.442695, %v791_v6 }
 0x66f   :  { %5844 = vpow2.f32 %v792_v8 }
 0x671   :  { %v677_v9 = vpop.xlane.xlu0 %676 }
 0x672   :  { %v678_v10 = vsub.f32 %v674_v27, %v677_v9 }
 0x674   :  { %v679_v14 = vmul.f32 1.442695, %v678_v10 }
 0x675   :  { %v902_v11 = vpop.xlane.xlu0 %901 }
 0x676   :  { %v903_v12 = vsub.f32 %v899_v31, %v902_v11 }
 0x678   :  { %v904_v16 = vmul.f32 1.442695, %v903_v12 }
 0x679   :  { %v6626_v17 = vpop.eup %5844 }
 0x67a   :  { %5846 = vpow2.f32 %v904_v16  ;;  %v1034_v18 = vpop.xlane.xlu0 %1033  ;;  %v794_v19 = vsel %vm561_vm3, %v6626_v17, 0.0 }
 0x67b   :  { %v1035_v22 = vsub.f32 %v1031_v39, %v1034_v18  ;;  %795 = vadd.xlane.f32.xlu0 %v794_v19  ;;  %5848 = vpow2.f32 %v679_v14 }
 0x67d   :  { %v1036_v23 = vmul.f32 1.442695, %v1035_v22 }
 0x67f   :  { %5850 = vpow2.f32 %v1036_v23 }
 0x682   :  { %v1146_v13 = vpop.xlane.xlu0 %1145 }
 0x683   :  { %v1147_v24 = vsub.f32 %v1143_v20, %v1146_v13 }
 0x684   :  { %v6630_v25 = vpop.eup %5846 }
 0x685   :  { %v1148_v26 = vmul.f32 1.442695, %v1147_v24  ;;  %v906_v27 = vsel %vm561_vm3, %v6630_v25, 0.0  ;;  %v5849_v28 = vpop.eup %5848 }
 0x686   :  { %907 = vadd.xlane.f32.xlu1 %v906_v27  ;;  %v681_v31 = vsel %vm561_vm3, %v5849_v28, 0.0 }
 0x687   :  { %5852 = vpow2.f32 %v1148_v26 }
 0x689   :  { %v6634_v29 = vpop.eup %5850 }
 0x68a   :  { %682 = vadd.xlane.f32.xlu1 %v681_v31  ;;  %v1038_v33 = vsel %vm561_vm3, %v6634_v29, 0.0  ;;  %v1259_v36 = vpop.xlane.xlu1 %1258 }
 0x68b   :  { %1039 = vadd.xlane.f32.xlu0 %v1038_v33  ;;  %v1260_v37 = vsub.f32 %v1256_v56, %v1259_v36  ;;  %v5613_v36 = vld [vmem:[%s7237_s6 + $0x8] sm:$0xff]  }
 0x68d   :  { %v1261_v38 = vmul.f32 1.442695, %v1260_v37 }
 0x68f   :  { %5854 = vpow2.f32 %v1261_v38 }
 0x691   :  { %v6639_v34 = vpop.eup %5852 }
 0x692   :  { %v1150_v35 = vsel %vm561_vm3, %v6639_v34, 0.0  ;;  %v1371_v39 = vpop.xlane.xlu0 %1370 }
 0x693   :  { %1151 = vadd.xlane.f32.xlu0 %v1150_v35  ;;  %v1372_v40 = vsub.f32 %v1368_v1, %v1371_v39  ;;  %v5612_v35 = vld [vmem:[%s7237_s6] sm:$0xff]  }
 0x694   :  { %5332 = vmatpush3.bf16.msra.mxu0 %v5612_v35 }
 0x695   :  { %v1373_v41 = vmul.f32 1.442695, %v1372_v40  ;;  %5333 = vmatprep.subr.bf16.mxu0 %v6227_v4 }
 0x697   :  { %5856 = vpow2.f32 %v1373_v41 }
 0x698   :  { %5334 = vmatpush3.bf16.msra.mxu0 %v5613_v36 }
 0x699   :  { %v6649_v42 = vpop.eup %5854  ;;  %5335 = vmatprep.subr.bf16.mxu0 %v6227_v4 }
 0x69a   :  { %v1263_v43 = vsel %vm561_vm3, %v6649_v42, 0.0 }
 0x69b   :  { %688 = vrot.lane.b32.xlu1 %v6536_v15, %s6230_s26 }
 0x6a1   :  { %v6653_v44 = vpop.eup %5856 }
 0x6a2   :  { %v1375_v45 = vsel %vm561_vm3, %v6653_v44, 0.0 }
 0x6a9   :  { %800 = vrot.lane.b32.xlu0 %v6536_v15, %s6217_s9 }
 0x6ad   :  { %912 = vrot.lane.b32.xlu0 %v6536_v15, %s6231_s15  ;;  %v979_v15 = vpack.c.bf16 %v6532_v7, %v6532_v7 }
 0x6af   :  { %v1048_v10 = vsel %vm577_vm2, %v979_v15, 0 }
 0x6bf   :  { %1264 = vadd.xlane.f32.xlu1 %v1263_v43 }
 0x6cc   :  { %1376 = vadd.xlane.f32.xlu0 %v1375_v45 }
 0x6d0   :  { %1157 = vrot.lane.b32.xlu1 %v979_v15, %s6230_s26 }
 0x6d4   :  { %1381 = vrot.lane.b32.xlu1 %v979_v15, %s6231_s15 }
 0x6e2   :  { %1269 = vrot.lane.b32.xlu0 %v979_v15, %s6217_s9 }
 0x708   :  { %v796_v47 = vpop.xlane.xlu0 %795 }
 0x713   :  { %v908_v20 = vpop.xlane.xlu1 %907 }
 0x717   :  { %v683_v46 = vpop.xlane.xlu1 %682 }
 0x718   :  { %5858 = vrcp.f32 %v683_v46  ;;  %v1040_v49 = vpop.xlane.xlu0 %1039 }
 0x719   :  { %5860 = vrcp.f32 %v796_v47 }
 0x71a   :  { %5862 = vrcp.f32 %v908_v20 }
 0x71b   :  { %v689_v48 = vpop.permute.xlu1 %688  ;;  %5864 = vrcp.f32 %v1040_v49 }
 0x71c   :  { %v694_v52 = vsel %vm577_vm2, %v689_v48, 0 }
 0x71d   :  { %5254 = vmatpush3.bf16.msra.mxu1 %v694_v52 }
 0x71e   :  { %5265 = vmatprep.subr.bf16.mxu1 %v6227_v4 }
 0x720   :  { %v1152_v53 = vpop.xlane.xlu0 %1151 }
 0x721   :  { %5866 = vrcp.f32 %v1152_v53  ;;  %v5614_v53 = vld [vmem:[%s7237_s6 + $0x10] sm:$0xff]  }
 0x722   :  { %v5859_v7 = vpop.eup %5858  ;;  %5336 = vmatpush3.bf16.msra.mxu0 %v5614_v53 }
 0x723   :  { %v685_v56 = vmul.f32 %v5859_v7, %v5849_v28  ;;  %v5861_v62 = vpop.eup %5860  ;;  %v5615_v7 = vld [vmem:[%s7237_s6 + $0x18] sm:$0xff]   ;;  %5337 = vmatprep.subr.bf16.mxu0 %v6227_v4 }
 0x724   :  { %v801_v59 = vpop.permute.xlu0 %800  ;;  %v798_v63 = vmul.f32 %v5861_v62, %v6626_v17  ;;  %v5863_v3 = vpop.eup %5862 }
 0x725   :  { %v806_v60 = vsel %vm577_vm2, %v801_v59, 0  ;;  %v686_v61 = vpack.c.bf16 %v685_v56, %v685_v56  ;;  %v910_v6 = vmul.f32 %v5863_v3, %v6630_v25  ;;  %v5865_v9 = vpop.eup %5864  ;;  %v5616_v56 = vld [vmem:[%s7237_s6 + $0x20] sm:$0xff]   ;;  %v5619_v3 = vld [vmem:[%s7237_s6 + $0x38] sm:$0xff]  }
 0x726   :  { %v799_v1 = vpack.c.bf16 %v798_v63, %v798_v63  ;;  %v1042_v11 = vmul.f32 %v5865_v9, %v6634_v29  ;;  %5338 = vmatpush3.bf16.msra.mxu0 %v5615_v7 }
 0x727   :  { %5256 = vmatmul.mubr.msk.bf16.vlgmr.msra.gmra.mrb[16].mxu1 %vm561_vm3, %v686_v61  ;;  %v911_v8 = vpack.c.bf16 %v910_v6, %v910_v6  ;;  %5339 = vmatprep.subr.bf16.mxu0 %v6227_v4 }
 0x728   :  { %5266 = vmatpush3.bf16.msra.mxu1 %v806_v60  ;;  %5267 = vmatprep.mubr.msk.bf16.mxu1 %vm6229_vm0, %v6227_v4  ;;  %v913_v0 = vpop.permute.xlu0 %912  ;;  %v1043_v12 = vpack.c.bf16 %v1042_v11, %v1042_v11 }
 0x729   :  { %5277 = vmatprep.subr.bf16.mxu1 %v6227_v4  ;;  %v918_v5 = vsel %vm577_vm2, %v913_v0, 0  ;;  %v5617_v0 = vld [vmem:[%s7237_s6 + $0x28] sm:$0xff]  }
 0x72a   :  { %5340 = vmatpush3.bf16.msra.mxu0 %v5616_v56 }
 0x72b   :  { %v5867_v14 = vpop.eup %5866  ;;  %5341 = vmatprep.subr.bf16.mxu0 %v6227_v4 }
 0x72c   :  { %v1154_v17 = vmul.f32 %v5867_v14, %v6639_v34 }
 0x72e   :  { %v1155_v22 = vpack.c.bf16 %v1154_v17, %v1154_v17  ;;  %5342 = vmatpush3.bf16.msra.mxu0 %v5617_v0  ;;  %v5632_v0 = vld [vmem:[#allocation10 + $0x40] ss:$16 sps:$4 sm:$0xff]  }
 0x72f   :  { %5268 = vmatmul.mubr.msk.bf16.vlgmr.msra.gmra.mrb[20].mxu1 %vm561_vm3, %v799_v1  ;;  %v5618_v1 = vld [vmem:[%s7237_s6 + $0x30] sm:$0xff]   ;;  %5343 = vmatprep.subr.bf16.mxu0 %v6227_v4 }
 0x730   :  { %5278 = vmatpush3.bf16.msra.mxu1 %v918_v5  ;;  %5279 = vmatprep.mubr.msk.bf16.mxu1 %vm6229_vm0, %v6227_v4 }
 0x731   :  { %5289 = vmatprep.subr.bf16.mxu1 %v6227_v4 }
 0x732   :  { %5344 = vmatpush3.bf16.msra.mxu0 %v5618_v1  ;;  %v5635_v1 = vld [vmem:[#allocation10 + $0x48] ss:$16 sps:$4 sm:$0xff]  }
 0x733   :  { %5345 = vmatprep.subr.bf16.mxu0 %v6227_v4 }
 0x736   :  { %5346 = vmatpush3.bf16.msra.mxu0 %v5619_v3  ;;  %v5640_v3 = vld [vmem:[#allocation10 + $0x64] ss:$16 sps:$4 sm:$0xff]  }
 0x737   :  { %5280 = vmatmul.mubr.msk.bf16.vlgmr.msra.gmra.mrb[24].mxu1 %vm561_vm3, %v911_v8 }
 0x738   :  { %5290 = vmatpush3.bf16.msra.mxu1 %v1048_v10  ;;  %5291 = vmatprep.mubr.msk.bf16.mxu1 %vm6229_vm0, %v6227_v4 }
 0x739   :  { %5301 = vmatprep.subr.bf16.mxu1 %v6227_v4 }
 0x73f   :  { %5292 = vmatmul.mubr.msk.bf16.vlgmr.msra.gmra.mrb[28].mxu1 %vm561_vm3, %v1043_v12 }
 0x740   :  { %5303 = vmatprep.mubr.msk.bf16.mxu1 %vm6229_vm0, %v6227_v4 }
 0x74c   :  { %v1265_v16 = vpop.xlane.xlu1 %1264 }
 0x74d   :  { %5868 = vrcp.f32 %v1265_v16 }
 0x750   :  { %v1158_v18 = vpop.permute.xlu1 %1157 }
 0x751   :  { %v1163_v19 = vsel %vm577_vm2, %v1158_v18, 0 }
 0x752   :  { %5302 = vmatpush3.bf16.msra.mxu1 %v1163_v19 }
 0x753   :  { %5313 = vmatprep.subr.bf16.mxu1 %v6227_v4 }
 0x754   :  { %v1382_v27 = vpop.permute.xlu1 %1381 }
 0x755   :  { %5304 = vmatmul.mubr.msk.bf16.vlgmr.msra.gmra.mrb[32].mxu1 %vm561_vm3, %v1155_v22  ;;  %v1387_v29 = vsel %vm577_vm2, %v1382_v27, 0 }
 0x756   :  { %5315 = vmatprep.mubr.msk.bf16.mxu1 %vm6229_vm0, %v6227_v4 }
 0x757   :  { %v5869_v23 = vpop.eup %5868 }
 0x758   :  { %v1267_v24 = vmul.f32 %v5869_v23, %v6649_v42 }
 0x759   :  { %v1377_v13 = vpop.xlane.xlu0 %1376 }
 0x75a   :  { %5870 = vrcp.f32 %v1377_v13  ;;  %v1268_v28 = vpack.c.bf16 %v1267_v24, %v1267_v24 }
 0x75d   :  { %v1270_v25 = vpop.permute.xlu0 %1269 }
 0x75e   :  { %v1275_v26 = vsel %vm577_vm2, %v1270_v25, 0 }
 0x75f   :  { %5314 = vmatpush3.bf16.msra.mxu1 %v1275_v26 }
 0x760   :  { %5325 = vmatprep.subr.bf16.mxu1 %v6227_v4 }
 0x762   :  { %5316 = vmatmul.mubr.msk.bf16.vlgmr.msra.gmra.mrb[36].mxu1 %vm561_vm3, %v1268_v28 }
 0x763   :  { %5326 = vmatpush3.bf16.msra.mxu1 %v1387_v29  ;;  %5327 = vmatprep.mubr.msk.bf16.mxu1 %vm6229_vm0, %v6227_v4 }
 0x764   :  { %v5871_v31 = vpop.eup %5870 }
 0x765   :  { %v1379_v33 = vmul.f32 %v5871_v31, %v6653_v44 }
 0x767   :  { %v1380_v34 = vpack.c.bf16 %v1379_v33, %v1379_v33 }
 0x76a   :  { %5328 = vmatmul.mubr.msk.bf16.vlgmr.msra.gmra.mrb[40].mxu1 %vm561_vm3, %v1380_v34 }
 0x76b   :  { %1846 = vmatprep.mubr.bf16.mxu1 %v6228_v30 }
 0x7fa   :  { %v730_v37 = vpop.f32.mrb[16].mxu1 }
 0x7fb   :  { %v5257_v38 = vpop.f32.mrb[17].mxu1 }
 0x7fc   :  { %v733_v39 = vpop.f32.mrb[18].mxu1 }
 0x7fd   :  { %v5258_v40 = vpop.f32.mrb[19].mxu1 }
 0x802   :  { %v842_v41 = vpop.f32.mrb[20].mxu1 }
 0x803   :  { %v5269_v42 = vpop.f32.mrb[21].mxu1 }
 0x804   :  { %v845_v43 = vpop.f32.mrb[22].mxu1 }
 0x805   :  { %v5270_v44 = vpop.f32.mrb[23].mxu1 }
 0x80a   :  { %v954_v45 = vpop.f32.mrb[24].mxu1 }
 0x80b   :  { %v5281_v15 = vpop.f32.mrb[25].mxu1 }
 0x80c   :  { %v957_v20 = vpop.f32.mrb[26].mxu1  ;;  %v5622_v15 = vld [vmem:[#allocation10 + $0x4] ss:$16 sps:$4 sm:$0xff]  }
 0x80d   :  { %v5282_v46 = vpop.f32.mrb[27].mxu1  ;;  %v5623_v20 = vld [vmem:[#allocation10 + $0x8] ss:$16 sps:$4 sm:$0xff]   ;;  %1814 = vmatprep.subr.bf16.mxu1 %v5622_v15  ;;  %v5668_v15 = vld [vmem:[#allocation11 + $0x40] sm:$0xff]  }
 0x80e   :  { %v5625_v46 = vld [vmem:[#allocation10 + $0xc] ss:$16 sps:$4 sm:$0xff]  }
 0x80f   :  { %1857 = vmatprep.subr.bf16.mxu0 %v5625_v46  ;;  %v5670_v46 = vld [vmem:[#allocation11] sm:$0xff]  }
 0x812   :  { %v1084_v47 = vpop.f32.mrb[28].mxu1 }
 0x813   :  { %v5293_v48 = vpop.f32.mrb[29].mxu1 }
 0x814   :  { %v1087_v49 = vpop.f32.mrb[30].mxu1  ;;  %v5631_v48 = vld [vmem:[#allocation10 + $0x2c] ss:$16 sps:$4 sm:$0xff]  }
 0x815   :  { %v5294_v52 = vpop.f32.mrb[31].mxu1  ;;  %v5626_v49 = vld [vmem:[#allocation10 + $0x20] ss:$16 sps:$4 sm:$0xff]  }
 0x816   :  { %v5629_v52 = vld [vmem:[#allocation10 + $0x28] ss:$16 sps:$4 sm:$0xff]  }
 0x828   :  { %v1199_v59 = vpop.f32.mrb[32].mxu1 }
 0x829   :  { %v5550_v60 = vpack.i.bf16 %v1199_v59, %v730_v37  ;;  %v5305_v61 = vpop.f32.mrb[33].mxu1  ;;  %v4775_v37 = vld [vmem:[%s7238_s7] ss:$0 sm:$0xff] }
 0x82a   :  { %v1202_v62 = vpop.f32.mrb[34].mxu1 }
 0x82b   :  { %5551 = vrot.lane.b32.xlu1 %v5550_v60, %s6231_s15  ;;  %v5306_v63 = vpop.f32.mrb[35].mxu1  ;;  %v5634_v62 = vld [vmem:[#allocation10 + $0x44] ss:$16 sps:$4 sm:$0xff]  }
 0x82c   :  { %v5637_v63 = vld [vmem:[#allocation10 + $0x4c] ss:$16 sps:$4 sm:$0xff]  }
 0x835   :  { %v1311_v5 = vpop.f32.mrb[36].mxu1 }
 0x836   :  { %v5555_v6 = vpack.i.bf16 %v1311_v5, %v842_v41  ;;  %v5317_v8 = vpop.f32.mrb[37].mxu1  ;;  %v5643_v5 = vld [vmem:[#allocation10 + $0x6c] ss:$16 sps:$4 sm:$0xff]  }
 0x837   :  { %v1314_v9 = vpop.f32.mrb[38].mxu1  ;;  %v5641_v8 = vld [vmem:[#allocation10 + $0x68] ss:$16 sps:$4 sm:$0xff]  }
 0x838   :  { %5556 = vrot.lane.b32.xlu1 %v5555_v6, %s6217_s9  ;;  %v5318_v10 = vpop.f32.mrb[39].mxu1  ;;  %v5638_v6 = vld [vmem:[#allocation10 + $0x60] ss:$16 sps:$4 sm:$0xff]   ;;  %v5646_v9 = vld [vmem:[#allocation10 + $0x84] ss:$16 sps:$4 sm:$0xff]  }
 0x839   :  { %v5649_v10 = vld [vmem:[#allocation10 + $0x8c] ss:$16 sps:$4 sm:$0xff]  }
 0x83d   :  { %v1423_v11 = vpop.f32.mrb[40].mxu1 }
 0x83e   :  { %v5560_v12 = vpack.i.bf16 %v1423_v11, %v954_v45  ;;  %v5329_v14 = vpop.f32.mrb[41].mxu1  ;;  %v5620_v45 = vld [vmem:[#allocation10] ss:$16 sps:$4 sm:$0xff]  }
 0x83f   :  { %v1426_v16 = vpop.f32.mrb[42].mxu1  ;;  %1815 = vmatpush1.bf16.msra.mxu1 %v5620_v45  ;;  %v5644_v11 = vld [vmem:[#allocation10 + $0x80] ss:$16 sps:$4 sm:$0xff]   ;;  %v5652_v14 = vld [vmem:[#allocation10 + $0xa4] ss:$16 sps:$4 sm:$0xff]  }
 0x840   :  { %5561 = vrot.lane.b32.xlu1 %v5560_v12, %s6230_s26  ;;  %v5330_v17 = vpop.f32.mrb[43].mxu1  ;;  %v5647_v12 = vld [vmem:[#allocation10 + $0x88] ss:$16 sps:$4 sm:$0xff]   ;;  %v5655_v16 = vld [vmem:[#allocation10 + $0xac] ss:$16 sps:$4 sm:$0xff]  }
 0x841   :  { %v5650_v17 = vld [vmem:[#allocation10 + $0xa0] ss:$16 sps:$4 sm:$0xff]  }
 0x89d   :  { %v5552_v18 = vpop.permute.xlu1 %5551 }
 0x89e   :  { %v5554_v22 = vunpack.i.h.bf16 %v5552_v18  ;;  %v5553_v23 = vunpack.i.l.bf16 %v5552_v18  ;;  %v5653_v18 = vld [vmem:[#allocation10 + $0xa8] ss:$16 sps:$4 sm:$0xff]  }
 0x8a0   :  { %v1441_v26 = vsel %vm508_vm1, %v1084_v47, %v5554_v22  ;;  %v972_v27 = vsel %vm508_vm1, %v6606_v2, %v5553_v23  ;;  %v5628_v47 = vld [vmem:[#allocation10 + $0x24] ss:$16 sps:$4 sm:$0xff]   ;;  %v5661_v22 = vld [vmem:[#allocation10 + $0xcc] ss:$16 sps:$4 sm:$0xff]   ;;  %v5656_v23 = vld [vmem:[#allocation10 + $0xc0] ss:$16 sps:$4 sm:$0xff]  }
 0x8a1   :  { %1816 = vmatprep.subr.bf16.mxu1 %v5628_v47  ;;  %v5671_v47 = vld [vmem:[#allocation11 + $0x80] sm:$0xff]  }
 0x8a2   :  { %1817 = vmatpush1.bf16.msra.mxu1 %v5626_v49  ;;  %v5673_v49 = vld [vmem:[#allocation11 + $0xc8] sm:$0xff]  }
 0x8a3   :  { %1818 = vmatprep.subr.bf16.mxu1 %v5634_v62  ;;  %v5683_v62 = vld [vmem:[#allocation11 + $0x98] sm:$0xff]  }
 0x8a6   :  { %1819 = vmatpush1.bf16.msra.mxu1 %v5632_v0  ;;  %v5685_v0 = vld [vmem:[#allocation11 + $0xe0] sm:$0xff]  }
 0x8a7   :  { %1820 = vmatprep.subr.bf16.mxu1 %v5640_v3  ;;  %v5687_v3 = vld [vmem:[#allocation11 + $0xa0] sm:$0xff]  }
 0x8aa   :  { %v5557_v19 = vpop.permute.xlu1 %5556  ;;  %1821 = vmatpush1.bf16.msra.mxu1 %v5638_v6  ;;  %v5689_v6 = vld [vmem:[#allocation11 + $0xe8] sm:$0xff]  }
 0x8ab   :  { %v5559_v13 = vunpack.i.h.bf16 %v5557_v19  ;;  %v5558_v24 = vunpack.i.l.bf16 %v5557_v19  ;;  %1822 = vmatprep.subr.bf16.mxu1 %v5646_v9  ;;  %v5658_v19 = vld [vmem:[#allocation10 + $0xc4] ss:$16 sps:$4 sm:$0xff]   ;;  %v5691_v9 = vld [vmem:[#allocation11 + $0xa8] sm:$0xff]  }
 0x8ad   :  { %v1442_v31 = vsel %vm973_vm4, %v1441_v26, %v5559_v13  ;;  %v974_v33 = vsel %vm973_vm4, %v972_v27, %v5558_v24  ;;  %v5659_v13 = vld [vmem:[#allocation10 + $0xc8] ss:$16 sps:$4 sm:$0xff]   ;;  %v5664_v24 = vld [vmem:[#allocation10 + $0xe4] ss:$16 sps:$4 sm:$0xff]   ;;  %v5662_v26 = vld [vmem:[#allocation10 + $0xe0] ss:$16 sps:$4 sm:$0xff]  }
 0x8ae   :  { %1823 = vmatpush1.bf16.msra.mxu1 %v5644_v11  ;;  %v5665_v27 = vld [vmem:[#allocation10 + $0xe8] ss:$16 sps:$4 sm:$0xff]   ;;  %v5693_v11 = vld [vmem:[#allocation11 + $0xf0] sm:$0xff]  }
 0x8af   :  { %1824 = vmatprep.subr.bf16.mxu1 %v5652_v14  ;;  %v5695_v14 = vld [vmem:[#allocation11 + $0xb0] sm:$0xff]  }
 0x8b2   :  { %v5562_v25 = vpop.permute.xlu1 %5561  ;;  %1825 = vmatpush1.bf16.msra.mxu1 %v5650_v17  ;;  %v5697_v17 = vld [vmem:[#allocation11 + $0xf8] sm:$0xff]  }
 0x8b3   :  { %v5564_v28 = vunpack.i.h.bf16 %v5562_v25  ;;  %v5563_v29 = vunpack.i.l.bf16 %v5562_v25  ;;  %1826 = vmatprep.subr.bf16.mxu1 %v5658_v19  ;;  %v5667_v25 = vld [vmem:[#allocation10 + $0xec] ss:$16 sps:$4 sm:$0xff]  }
 0x8b4   :  { %v5699_v19 = vld [vmem:[#allocation11 + $0xb8] sm:$0xff]  }
 0x8b5   :  { %v1443_v34 = vsel %vm975_vm5, %v1442_v31, %v5564_v28  ;;  %v976_v35 = vsel %vm975_vm5, %v974_v33, %v5563_v29 }
 0x8b6   :  { %v1460_v36 = vpack.c.bf16 %v1443_v34, %v976_v35  ;;  %1827 = vmatpush1.bf16.msra.mxu1 %v5656_v23  ;;  %v1648_v23 = vsub.s32 3, %v6515_v54 }
 0x8b7   :  { %1828 = vmatprep.subr.bf16.mxu1 %v5664_v24 }
 0x8b8   :  { %5348 = vmatmul.mubr.bf16.vlgmr.msra.gmra.mrb[28].mxu0 %v1460_v36 }
 0x8b9   :  { %1889 = vmatprep.mubr.bf16.mxu0 %v6228_v30  ;;  %1858 = vmatpush1.bf16.msra.mxu0 %v5623_v20  ;;  %v5669_v20 = vld [vmem:[#allocation11 + $0xc0] sm:$0xff]  }
 0x8ba   :  { %1859 = vmatprep.subr.bf16.mxu0 %v5631_v48  ;;  %1829 = vmatpush1.bf16.msra.mxu1 %v5662_v26  ;;  %v5672_v48 = vld [vmem:[#allocation11 + $0x48] sm:$0xff]  }
 0x8bb   :  { %5059 = vmatprep.subr.bf16.mxu1 %v5668_v15 }
 0x8bd   :  { %1860 = vmatpush1.bf16.msra.mxu0 %v5629_v52  ;;  %v5674_v52 = vld [vmem:[#allocation11 + $0x8] sm:$0xff]  }
 0x8be   :  { %1861 = vmatprep.subr.bf16.mxu0 %v5637_v63  ;;  %v5684_v63 = vld [vmem:[#allocation11 + $0x60] sm:$0xff]  }
 0x8c1   :  { %1862 = vmatpush1.bf16.msra.mxu0 %v5635_v1  ;;  %v5686_v1 = vld [vmem:[#allocation11 + $0x20] sm:$0xff]  }
 0x8c2   :  { %1863 = vmatprep.subr.bf16.mxu0 %v5643_v5  ;;  %v5688_v5 = vld [vmem:[#allocation11 + $0x68] sm:$0xff]  }
 0x8c5   :  { %1864 = vmatpush1.bf16.msra.mxu0 %v5641_v8  ;;  %v5690_v8 = vld [vmem:[#allocation11 + $0x28] sm:$0xff]  }
 0x8c6   :  { %1865 = vmatprep.subr.bf16.mxu0 %v5649_v10  ;;  %v5692_v10 = vld [vmem:[#allocation11 + $0x70] sm:$0xff]  }
 0x8c9   :  { %1866 = vmatpush1.bf16.msra.mxu0 %v5647_v12  ;;  %v5694_v12 = vld [vmem:[#allocation11 + $0x30] sm:$0xff]  }
 0x8ca   :  { %1867 = vmatprep.subr.bf16.mxu0 %v5655_v16  ;;  %v5696_v16 = vld [vmem:[#allocation11 + $0x78] sm:$0xff]  }
 0x8cd   :  { %1868 = vmatpush1.bf16.msra.mxu0 %v5653_v18  ;;  %v5698_v18 = vld [vmem:[#allocation11 + $0x38] sm:$0xff]  }
 0x8ce   :  { %1869 = vmatprep.subr.bf16.mxu0 %v5661_v22  ;;  %v1632_v22 = vld [vmem:[%s7242_s11] sm:$0xf] }
 0x8cf   :  { %v1645_v24 = vrot.slane %v1632_v22, %v6527_v58  ;;  %v1649_v26 = vrot.slane %v1632_v22, %v1648_v23 }
 0x8d1   :  { %1870 = vmatpush1.bf16.msra.mxu0 %v5659_v13  ;;  %v1637_v13 = vrot.slane %v1632_v22, %v6524_v57 }
 0x8d2   :  { %1871 = vmatprep.subr.bf16.mxu0 %v5667_v25  ;;  %v1641_v25 = vrot.slane %v1632_v22, %v6518_v55 }
 0x8d5   :  { %1872 = vmatpush1.bf16.msra.mxu0 %v5665_v27 }
 0x8d6   :  { %5081 = vmatprep.subr.bf16.mxu0 %v5669_v20 }
 0x98b   :  { %v1550_v38 = vpop.f32.mrb[28].mxu0 }
 0x98c   :  { %v1551_v2 = vadd.f32 %v4775_v37, %v1550_v38  ;;  %v5349_v39 = vpop.f32.mrb[29].mxu0  ;;  %v4784_v38 = vld [vmem:[#allocation7] ss:$0 sm:$0xff] }
 0x98d   :  { %v1553_v40 = vpop.f32.mrb[30].mxu0 }
 0x98e   :  { %v1554_v41 = vadd.f32 %v4775_v37, %v1553_v40  ;;  %v5350_v42 = vpop.f32.mrb[31].mxu0  ;;  %v1557_v43 = vadd.f32 %v1551_v2, %v6505_v50 }
 0x990   :  { %1561 = vadd.xlane.f32.xlu1 %v1557_v43  ;;  %v1558_v44 = vadd.f32 %v1554_v41, %v6507_v51  ;;  %v4785_v41 = vld [vmem:[#allocation8] ss:$0 sm:$0xff] }
 0x992   :  { %1563 = vadd.xlane.f32.xlu0 %v1558_v44 }
 0xa1d   :  { %v1562_v50 = vpop.xlane.xlu1 %1561 }
 0xa1e   :  { %v1565_v53 = vmul.f32 0.0078125, %v1562_v50  ;;  %v5675_v50 = vld [vmem:[#allocation11 + $0x88] sm:$0xff]  }
 0xa1f   :  { %v1564_v51 = vpop.xlane.xlu0 %1563 }
 0xa20   :  { %v6748_v7 = vsub.f32 %v1557_v43, %v1565_v53  ;;  %v1566_v56 = vmul.f32 0.0078125, %v1564_v51  ;;  %v5676_v53 = vld [vmem:[#allocation11 + $0x50] sm:$0xff]  }
 0xa21   :  { %v5677_v51 = vld [vmem:[#allocation11 + $0xd0] sm:$0xff]  }
 0xa22   :  { %v6750_v59 = vsub.f32 %v1558_v44, %v1566_v56  ;;  %v1569_v60 = vmul.f32 %v6748_v7, %v6748_v7  ;;  %v5679_v56 = vld [vmem:[#allocation11 + $0x90] sm:$0xff]  }
 0xa24   :  { %1571 = vadd.xlane.f32.xlu0 %v1569_v60  ;;  %v1570_v61 = vmul.f32 %v6750_v59, %v6750_v59  ;;  %v5681_v60 = vld [vmem:[#allocation11 + $0xd8] sm:$0xff]  }
 0xa28   :  { %1573 = vadd.xlane.f32.xlu0 %v1570_v61  ;;  %v5682_v61 = vld [vmem:[#allocation11 + $0x18] sm:$0xff]  }
 0xab1   :  { %v1572_v28 = vpop.xlane.xlu0 %1571 }
 0xab2   :  { %v1575_v29 = vmul.f32 0.0078125, %v1572_v28 }
 0xab4   :  { %v1577_v31 = vadd.f32 1e-12, %v1575_v29 }
 0xab5   :  { %v1574_v33 = vpop.xlane.xlu0 %1573 }
 0xab6   :  { %5872 = vrsqrt.f32 %v1577_v31  ;;  %v1576_v34 = vmul.f32 0.0078125, %v1574_v33 }
 0xab8   :  { %v1578_v35 = vadd.f32 1e-12, %v1576_v34 }
 0xaba   :  { %5874 = vrsqrt.f32 %v1578_v35 }
 0xac0   :  { %v5873_v36 = vpop.eup %5872 }
 0xac1   :  { %v1581_v37 = vmul.f32 %v5873_v36, %v6748_v7  ;;  %v5678_v7 = vld [vmem:[#allocation11 + $0x10] sm:$0xff]  }
 0xac3   :  { %v1589_v40 = vmul.f32 %v4784_v38, %v1581_v37 }
 0xac4   :  { %v5875_v2 = vpop.eup %5874 }
 0xac5   :  { %v1582_v39 = vmul.f32 %v5875_v2, %v6750_v59  ;;  %v6758_v43 = vadd.f32 %v4785_v41, %v1589_v40  ;;  %v5680_v59 = vld [vmem:[#allocation11 + $0x58] sm:$0xff]  }
 0xac7   :  { %v1590_v42 = vmul.f32 %v4784_v38, %v1582_v39 }
 0xac9   :  { %v6760_v44 = vadd.f32 %v4785_v41, %v1590_v42 }
 0xacb   :  { %v1631_v45 = vpack.c.bf16 %v6760_v44, %v6758_v43 }
 0xacd   :  { %1847 = vmatmul.mubr.bf16.vlgmr.msra.gmra.mrb[44].mxu1 %v1631_v45  ;;  %1890 = vmatmul.mubr.bf16.vlgmr.msra.gmra.mrb[32].mxu0 %v1631_v45 }
 0xace   :  { %5060 = vmatpush3.bf16.msra.mxu1 %v5670_v46  ;;  %5082 = vmatpush3.bf16.msra.mxu0 %v5671_v47 }
 0xacf   :  { %5061 = vmatprep.subr.bf16.mxu1 %v5672_v48  ;;  %5083 = vmatprep.subr.bf16.mxu0 %v5673_v49 }
 0xad2   :  { %5062 = vmatpush3.bf16.msra.mxu1 %v5674_v52  ;;  %5084 = vmatpush3.bf16.msra.mxu0 %v5675_v50 }
 0xad3   :  { %5063 = vmatprep.subr.bf16.mxu1 %v5676_v53  ;;  %5085 = vmatprep.subr.bf16.mxu0 %v5677_v51 }
 0xad6   :  { %5064 = vmatpush3.bf16.msra.mxu1 %v5678_v7  ;;  %5086 = vmatpush3.bf16.msra.mxu0 %v5679_v56 }
 0xad7   :  { %5065 = vmatprep.subr.bf16.mxu1 %v5680_v59  ;;  %5087 = vmatprep.subr.bf16.mxu0 %v5681_v60 }
 0xada   :  { %5066 = vmatpush3.bf16.msra.mxu1 %v5682_v61  ;;  %5088 = vmatpush3.bf16.msra.mxu0 %v5683_v62 }
 0xadb   :  { %5067 = vmatprep.subr.bf16.mxu1 %v5684_v63  ;;  %5089 = vmatprep.subr.bf16.mxu0 %v5685_v0 }
 0xade   :  { %5068 = vmatpush3.bf16.msra.mxu1 %v5686_v1  ;;  %5090 = vmatpush3.bf16.msra.mxu0 %v5687_v3 }
 0xadf   :  { %5069 = vmatprep.subr.bf16.mxu1 %v5688_v5  ;;  %5091 = vmatprep.subr.bf16.mxu0 %v5689_v6 }
 0xae2   :  { %5070 = vmatpush3.bf16.msra.mxu1 %v5690_v8  ;;  %5092 = vmatpush3.bf16.msra.mxu0 %v5691_v9 }
 0xae3   :  { %5071 = vmatprep.subr.bf16.mxu1 %v5692_v10  ;;  %5093 = vmatprep.subr.bf16.mxu0 %v5693_v11 }
 0xae6   :  { %5072 = vmatpush3.bf16.msra.mxu1 %v5694_v12  ;;  %5094 = vmatpush3.bf16.msra.mxu0 %v5695_v14 }
 0xae7   :  { %5073 = vmatprep.subr.bf16.mxu1 %v5696_v16  ;;  %5095 = vmatprep.subr.bf16.mxu0 %v5697_v17 }
 0xaea   :  { %5074 = vmatpush3.bf16.msra.mxu1 %v5698_v18  ;;  %5096 = vmatpush3.bf16.msra.mxu0 %v5699_v19 }
 0xaeb   :  { %5351 = vmatprep.subr.bf16.mxu0 %v6227_v4 }
 0xba0   :  { %v1848_v27 = vpop.f32.mrb[44].mxu1  ;;  %v1891_v28 = vpop.f32.mrb[32].mxu0 }
 0xba1   :  { %v6774_v29 = vadd.f32 %v1848_v27, %v1637_v13  ;;  %v6776_v31 = vadd.f32 %v1891_v28, %v1645_v24  ;;  %v1850_v33 = vpop.f32.mrb[45].mxu1  ;;  %v1893_v34 = vpop.f32.mrb[33].mxu0 }
 0xba2   :  { %v6778_v35 = vadd.f32 %v1850_v33, %v1641_v25  ;;  %v6780_v36 = vadd.f32 %v1893_v34, %v1649_v26  ;;  %v1852_v37 = vpop.f32.mrb[46].mxu1  ;;  %v1895_v38 = vpop.f32.mrb[34].mxu0 }
 0xba3   :  { %v1900_v2 = vmul.f32 %v6774_v29, %v6774_v29  ;;  %v1902_v39 = vmul.f32 %v6776_v31, %v6776_v31  ;;  %v6786_v40 = vadd.f32 %v1852_v37, %v1637_v13  ;;  %v6788_v41 = vadd.f32 %v1895_v38, %v1645_v24  ;;  %v1854_v42 = vpop.f32.mrb[47].mxu1  ;;  %v1897_v45 = vpop.f32.mrb[35].mxu0 }
 0xba4   :  { %v1901_v15 = vmul.f32 %v6778_v35, %v6778_v35  ;;  %v1903_v20 = vmul.f32 %v6780_v36, %v6780_v36  ;;  %v6794_v46 = vadd.f32 %v1854_v42, %v1641_v25  ;;  %v6796_v47 = vadd.f32 %v1897_v45, %v1649_v26 }
 0xba5   :  { %v1908_v48 = vmul.f32 %v1900_v2, %v6774_v29  ;;  %v1910_v49 = vmul.f32 %v1902_v39, %v6776_v31  ;;  %v1904_v52 = vmul.f32 %v6786_v40, %v6786_v40  ;;  %v1906_v50 = vmul.f32 %v6788_v41, %v6788_v41 }
 0xba6   :  { %v1909_v53 = vmul.f32 %v1901_v15, %v6778_v35  ;;  %v1911_v51 = vmul.f32 %v1903_v20, %v6780_v36  ;;  %v1905_v7 = vmul.f32 %v6794_v46, %v6794_v46  ;;  %v1907_v56 = vmul.f32 %v6796_v47, %v6796_v47 }
 0xba7   :  { %v1916_v59 = vmul.f32 0.044715, %v1908_v48  ;;  %v1918_v60 = vmul.f32 0.044715, %v1910_v49  ;;  %v1912_v61 = vmul.f32 %v1904_v52, %v6786_v40  ;;  %v1914_v62 = vmul.f32 %v1906_v50, %v6788_v41 }
 0xba8   :  { %v1917_v63 = vmul.f32 0.044715, %v1909_v53  ;;  %v1919_v0 = vmul.f32 0.044715, %v1911_v51  ;;  %v1913_v1 = vmul.f32 %v1905_v7, %v6794_v46  ;;  %v1915_v3 = vmul.f32 %v1907_v56, %v6796_v47 }
 0xba9   :  { %v1924_v5 = vadd.f32 %v1916_v59, %v6774_v29  ;;  %v1926_v6 = vadd.f32 %v1918_v60, %v6776_v31  ;;  %v1920_v8 = vmul.f32 0.044715, %v1912_v61  ;;  %v1922_v9 = vmul.f32 0.044715, %v1914_v62 }
 0xbaa   :  { %v1925_v10 = vadd.f32 %v1917_v63, %v6778_v35  ;;  %v1927_v11 = vadd.f32 %v1919_v0, %v6780_v36  ;;  %v1921_v12 = vmul.f32 0.044715, %v1913_v1  ;;  %v1923_v14 = vmul.f32 0.044715, %v1915_v3 }
 0xbab   :  { %v1932_v16 = vmul.f32 0.7978846, %v1924_v5  ;;  %v1934_v17 = vmul.f32 0.7978846, %v1926_v6  ;;  %v1928_v18 = vadd.f32 %v1920_v8, %v6786_v40  ;;  %v1930_v19 = vadd.f32 %v1922_v9, %v6788_v41 }
 0xbac   :  { %v1933_v22 = vmul.f32 0.7978846, %v1925_v10  ;;  %v1935_v13 = vmul.f32 0.7978846, %v1927_v11  ;;  %v1929_v24 = vadd.f32 %v1921_v12, %v6794_v46  ;;  %v1931_v25 = vadd.f32 %v1923_v14, %v6796_v47 }
 0xbad   :  { %5876 = vtanh.f32 %v1932_v16  ;;  %v1936_v26 = vmul.f32 0.7978846, %v1928_v18  ;;  %v1938_v27 = vmul.f32 0.7978846, %v1930_v19 }
 0xbae   :  { %5878 = vtanh.f32 %v1934_v17  ;;  %v1937_v28 = vmul.f32 0.7978846, %v1929_v24  ;;  %v1939_v33 = vmul.f32 0.7978846, %v1931_v25 }
 0xbaf   :  { %5880 = vtanh.f32 %v1933_v22 }
 0xbb0   :  { %5882 = vtanh.f32 %v1935_v13 }
 0xbb1   :  { %5884 = vtanh.f32 %v1936_v26 }
 0xbb2   :  { %5886 = vtanh.f32 %v1938_v27 }
 0xbb3   :  { %5888 = vtanh.f32 %v1937_v28 }
 0xbb4   :  { %5890 = vtanh.f32 %v1939_v33 }
 0xbb7   :  { %v5877_v34 = vpop.eup %5876 }
 0xbb8   :  { %v5879_v37 = vpop.eup %5878  ;;  %v1948_v38 = vadd.f32 1.0, %v5877_v34 }
 0xbb9   :  { %v5881_v2 = vpop.eup %5880  ;;  %v1950_v39 = vadd.f32 1.0, %v5879_v37 }
 0xbba   :  { %v5883_v42 = vpop.eup %5882  ;;  %v1949_v45 = vadd.f32 1.0, %v5881_v2  ;;  %v1956_v49 = vmul.f32 0.5, %v1948_v38  ;;  %v5700_v38 = vld [vmem:[#allocation5 + $0xc0] ss:$12 sps:$4 sm:$0xff]   ;;  %v5702_v2 = vld [vmem:[#allocation5 + $0xc4] ss:$12 sps:$4 sm:$0xff]  }
 0xbbb   :  { %v5885_v15 = vpop.eup %5884  ;;  %v1951_v20 = vadd.f32 1.0, %v5883_v42  ;;  %v1958_v53 = vmul.f32 0.5, %v1950_v39  ;;  %v5703_v39 = vld [vmem:[#allocation5 + $0xc8] ss:$12 sps:$4 sm:$0xff]   ;;  %2543 = vmatprep.subr.bf16.mxu1 %v5702_v2 }
 0xbbc   :  { %v5887_v48 = vpop.eup %5886  ;;  %v1952_v52 = vadd.f32 1.0, %v5885_v15  ;;  %v1957_v60 = vmul.f32 0.5, %v1949_v45  ;;  %v1964_v0 = vmul.f32 %v1956_v49, %v6774_v29  ;;  %v5706_v42 = vld [vmem:[#allocation5 + $0xdc] ss:$12 sps:$4 sm:$0xff]   ;;  %v5707_v45 = vld [vmem:[#allocation5 + $0xe0] ss:$12 sps:$4 sm:$0xff]  }
 0xbbd   :  { %v5889_v50 = vpop.eup %5888  ;;  %v1954_v51 = vadd.f32 1.0, %v5887_v48  ;;  %v1959_v63 = vmul.f32 0.5, %v1951_v20  ;;  %v1966_v5 = vmul.f32 %v1958_v53, %v6776_v31  ;;  %v5704_v15 = vld [vmem:[#allocation5 + $0xd8] ss:$12 sps:$4 sm:$0xff]  }
 0xbbe   :  { %v5891_v7 = vpop.eup %5890  ;;  %v1960_v56 = vmul.f32 0.5, %v1952_v52  ;;  %v1953_v59 = vadd.f32 1.0, %v5889_v50  ;;  %v1965_v9 = vmul.f32 %v1957_v60, %v6778_v35  ;;  %v5712_v60 = vld [vmem:[#allocation5 + $0x108] ss:$12 sps:$4 sm:$0xff]  }
 0xbbf   :  { %v1962_v61 = vmul.f32 0.5, %v1954_v51  ;;  %v1955_v62 = vadd.f32 1.0, %v5891_v7  ;;  %v1967_v12 = vmul.f32 %v1959_v63, %v6780_v36  ;;  %v4818_v36 = vld [vmem:[%s7244_s13] ss:$0 sm:$0xff]  ;;  %v5710_v51 = vld [vmem:[#allocation5 + $0xf4] ss:$12 sps:$4 sm:$0xff]  }
 0xbc0   :  { %v1968_v1 = vmul.f32 %v1960_v56, %v6786_v40  ;;  %v1961_v3 = vmul.f32 0.5, %v1953_v59  ;;  %v5708_v7 = vld [vmem:[#allocation5 + $0xf0] ss:$12 sps:$4 sm:$0xff]   ;;  %v5711_v56 = vld [vmem:[#allocation5 + $0xf8] ss:$12 sps:$4 sm:$0xff]  }
 0xbc1   :  { %v1970_v6 = vmul.f32 %v1962_v61, %v6788_v41  ;;  %v1963_v8 = vmul.f32 0.5, %v1955_v62  ;;  %v5714_v59 = vld [vmem:[#allocation5 + $0x10c] ss:$12 sps:$4 sm:$0xff]   ;;  %v5715_v61 = vld [vmem:[#allocation5 + $0x110] ss:$12 sps:$4 sm:$0xff]  }
 0xbc2   :  { %v1969_v10 = vmul.f32 %v1961_v3, %v6794_v46  ;;  %v2036_v11 = vpack.c.bf16 %v1968_v1, %v1964_v0  ;;  %v5718_v62 = vld [vmem:[#allocation5 + $0x124] ss:$12 sps:$4 sm:$0xff]   ;;  %v5716_v63 = vld [vmem:[#allocation5 + $0x120] ss:$12 sps:$4 sm:$0xff]   ;;  %v5719_v0 = vld [vmem:[#allocation5 + $0x128] ss:$12 sps:$4 sm:$0xff]  }
 0xbc3   :  { %v1971_v14 = vmul.f32 %v1963_v8, %v6796_v47  ;;  %v2038_v16 = vpack.c.bf16 %v1970_v6, %v1966_v5  ;;  %v5722_v1 = vld [vmem:[#allocation5 + $0x13c] ss:$12 sps:$4 sm:$0xff]   ;;  %v5720_v3 = vld [vmem:[#allocation5 + $0x138] ss:$12 sps:$4 sm:$0xff]   ;;  %v5723_v5 = vld [vmem:[#allocation5 + $0x140] ss:$12 sps:$4 sm:$0xff]  }
 0xbc4   :  { %v2037_v17 = vpack.c.bf16 %v1969_v10, %v1965_v9  ;;  %v5726_v6 = vld [vmem:[#allocation5 + $0x154] ss:$12 sps:$4 sm:$0xff]   ;;  %v5724_v8 = vld [vmem:[#allocation5 + $0x150] ss:$12 sps:$4 sm:$0xff]   ;;  %v5727_v9 = vld [vmem:[#allocation5 + $0x158] ss:$12 sps:$4 sm:$0xff]  }
 0xbc5   :  { %v2039_v29 = vpack.c.bf16 %v1971_v14, %v1967_v12  ;;  %v5730_v10 = vld [vmem:[#allocation5 + $0x16c] ss:$12 sps:$4 sm:$0xff]   ;;  %v5731_v12 = vld [vmem:[#allocation5 + $0x170] ss:$12 sps:$4 sm:$0xff]  }
 0xbc6   :  { %2271 = vmatprep.mubr.bf16.mxu1 %v2037_v17 }
 0xbc7   :  { %2312 = vmatprep.mubr.bf16.mxu0 %v2039_v29  ;;  %2272 = vmatmul.mubr.bf16.vlgmr.msra.gmra.mrb[48].mxu1 %v2036_v11  ;;  %v5728_v11 = vld [vmem:[#allocation5 + $0x168] ss:$12 sps:$4 sm:$0xff]  }
 0xbc8   :  { %2313 = vmatmul.mubr.bf16.vlgmr.msra.gmra.mrb[36].mxu0 %v2038_v16  ;;  %2575 = vmatprep.mubr.bf16.mxu1 %v6228_v30 }
 0xbc9   :  { %5367 = vmatprep.mubr.msk.bf16.mxu0 %vm6229_vm0, %v6227_v4  ;;  %5352 = vmatpush3.bf16.msra.mxu0 %v5703_v39 }
 0xbca   :  { %2544 = vmatpush1.bf16.msra.mxu1 %v5700_v38  ;;  %5353 = vmatprep.subr.bf16.mxu0 %v6227_v4 }
 0xbcb   :  { %2545 = vmatprep.subr.bf16.mxu1 %v5706_v42 }
 0xbcd   :  { %5354 = vmatpush3.bf16.msra.mxu0 %v5707_v45 }
 0xbce   :  { %2546 = vmatpush1.bf16.msra.mxu1 %v5704_v15  ;;  %5355 = vmatprep.subr.bf16.mxu0 %v6227_v4 }
 0xbcf   :  { %2547 = vmatprep.subr.bf16.mxu1 %v5710_v51 }
 0xbd1   :  { %5356 = vmatpush3.bf16.msra.mxu0 %v5711_v56 }
 0xbd2   :  { %2548 = vmatpush1.bf16.msra.mxu1 %v5708_v7  ;;  %5357 = vmatprep.subr.bf16.mxu0 %v6227_v4 }
 0xbd3   :  { %2549 = vmatprep.subr.bf16.mxu1 %v5714_v59 }
 0xbd5   :  { %5358 = vmatpush3.bf16.msra.mxu0 %v5715_v61 }
 0xbd6   :  { %2550 = vmatpush1.bf16.msra.mxu1 %v5712_v60  ;;  %5359 = vmatprep.subr.bf16.mxu0 %v6227_v4 }
 0xbd7   :  { %2551 = vmatprep.subr.bf16.mxu1 %v5718_v62 }
 0xbd9   :  { %5360 = vmatpush3.bf16.msra.mxu0 %v5719_v0 }
 0xbda   :  { %2552 = vmatpush1.bf16.msra.mxu1 %v5716_v63  ;;  %5361 = vmatprep.subr.bf16.mxu0 %v6227_v4 }
 0xbdb   :  { %2553 = vmatprep.subr.bf16.mxu1 %v5722_v1 }
 0xbdd   :  { %5362 = vmatpush3.bf16.msra.mxu0 %v5723_v5 }
 0xbde   :  { %2554 = vmatpush1.bf16.msra.mxu1 %v5720_v3  ;;  %5363 = vmatprep.subr.bf16.mxu0 %v6227_v4 }
 0xbdf   :  { %2555 = vmatprep.subr.bf16.mxu1 %v5726_v6 }
 0xbe1   :  { %5364 = vmatpush3.bf16.msra.mxu0 %v5727_v9 }
 0xbe2   :  { %2556 = vmatpush1.bf16.msra.mxu1 %v5724_v8  ;;  %5365 = vmatprep.subr.bf16.mxu0 %v6227_v4 }
 0xbe3   :  { %2557 = vmatprep.subr.bf16.mxu1 %v5730_v10 }
 0xbe5   :  { %5366 = vmatpush3.bf16.msra.mxu0 %v5731_v12 }
 0xbe6   :  { %2558 = vmatpush1.bf16.msra.mxu1 %v5728_v11  ;;  %5395 = vmatprep.subr.bf16.mxu0 %v6227_v4 }
 0xbe7   :  { %5371 = vmatprep.subr.bf16.mxu1 %v6227_v4 }
 0xc9a   :  { %v5075_v31 = vpop.f32.mrb[48].mxu1 }
 0xc9b   :  { %v5097_v35 = vpop.f32.mrb[36].mxu0  ;;  %v5076_v40 = vpop.f32.mrb[49].mxu1 }
 0xc9c   :  { %v5077_v41 = vadd.f32 %v5076_v40, %v5075_v31  ;;  %v5098_v46 = vpop.f32.mrb[37].mxu0  ;;  %v5078_v47 = vpop.f32.mrb[50].mxu1  ;;  %v4851_v40 = vld [vmem:[#allocation13] ss:$0 sm:$0xff] }
 0xc9d   :  { %v5099_v18 = vadd.f32 %v5098_v46, %v5097_v35  ;;  %v5100_v19 = vpop.f32.mrb[38].mxu0  ;;  %v5079_v22 = vpop.f32.mrb[51].mxu1 }
 0xc9e   :  { %v2274_v13 = vadd.f32 %v5077_v41, %v4818_v36  ;;  %v5080_v24 = vadd.f32 %v5079_v22, %v5078_v47  ;;  %v5101_v25 = vpop.f32.mrb[39].mxu0 }
 0xc9f   :  { %v5102_v26 = vadd.f32 %v5101_v25, %v5100_v19  ;;  %v4852_v19 = vld [vmem:[#allocation14] ss:$0 sm:$0xff] }
 0xca0   :  { %v2315_v27 = vadd.f32 %v5099_v18, %v2274_v13  ;;  %v2277_v28 = vadd.f32 %v5080_v24, %v4818_v36 }
 0xca2   :  { %v2318_v33 = vadd.f32 %v5102_v26, %v2277_v28  ;;  %v2321_v34 = vadd.f32 %v2315_v27, %v6758_v43  ;;  %v4853_v26 = vld [vmem:[%s7236_s5 + $0x3] sm:$0x7] }
 0xca3   :  { %v2407_v27 = vrot.slane %v4853_v26, %v6518_v55 }
 0xca4   :  { %2325 = vadd.xlane.f32.xlu1 %v2321_v34  ;;  %v2322_v37 = vadd.f32 %v2318_v33, %v6760_v44 }
 0xca6   :  { %2327 = vadd.xlane.f32.xlu0 %v2322_v37 }
 0xd31   :  { %v2326_v43 = vpop.xlane.xlu1 %2325 }
 0xd32   :  { %v2329_v20 = vmul.f32 0.0078125, %v2326_v43 }
 0xd33   :  { %v2328_v44 = vpop.xlane.xlu0 %2327 }
 0xd34   :  { %v2331_v48 = vsub.f32 %v2321_v34, %v2329_v20  ;;  %v2330_v49 = vmul.f32 0.0078125, %v2328_v44  ;;  %v2403_v34 = vrot.slane %v4853_v26, %v6524_v57 }
 0xd36   :  { %v2332_v52 = vsub.f32 %v2322_v37, %v2330_v49  ;;  %v2333_v50 = vmul.f32 %v2331_v48, %v2331_v48  ;;  %v2411_v37 = vrot.slane %v4853_v26, %v6527_v58 }
 0xd38   :  { %2335 = vadd.xlane.f32.xlu1 %v2333_v50  ;;  %v2334_v53 = vmul.f32 %v2332_v52, %v2332_v52 }
 0xd3a   :  { %2337 = vadd.xlane.f32.xlu0 %v2334_v53 }
 0xdc5   :  { %v2336_v14 = vpop.xlane.xlu1 %2335 }
 0xdc6   :  { %v2339_v16 = vmul.f32 0.0078125, %v2336_v14 }
 0xdc7   :  { %v2338_v17 = vpop.xlane.xlu0 %2337 }
 0xdc8   :  { %v2341_v29 = vadd.f32 1e-12, %v2339_v16  ;;  %v2340_v31 = vmul.f32 0.0078125, %v2338_v17 }
 0xdca   :  { %5892 = vrsqrt.f32 %v2341_v29  ;;  %v2342_v35 = vadd.f32 1e-12, %v2340_v31 }
 0xdcc   :  { %5894 = vrsqrt.f32 %v2342_v35 }
 0xdd4   :  { %v5893_v36 = vpop.eup %5892 }
 0xdd5   :  { %v2345_v41 = vmul.f32 %v5893_v36, %v2331_v48 }
 0xdd6   :  { %v5895_v46 = vpop.eup %5894 }
 0xdd7   :  { %v2346_v47 = vmul.f32 %v5895_v46, %v2332_v52  ;;  %v2353_v18 = vmul.f32 %v4851_v40, %v2345_v41 }
 0xdd9   :  { %v2354_v22 = vmul.f32 %v4851_v40, %v2346_v47  ;;  %v6847_v13 = vadd.f32 %v4852_v19, %v2353_v18 }
 0xddb   :  { %v6849_v24 = vadd.f32 %v4852_v19, %v2354_v22 }
 0xddd   :  { %v2396_v25 = vpack.c.bf16 %v6849_v24, %v6847_v13 }
 0xddf   :  { %2576 = vmatmul.mubr.bf16.vlgmr.msra.gmra.mrb[52].mxu1 %v2396_v25  ;;  %5368 = vmatmul.mubr.bf16.vlgmr.msra.gmra.mrb[40].mxu0 %v2396_v25 }
 0xde0   :  { %5373 = vmatprep.mubr.msk.bf16.mxu1 %vm6229_vm0, %v6227_v4  ;;  %5397 = vmatprep.mubr.msk.bf16.mxu0 %vm6229_vm0, %v6227_v4 }
 0xeb2   :  { %v2577_v28 = vpop.f32.mrb[52].mxu1  ;;  %v2620_v33 = vpop.f32.mrb[40].mxu0 }
 0xeb3   :  { %v2579_v38 = vpop.f32.mrb[53].mxu1  ;;  %v5369_v2 = vpop.f32.mrb[41].mxu0  ;;  %v2621_v52 = vadd.f32 %v2620_v33, %v2411_v37  ;;  %v2578_v53 = vadd.f32 %v2577_v28, %v2403_v34 }
 0xeb4   :  { %v2580_v39 = vadd.f32 %v2579_v38, %v2407_v27  ;;  %v2581_v42 = vpop.f32.mrb[54].mxu1  ;;  %v2623_v45 = vpop.f32.mrb[42].mxu0 }
 0xeb5   :  { %v2582_v15 = vadd.f32 %v2581_v42, %v2403_v34  ;;  %v6863_v43 = vadd.f32 %v2623_v45, %v2411_v37  ;;  %v2583_v20 = vpop.f32.mrb[55].mxu1  ;;  %v5370_v44 = vpop.f32.mrb[43].mxu0  ;;  %v6867_v51 = vpack.c.bf16 %v2621_v52, %v2621_v52  ;;  %v2627_v7 = vpack.c.bf16 %v2578_v53, %v2578_v53 }
 0xeb6   :  { %v2628_v48 = vpack.c.bf16 %v2580_v39, %v2580_v39  ;;  %v2584_v49 = vadd.f32 %v2583_v20, %v2407_v27 }
 0xeb7   :  { %v2694_v56 = vsel %vm577_vm2, %v6867_v51, 0  ;;  %v3090_v31 = vpack.c.bf16 %v2582_v15, %v2582_v15 }
 0xeb8   :  { %v2634_v50 = vsel %vm508_vm1, %v2628_v48, 0  ;;  %v3091_v3 = vpack.c.bf16 %v2584_v49, %v2584_v49 }
 0xeb9   :  { %5372 = vmatpush3.bf16.xpose.msra.mxu1 %v2634_v50 }
 0xeba   :  { %5377 = vmatprep.subr.bf16.mxu1 %v6227_v4  ;;  %v3097_v41 = vsel %vm508_vm1, %v3091_v3, 0 }
 0xec0   :  { %5374 = vmatmul.mubr.msk.bf16.vlgmr.msra.gmra.mrb[56].mxu1 %vm508_vm1, %v2627_v7 }
 0xec1   :  { %5378 = vmatpush3.bf16.msra.mxu1 %v2694_v56  ;;  %5379 = vmatprep.mubr.msk.bf16.mxu1 %vm6229_vm0, %v6227_v4 }
 0xec2   :  { %5383 = vmatprep.subr.bf16.mxu1 %v6227_v4 }
 0xf93   :  { %v2670_v59 = vpop.f32.mrb[56].mxu1 }
 0xf94   :  { %v2676_v60 = vmul.f32 0.17677669, %v2670_v59  ;;  %v5375_v61 = vpop.f32.mrb[57].mxu1 }
 0xf95   :  { %v2673_v62 = vpop.f32.mrb[58].mxu1 }
 0xf96   :  { %v5376_v63 = vpop.f32.mrb[59].mxu1  ;;  %v2677_v0 = vadd.f32 %v2676_v60, %v6551_v21 }
 0xf98   :  { %v2678_v1 = vsel %vm561_vm3, %v2677_v0, -inf }
 0xf99   :  { %2679 = vmax.xlane.f32.xlu1 %v2678_v1 }
 0xfaa   :  { %2740 = vrot.lane.b32.xlu1 %v2628_v48, %s6230_s26 }
 0xfae   :  { %2853 = vrot.lane.b32.xlu1 %v2628_v48, %s6217_s9 }
 0xfb2   :  { %2851 = vrot.lane.b32.xlu1 %v2627_v7, %s6217_s9 }
 0xfb6   :  { %2965 = vrot.lane.b32.xlu1 %v2628_v48, %s6231_s15 }
 0xfba   :  { %3203 = vrot.lane.b32.xlu1 %v3091_v3, %s6230_s26 }
 0xfbe   :  { %3316 = vrot.lane.b32.xlu1 %v3091_v3, %s6217_s9 }
 0xfc2   :  { %3428 = vrot.lane.b32.xlu1 %v3091_v3, %s6231_s15 }
0x1026   :  { %v2680_v5 = vpop.xlane.xlu1 %2679 }
0x1027   :  { %v2681_v6 = vsub.f32 %v2677_v0, %v2680_v5 }
0x1029   :  { %v2682_v8 = vmul.f32 1.442695, %v2681_v6 }
0x102a   :  { %v2741_v9 = vpop.permute.xlu1 %2740 }
0x102b   :  { %5896 = vpow2.f32 %v2682_v8  ;;  %v2746_v22 = vsel %vm508_vm1, %v2741_v9, 0 }
0x102e   :  { %v2854_v10 = vpop.permute.xlu1 %2853 }
0x102f   :  { %v2859_v11 = vsel %vm508_vm1, %v2854_v10, 0 }
0x1030   :  { %5396 = vmatpush3.bf16.xpose.msra.mxu0 %v2859_v11 }
0x1031   :  { %5407 = vmatprep.subr.bf16.mxu0 %v6227_v4 }
0x1032   :  { %v2852_v12 = vpop.permute.xlu1 %2851 }
0x1035   :  { %v5897_v14 = vpop.eup %5896 }
0x1036   :  { %v2966_v16 = vpop.permute.xlu1 %2965  ;;  %v2684_v17 = vsel %vm561_vm3, %v5897_v14, 0.0 }
0x1037   :  { %v2971_v29 = vsel %vm508_vm1, %v2966_v16, 0  ;;  %2685 = vadd.xlane.f32.xlu0 %v2684_v17  ;;  %5398 = vmatmul.mubr.msk.bf16.vlgmr.msra.gmra.mrb[44].mxu0 %vm508_vm1, %v2852_v12 }
0x1038   :  { %5408 = vmatpush3.bf16.xpose.msra.mxu0 %v2971_v29  ;;  %5409 = vmatprep.mubr.msk.bf16.mxu0 %vm6229_vm0, %v6227_v4 }
0x1039   :  { %5419 = vmatprep.subr.bf16.mxu0 %v6227_v4 }
0x103a   :  { %v3204_v18 = vpop.permute.xlu1 %3203 }
0x103b   :  { %v3209_v25 = vsel %vm508_vm1, %v3204_v18, 0 }
0x103e   :  { %v3317_v26 = vpop.permute.xlu1 %3316 }
0x103f   :  { %v3322_v28 = vsel %vm508_vm1, %v3317_v26, 0 }
0x1042   :  { %v3429_v33 = vpop.permute.xlu1 %3428 }
0x1043   :  { %v3434_v37 = vsel %vm508_vm1, %v3429_v33, 0 }
0x104d   :  { %2737 = vrot.lane.b32.xlu0 %v2627_v7, %s6230_s26 }
0x1051   :  { %2963 = vrot.lane.b32.xlu0 %v2627_v7, %s6231_s15 }
0x1055   :  { %3200 = vrot.lane.b32.xlu0 %v3090_v31, %s6230_s26 }
0x1059   :  { %3314 = vrot.lane.b32.xlu0 %v3090_v31, %s6217_s9 }
0x105d   :  { %3426 = vrot.lane.b32.xlu0 %v3090_v31, %s6231_s15 }
0x10c4   :  { %v2686_v35 = vpop.xlane.xlu0 %2685 }
0x10c5   :  { %5898 = vrcp.f32 %v2686_v35 }
0x10c8   :  { %v2738_v36 = vpop.permute.xlu0 %2737 }
0x10cc   :  { %v2964_v40 = vpop.permute.xlu0 %2963 }
0x10cd   :  { %5410 = vmatmul.mubr.msk.bf16.vlgmr.msra.gmra.mrb[48].mxu0 %vm508_vm1, %v2964_v40 }
0x10ce   :  { %5420 = vmatpush3.bf16.xpose.msra.mxu0 %v3097_v41  ;;  %5421 = vmatprep.mubr.msk.bf16.mxu0 %vm6229_vm0, %v6227_v4 }
0x10cf   :  { %v5899_v46 = vpop.eup %5898  ;;  %5431 = vmatprep.subr.bf16.mxu0 %v6227_v4 }
0x10d0   :  { %v2688_v47 = vmul.f32 %v5899_v46, %v5897_v14  ;;  %v3201_v27 = vpop.permute.xlu0 %3200 }
0x10d2   :  { %v2689_v19 = vpack.c.bf16 %v2688_v47, %v2688_v47 }
0x10d4   :  { %5380 = vmatmul.mubr.msk.bf16.vlgmr.msra.gmra.mrb[60].mxu1 %vm561_vm3, %v2689_v19  ;;  %v3315_v34 = vpop.permute.xlu0 %3314 }
0x10d5   :  { %5384 = vmatpush3.bf16.xpose.msra.mxu1 %v2746_v22  ;;  %5422 = vmatmul.mubr.msk.bf16.vlgmr.msra.gmra.mrb[52].mxu0 %vm508_vm1, %v3090_v31 }
0x10d6   :  { %5432 = vmatpush3.bf16.xpose.msra.mxu0 %v3209_v25  ;;  %5385 = vmatprep.mubr.msk.bf16.mxu1 %vm6229_vm0, %v6227_v4 }
0x10d7   :  { %5433 = vmatprep.mubr.msk.bf16.mxu0 %vm6229_vm0, %v6227_v4  ;;  %5443 = vmatprep.subr.bf16.mxu0 %v6227_v4 }
0x10d8   :  { %5389 = vmatprep.subr.bf16.mxu1 %v6227_v4  ;;  %v3427_v38 = vpop.permute.xlu0 %3426 }
0x10dc   :  { %5386 = vmatmul.mubr.msk.bf16.vlgmr.msra.gmra.mrb[64].mxu1 %vm508_vm1, %v2738_v36 }
0x10dd   :  { %5434 = vmatmul.mubr.msk.bf16.vlgmr.msra.gmra.mrb[56].mxu0 %vm508_vm1, %v3201_v27  ;;  %5391 = vmatprep.mubr.msk.bf16.mxu1 %vm6229_vm0, %v6227_v4 }
0x10de   :  { %5444 = vmatpush3.bf16.xpose.msra.mxu0 %v3322_v28  ;;  %5445 = vmatprep.mubr.msk.bf16.mxu0 %vm6229_vm0, %v6227_v4 }
0x10df   :  { %5455 = vmatprep.subr.bf16.mxu0 %v6227_v4 }
0x10e5   :  { %5446 = vmatmul.mubr.msk.bf16.vlgmr.msra.gmra.mrb[60].mxu0 %vm508_vm1, %v3315_v34 }
0x10e6   :  { %5456 = vmatpush3.bf16.xpose.msra.mxu0 %v3434_v37  ;;  %5457 = vmatprep.mubr.msk.bf16.mxu0 %vm6229_vm0, %v6227_v4 }
0x10e7   :  { %5467 = vmatprep.subr.bf16.mxu0 %v6227_v4 }
0x10ed   :  { %5458 = vmatmul.mubr.msk.bf16.vlgmr.msra.gmra.mrb[64].mxu0 %vm508_vm1, %v3427_v38 }
0x10ee   :  { %5483 = vmatprep.mubr.msk.bf16.mxu0 %vm6229_vm0, %v6227_v4 }
0x110a   :  { %v2895_v2 = vpop.f32.mrb[44].mxu0 }
0x110b   :  { %v2901_v39 = vmul.f32 0.17677669, %v2895_v2  ;;  %v5399_v42 = vpop.f32.mrb[45].mxu0 }
0x110c   :  { %v2898_v45 = vpop.f32.mrb[46].mxu0 }
0x110d   :  { %v5400_v15 = vpop.f32.mrb[47].mxu0  ;;  %v2902_v20 = vadd.f32 %v2901_v39, %v6551_v21 }
0x110f   :  { %v2903_v44 = vsel %vm561_vm3, %v2902_v20, -inf }
0x1110   :  { %2904 = vmax.xlane.f32.xlu0 %v2903_v44 }
0x119d   :  { %v2905_v9 = vpop.xlane.xlu0 %2904 }
0x119e   :  { %v2906_v41 = vsub.f32 %v2902_v20, %v2905_v9 }
0x11a0   :  { %v3007_v48 = vpop.f32.mrb[48].mxu0  ;;  %v2907_v18 = vmul.f32 1.442695, %v2906_v41 }
0x11a1   :  { %v3013_v49 = vmul.f32 0.17677669, %v3007_v48  ;;  %v5411_v52 = vpop.f32.mrb[49].mxu0 }
0x11a2   :  { %v3010_v50 = vpop.f32.mrb[50].mxu0  ;;  %5900 = vpow2.f32 %v2907_v18 }
0x11a3   :  { %v5412_v53 = vpop.f32.mrb[51].mxu0  ;;  %v3014_v7 = vadd.f32 %v3013_v49, %v6551_v21 }
0x11a5   :  { %v3015_v56 = vsel %vm561_vm3, %v3014_v7, -inf }
0x11a6   :  { %3016 = vmax.xlane.f32.xlu0 %v3015_v56 }
0x11a7   :  { %v6932_v59 = vpop.f32.mrb[60].mxu1 }
0x11a8   :  { %v5381_v60 = vpop.f32.mrb[61].mxu1  ;;  %v3133_v61 = vpop.f32.mrb[52].mxu0 }
0x11a9   :  { %v3139_v62 = vmul.f32 0.17677669, %v3133_v61  ;;  %v2733_v63 = vpop.f32.mrb[62].mxu1  ;;  %v5423_v0 = vpop.f32.mrb[53].mxu0 }
0x11aa   :  { %v5382_v1 = vpop.f32.mrb[63].mxu1  ;;  %v3136_v3 = vpop.f32.mrb[54].mxu0 }
0x11ab   :  { %v5424_v5 = vpop.f32.mrb[55].mxu0  ;;  %v3140_v6 = vadd.f32 %v3139_v62, %v6615_v32 }
0x11ac   :  { %v6944_v15 = vpop.eup %5900 }
0x11ad   :  { %v3141_v8 = vsel %vm561_vm3, %v3140_v6, -inf  ;;  %v2909_v20 = vsel %vm561_vm3, %v6944_v15, 0.0 }
0x11ae   :  { %3142 = vmax.xlane.f32.xlu0 %v3141_v8 }
0x11af   :  { %v2782_v10 = vpop.f32.mrb[64].mxu1 }
0x11b0   :  { %v2788_v11 = vmul.f32 0.17677669, %v2782_v10  ;;  %v5387_v12 = vpop.f32.mrb[65].mxu1  ;;  %v3245_v14 = vpop.f32.mrb[56].mxu0 }
0x11b1   :  { %v3251_v16 = vmul.f32 0.17677669, %v3245_v14  ;;  %v2785_v17 = vpop.f32.mrb[66].mxu1  ;;  %v5435_v29 = vpop.f32.mrb[57].mxu0 }
0x11b2   :  { %v5388_v31 = vpop.f32.mrb[67].mxu1  ;;  %v3248_v35 = vpop.f32.mrb[58].mxu0  ;;  %v2789_v36 = vadd.f32 %v2788_v11, %v6551_v21 }
0x11b3   :  { %v5436_v40 = vpop.f32.mrb[59].mxu0  ;;  %v3252_v47 = vadd.f32 %v3251_v16, %v6615_v32  ;;  %v3092_v31 = vpack.c.bf16 %v6863_v43, %v6863_v43 }
0x11b4   :  { %v2790_v46 = vsel %vm561_vm3, %v2789_v36, -inf }
0x11b5   :  { %2791 = vmax.xlane.f32.xlu1 %v2790_v46  ;;  %v3253_v22 = vsel %vm561_vm3, %v3252_v47, -inf }
0x11b8   :  { %v3358_v19 = vpop.f32.mrb[60].mxu0 }
0x11b9   :  { %v3364_v25 = vmul.f32 0.17677669, %v3358_v19  ;;  %v5447_v26 = vpop.f32.mrb[61].mxu0  ;;  %3254 = vmax.xlane.f32.xlu1 %v3253_v22 }
0x11ba   :  { %v3361_v27 = vpop.f32.mrb[62].mxu0 }
0x11bb   :  { %v5448_v28 = vpop.f32.mrb[63].mxu0  ;;  %v3365_v33 = vadd.f32 %v3364_v25, %v6615_v32 }
0x11bd   :  { %v3366_v21 = vsel %vm561_vm3, %v3365_v33, -inf }
0x11be   :  { %3367 = vmax.xlane.f32.xlu0 %v3366_v21 }
0x11c0   :  { %v3470_v34 = vpop.f32.mrb[64].mxu0 }
0x11c1   :  { %v3476_v37 = vmul.f32 0.17677669, %v3470_v34  ;;  %v5459_v38 = vpop.f32.mrb[65].mxu0 }
0x11c2   :  { %v3473_v2 = vpop.f32.mrb[66].mxu0 }
0x11c3   :  { %v5460_v39 = vpop.f32.mrb[67].mxu0  ;;  %v3477_v42 = vadd.f32 %v3476_v37, %v6615_v32 }
0x11c5   :  { %v3478_v45 = vsel %vm561_vm3, %v3477_v42, -inf }
0x11c6   :  { %3479 = vmax.xlane.f32.xlu1 %v3478_v45 }
0x11ca   :  { %2910 = vadd.xlane.f32.xlu1 %v2909_v20 }
0x1233   :  { %v3017_v44 = vpop.xlane.xlu0 %3016 }
0x1234   :  { %v3018_v48 = vsub.f32 %v3014_v7, %v3017_v44 }
0x1236   :  { %v3019_v49 = vmul.f32 1.442695, %v3018_v48 }
0x1238   :  { %5902 = vpow2.f32 %v3019_v49 }
0x123b   :  { %v3143_v52 = vpop.xlane.xlu0 %3142 }
0x123c   :  { %v3144_v50 = vsub.f32 %v3140_v6, %v3143_v52 }
0x123e   :  { %v3145_v53 = vmul.f32 1.442695, %v3144_v50 }
0x1240   :  { %5904 = vpow2.f32 %v3145_v53 }
0x1242   :  { %v6948_v56 = vpop.eup %5902  ;;  %v2792_v32 = vpop.xlane.xlu1 %2791 }
0x1243   :  { %v3021_v60 = vsel %vm561_vm3, %v6948_v56, 0.0  ;;  %v2793_v5 = vsub.f32 %v2789_v36, %v2792_v32 }
0x1244   :  { %3022 = vadd.xlane.f32.xlu0 %v3021_v60 }
0x1245   :  { %v2794_v6 = vmul.f32 1.442695, %v2793_v5 }
0x1246   :  { %v3255_v61 = vpop.xlane.xlu1 %3254 }
0x1247   :  { %v3256_v62 = vsub.f32 %v3252_v47, %v3255_v61 }
0x1249   :  { %v3257_v63 = vmul.f32 1.442695, %v3256_v62 }
0x124a   :  { %v6952_v0 = vpop.eup %5904 }
0x124b   :  { %5906 = vpow2.f32 %v3257_v63  ;;  %v3147_v7 = vsel %vm561_vm3, %v6952_v0, 0.0  ;;  %v3368_v8 = vpop.xlane.xlu0 %3367 }
0x124c   :  { %3148 = vadd.xlane.f32.xlu1 %v3147_v7  ;;  %5908 = vpow2.f32 %v2794_v6  ;;  %v3369_v10 = vsub.f32 %v3365_v33, %v3368_v8  ;;  %v5732_v8 = vld [vmem:[%s7237_s6 + $0x40] sm:$0xff]  }
0x124d   :  { %5468 = vmatpush3.bf16.msra.mxu0 %v5732_v8 }
0x124e   :  { %v3370_v12 = vmul.f32 1.442695, %v3369_v10  ;;  %5469 = vmatprep.subr.bf16.mxu0 %v6227_v4  ;;  %v5734_v10 = vld [vmem:[%s7237_s6 + $0x50] sm:$0xff]  }
0x1250   :  { %5910 = vpow2.f32 %v3370_v12 }
0x1253   :  { %v3480_v17 = vpop.xlane.xlu1 %3479 }
0x1254   :  { %v3481_v29 = vsub.f32 %v3477_v42, %v3480_v17 }
0x1255   :  { %v6956_v1 = vpop.eup %5906 }
0x1256   :  { %v3259_v3 = vsel %vm561_vm3, %v6956_v1, 0.0  ;;  %v5909_v9 = vpop.eup %5908  ;;  %v3482_v35 = vmul.f32 1.442695, %v3481_v29 }
0x1257   :  { %3260 = vadd.xlane.f32.xlu1 %v3259_v3  ;;  %v2796_v11 = vsel %vm561_vm3, %v5909_v9, 0.0  ;;  %v2911_v43 = vpop.xlane.xlu1 %2910 }
0x1258   :  { %5912 = vpow2.f32 %v3482_v35 }
0x125a   :  { %2803 = vrot.lane.b32.xlu0 %v6867_v51, %s6230_s26  ;;  %v6965_v14 = vpop.eup %5910 }
0x125b   :  { %v3372_v16 = vsel %vm561_vm3, %v6965_v14, 0.0 }
0x1262   :  { %v6975_v36 = vpop.eup %5912 }
0x1263   :  { %v3484_v40 = vsel %vm561_vm3, %v6975_v36, 0.0 }
0x1268   :  { %2915 = vrot.lane.b32.xlu1 %v6867_v51, %s6217_s9 }
0x1279   :  { %2797 = vadd.xlane.f32.xlu0 %v2796_v11 }
0x128c   :  { %3373 = vadd.xlane.f32.xlu1 %v3372_v16 }
0x128f   :  { %3027 = vrot.lane.b32.xlu0 %v6867_v51, %s6231_s15 }
0x129d   :  { %3378 = vrot.lane.b32.xlu1 %v3092_v31, %s6217_s9 }
0x12a1   :  { %3490 = vrot.lane.b32.xlu1 %v3092_v31, %s6231_s15 }
0x12ae   :  { %3485 = vadd.xlane.f32.xlu0 %v3484_v40 }
0x12c4   :  { %3266 = vrot.lane.b32.xlu0 %v3092_v31, %s6230_s26 }
0x12d1   :  { %v3023_v51 = vpop.xlane.xlu0 %3022 }
0x12d5   :  { %v2804_v41 = vpop.permute.xlu0 %2803 }
0x12d6   :  { %v2809_v46 = vsel %vm577_vm2, %v2804_v41, 0 }
0x12d7   :  { %5390 = vmatpush3.bf16.msra.mxu1 %v2809_v46 }
0x12d8   :  { %5401 = vmatprep.subr.bf16.mxu1 %v6227_v4 }
0x12d9   :  { %v3149_v18 = vpop.xlane.xlu1 %3148 }
0x12e4   :  { %v3261_v19 = vpop.xlane.xlu1 %3260 }
0x12e8   :  { %v2916_v26 = vpop.permute.xlu1 %2915 }
0x12e9   :  { %v2921_v33 = vsel %vm577_vm2, %v2916_v26, 0 }
0x1306   :  { %v2798_v47 = vpop.xlane.xlu0 %2797 }
0x1307   :  { %5914 = vrcp.f32 %v2798_v47 }
0x1308   :  { %5916 = vrcp.f32 %v2911_v43 }
0x1309   :  { %5918 = vrcp.f32 %v3023_v51 }
0x130a   :  { %5920 = vrcp.f32 %v3149_v18  ;;  %v3028_v34 = vpop.permute.xlu0 %3027 }
0x130b   :  { %v3033_v2 = vsel %vm577_vm2, %v3028_v34, 0  ;;  %5922 = vrcp.f32 %v3261_v19  ;;  %v5735_v19 = vld [vmem:[%s7237_s6 + $0x58] sm:$0xff]  }
0x1311   :  { %v5915_v22 = vpop.eup %5914 }
0x1312   :  { %v2800_v25 = vmul.f32 %v5915_v22, %v5909_v9  ;;  %v5917_v28 = vpop.eup %5916  ;;  %v5733_v9 = vld [vmem:[%s7237_s6 + $0x48] sm:$0xff]   ;;  %v5736_v22 = vld [vmem:[%s7237_s6 + $0x60] sm:$0xff]  }
0x1313   :  { %v2913_v21 = vmul.f32 %v5917_v28, %v6944_v15  ;;  %v5919_v38 = vpop.eup %5918  ;;  %v3157_v15 = vsel %vm577_vm2, %v3092_v31, 0  ;;  %5470 = vmatpush3.bf16.msra.mxu0 %v5733_v9  ;;  %v4911_v9 = vld [vmem:[%s7238_s7 + $0x1] ss:$0 sm:$0xff] }
0x1314   :  { %v2801_v27 = vpack.c.bf16 %v2800_v25, %v2800_v25  ;;  %v3025_v39 = vmul.f32 %v5919_v38, %v6948_v56  ;;  %v5921_v45 = vpop.eup %5920  ;;  %5471 = vmatprep.subr.bf16.mxu0 %v6227_v4  ;;  %v5737_v25 = vld [vmem:[%s7237_s6 + $0x68] sm:$0xff]  }
0x1315   :  { %v2914_v37 = vpack.c.bf16 %v2913_v21, %v2913_v21  ;;  %v3151_v20 = vmul.f32 %v5921_v45, %v6952_v0  ;;  %v5923_v49 = vpop.eup %5922 }
0x1316   :  { %5392 = vmatmul.mubr.msk.bf16.vlgmr.msra.gmra.mrb[68].mxu1 %vm561_vm3, %v2801_v27  ;;  %v3026_v42 = vpack.c.bf16 %v3025_v39, %v3025_v39  ;;  %v3263_v50 = vmul.f32 %v5923_v49, %v6956_v1 }
0x1317   :  { %5402 = vmatpush3.bf16.msra.mxu1 %v2921_v33  ;;  %5403 = vmatprep.mubr.msk.bf16.mxu1 %vm6229_vm0, %v6227_v4  ;;  %v3152_v44 = vpack.c.bf16 %v3151_v20, %v3151_v20  ;;  %v5738_v33 = vld [vmem:[%s7237_s6 + $0x70] sm:$0xff]  }
0x1318   :  { %5413 = vmatprep.subr.bf16.mxu1 %v6227_v4  ;;  %v3264_v60 = vpack.c.bf16 %v3263_v50, %v3263_v50  ;;  %5472 = vmatpush3.bf16.msra.mxu0 %v5734_v10 }
0x1319   :  { %v3374_v48 = vpop.xlane.xlu1 %3373  ;;  %5473 = vmatprep.subr.bf16.mxu0 %v6227_v4 }
0x131a   :  { %5924 = vrcp.f32 %v3374_v48 }
0x131c   :  { %5474 = vmatpush3.bf16.msra.mxu0 %v5735_v19 }
0x131d   :  { %v3379_v32 = vpop.permute.xlu1 %3378  ;;  %5475 = vmatprep.subr.bf16.mxu0 %v6227_v4 }
0x131e   :  { %5404 = vmatmul.mubr.msk.bf16.vlgmr.msra.gmra.mrb[72].mxu1 %vm561_vm3, %v2914_v37  ;;  %v3384_v62 = vsel %vm577_vm2, %v3379_v32, 0  ;;  %v5739_v37 = vld [vmem:[%s7237_s6 + $0x78] sm:$0xff]  }
0x131f   :  { %5414 = vmatpush3.bf16.msra.mxu1 %v3033_v2  ;;  %5415 = vmatprep.mubr.msk.bf16.mxu1 %vm6229_vm0, %v6227_v4 }
0x1320   :  { %5425 = vmatprep.subr.bf16.mxu1 %v6227_v4  ;;  %5476 = vmatpush3.bf16.msra.mxu0 %v5736_v22 }
0x1321   :  { %v3491_v0 = vpop.permute.xlu1 %3490  ;;  %5477 = vmatprep.subr.bf16.mxu0 %v6227_v4 }
0x1322   :  { %v3496_v3 = vsel %vm577_vm2, %v3491_v0, 0 }
0x1324   :  { %v5925_v61 = vpop.eup %5924  ;;  %5478 = vmatpush3.bf16.msra.mxu0 %v5737_v25 }
0x1325   :  { %v3376_v63 = vmul.f32 %v5925_v61, %v6965_v14  ;;  %5479 = vmatprep.subr.bf16.mxu0 %v6227_v4 }
0x1326   :  { %5416 = vmatmul.mubr.msk.bf16.vlgmr.msra.gmra.mrb[76].mxu1 %vm561_vm3, %v3026_v42 }
0x1327   :  { %5426 = vmatpush3.bf16.msra.mxu1 %v3157_v15  ;;  %5427 = vmatprep.mubr.msk.bf16.mxu1 %vm6229_vm0, %v6227_v4  ;;  %v3377_v7 = vpack.c.bf16 %v3376_v63, %v3376_v63 }
0x1328   :  { %5437 = vmatprep.subr.bf16.mxu1 %v6227_v4  ;;  %5480 = vmatpush3.bf16.msra.mxu0 %v5738_v33  ;;  %v5755_v33 = vld [vmem:[#allocation10 + $0x148] ss:$16 sps:$4 sm:$0xff]  }
0x1329   :  { %5481 = vmatprep.subr.bf16.mxu0 %v6227_v4 }
0x132c   :  { %5482 = vmatpush3.bf16.msra.mxu0 %v5739_v37  ;;  %v5758_v37 = vld [vmem:[#allocation10 + $0x160] ss:$16 sps:$4 sm:$0xff]  }
0x132e   :  { %5428 = vmatmul.mubr.msk.bf16.vlgmr.msra.gmra.mrb[80].mxu1 %vm561_vm3, %v3152_v44 }
0x132f   :  { %5439 = vmatprep.mubr.msk.bf16.mxu1 %vm6229_vm0, %v6227_v4 }
0x133b   :  { %v3486_v52 = vpop.xlane.xlu0 %3485 }
0x133c   :  { %5926 = vrcp.f32 %v3486_v52 }
0x133f   :  { %v3267_v53 = vpop.permute.xlu0 %3266 }
0x1340   :  { %v3272_v56 = vsel %vm577_vm2, %v3267_v53, 0 }
0x1341   :  { %5438 = vmatpush3.bf16.msra.mxu1 %v3272_v56 }
0x1342   :  { %5449 = vmatprep.subr.bf16.mxu1 %v6227_v4 }
0x1344   :  { %5440 = vmatmul.mubr.msk.bf16.vlgmr.msra.gmra.mrb[84].mxu1 %vm561_vm3, %v3264_v60 }
0x1345   :  { %5450 = vmatpush3.bf16.msra.mxu1 %v3384_v62  ;;  %5451 = vmatprep.mubr.msk.bf16.mxu1 %vm6229_vm0, %v6227_v4 }
0x1346   :  { %5461 = vmatprep.subr.bf16.mxu1 %v6227_v4  ;;  %v5927_v1 = vpop.eup %5926 }
0x1347   :  { %v3488_v5 = vmul.f32 %v5927_v1, %v6975_v36 }
0x1349   :  { %v3489_v6 = vpack.c.bf16 %v3488_v5, %v3488_v5 }
0x134c   :  { %5452 = vmatmul.mubr.msk.bf16.vlgmr.msra.gmra.mrb[88].mxu1 %vm561_vm3, %v3377_v7 }
0x134d   :  { %5462 = vmatpush3.bf16.msra.mxu1 %v3496_v3  ;;  %5463 = vmatprep.mubr.msk.bf16.mxu1 %vm6229_vm0, %v6227_v4 }
0x1354   :  { %5464 = vmatmul.mubr.msk.bf16.vlgmr.msra.gmra.mrb[92].mxu1 %vm561_vm3, %v3489_v6 }
0x1355   :  { %3961 = vmatprep.mubr.bf16.mxu1 %v6228_v30 }
0x13e9   :  { %v2845_v11 = vpop.f32.mrb[68].mxu1 }
0x13ea   :  { %v5393_v12 = vpop.f32.mrb[69].mxu1 }
0x13eb   :  { %v2848_v14 = vpop.f32.mrb[70].mxu1 }
0x13ec   :  { %v5394_v16 = vpop.f32.mrb[71].mxu1 }
0x13f1   :  { %v2957_v17 = vpop.f32.mrb[72].mxu1 }
0x13f2   :  { %v5405_v29 = vpop.f32.mrb[73].mxu1 }
0x13f3   :  { %v2960_v31 = vpop.f32.mrb[74].mxu1 }
0x13f4   :  { %v5406_v35 = vpop.f32.mrb[75].mxu1  ;;  %v5740_v31 = vld [vmem:[#allocation10 + $0x100] ss:$16 sps:$4 sm:$0xff]  }
0x13f5   :  { %v5742_v35 = vld [vmem:[#allocation10 + $0x104] ss:$16 sps:$4 sm:$0xff]  }
0x13f6   :  { %3929 = vmatprep.subr.bf16.mxu1 %v5742_v35  ;;  %v5790_v35 = vld [vmem:[#allocation11 + $0x100] sm:$0xff]  }
0x13f7   :  { %3930 = vmatpush1.bf16.msra.mxu1 %v5740_v31  ;;  %v5789_v31 = vld [vmem:[#allocation11 + $0x1c0] sm:$0xff]  }
0x13f9   :  { %v3069_v36 = vpop.f32.mrb[76].mxu1 }
0x13fa   :  { %v5417_v40 = vpop.f32.mrb[77].mxu1 }
0x13fb   :  { %v3072_v51 = vpop.f32.mrb[78].mxu1  ;;  %v5748_v40 = vld [vmem:[#allocation10 + $0x124] ss:$16 sps:$4 sm:$0xff]  }
0x13fc   :  { %v5418_v41 = vpop.f32.mrb[79].mxu1  ;;  %v5751_v51 = vld [vmem:[#allocation10 + $0x12c] ss:$16 sps:$4 sm:$0xff]   ;;  %3931 = vmatprep.subr.bf16.mxu1 %v5748_v40 }
0x13fd   :  { %v5746_v41 = vld [vmem:[#allocation10 + $0x120] ss:$16 sps:$4 sm:$0xff]   ;;  %v5793_v40 = vld [vmem:[#allocation11 + $0x1c8] sm:$0xff]  }
0x13fe   :  { %3932 = vmatpush1.bf16.msra.mxu1 %v5746_v41  ;;  %v5795_v41 = vld [vmem:[#allocation11 + $0x188] sm:$0xff]  }
0x1401   :  { %v3193_v46 = vpop.f32.mrb[80].mxu1 }
0x1402   :  { %v5429_v43 = vpop.f32.mrb[81].mxu1 }
0x1403   :  { %v3196_v47 = vpop.f32.mrb[82].mxu1 }
0x1404   :  { %v5430_v18 = vpop.f32.mrb[83].mxu1 }
0x1417   :  { %v3308_v26 = vpop.f32.mrb[84].mxu1 }
0x1418   :  { %v5565_v27 = vpack.i.bf16 %v3308_v26, %v2845_v11  ;;  %v5441_v28 = vpop.f32.mrb[85].mxu1  ;;  %v5754_v26 = vld [vmem:[#allocation10 + $0x144] ss:$16 sps:$4 sm:$0xff]  }
0x1419   :  { %v3311_v21 = vpop.f32.mrb[86].mxu1  ;;  %v5752_v28 = vld [vmem:[#allocation10 + $0x140] ss:$16 sps:$4 sm:$0xff]   ;;  %3933 = vmatprep.subr.bf16.mxu1 %v5754_v26 }
0x141a   :  { %5566 = vrot.lane.b32.xlu1 %v5565_v27, %s6231_s15  ;;  %v5442_v34 = vpop.f32.mrb[87].mxu1  ;;  %v5757_v27 = vld [vmem:[#allocation10 + $0x14c] ss:$16 sps:$4 sm:$0xff]   ;;  %3934 = vmatpush1.bf16.msra.mxu1 %v5752_v28  ;;  %v5760_v21 = vld [vmem:[#allocation10 + $0x164] ss:$16 sps:$4 sm:$0xff]  }
0x141b   :  { %v5763_v34 = vld [vmem:[#allocation10 + $0x16c] ss:$16 sps:$4 sm:$0xff]   ;;  %3935 = vmatprep.subr.bf16.mxu1 %v5760_v21  ;;  %v5805_v26 = vld [vmem:[#allocation11 + $0x1e0] sm:$0xff]  }
0x141c   :  { %v5807_v28 = vld [vmem:[#allocation11 + $0x1a0] sm:$0xff]   ;;  %v5809_v21 = vld [vmem:[#allocation11 + $0x1e8] sm:$0xff]  }
0x141e   :  { %3936 = vmatpush1.bf16.msra.mxu1 %v5758_v37  ;;  %v5811_v37 = vld [vmem:[#allocation11 + $0x1a8] sm:$0xff]  }
0x141f   :  { %v3420_v38 = vpop.f32.mrb[88].mxu1 }
0x1420   :  { %v5570_v2 = vpack.i.bf16 %v3420_v38, %v2957_v17  ;;  %v5453_v39 = vpop.f32.mrb[89].mxu1  ;;  %v5761_v38 = vld [vmem:[#allocation10 + $0x168] ss:$16 sps:$4 sm:$0xff]  }
0x1421   :  { %v3423_v42 = vpop.f32.mrb[90].mxu1  ;;  %v5769_v39 = vld [vmem:[#allocation10 + $0x18c] ss:$16 sps:$4 sm:$0xff]  }
0x1422   :  { %5571 = vrot.lane.b32.xlu0 %v5570_v2, %s6217_s9  ;;  %v5454_v45 = vpop.f32.mrb[91].mxu1  ;;  %v5766_v2 = vld [vmem:[#allocation10 + $0x184] ss:$16 sps:$4 sm:$0xff]   ;;  %v5764_v42 = vld [vmem:[#allocation10 + $0x180] ss:$16 sps:$4 sm:$0xff]  }
0x1423   :  { %v5767_v45 = vld [vmem:[#allocation10 + $0x188] ss:$16 sps:$4 sm:$0xff]   ;;  %3937 = vmatprep.subr.bf16.mxu1 %v5766_v2  ;;  %v5813_v2 = vld [vmem:[#allocation11 + $0x1f0] sm:$0xff]  }
0x1424   :  { %3938 = vmatpush1.bf16.msra.mxu1 %v5764_v42  ;;  %v5815_v42 = vld [vmem:[#allocation11 + $0x1b0] sm:$0xff]  }
0x1427   :  { %v3532_v15 = vpop.f32.mrb[92].mxu1 }
0x1428   :  { %v5575_v20 = vpack.i.bf16 %v3532_v15, %v3069_v36  ;;  %v5465_v44 = vpop.f32.mrb[93].mxu1  ;;  %v5743_v36 = vld [vmem:[#allocation10 + $0x108] ss:$16 sps:$4 sm:$0xff]   ;;  %v5772_v15 = vld [vmem:[#allocation10 + $0x1a4] ss:$16 sps:$4 sm:$0xff]  }
0x1429   :  { %v3535_v48 = vpop.f32.mrb[94].mxu1  ;;  %v5770_v44 = vld [vmem:[#allocation10 + $0x1a0] ss:$16 sps:$4 sm:$0xff]   ;;  %3939 = vmatprep.subr.bf16.mxu1 %v5772_v15  ;;  %v5817_v15 = vld [vmem:[#allocation11 + $0x1f8] sm:$0xff]  }
0x142a   :  { %5576 = vrot.lane.b32.xlu1 %v5575_v20, %s6230_s26  ;;  %v5466_v49 = vpop.f32.mrb[95].mxu1  ;;  %v5775_v20 = vld [vmem:[#allocation10 + $0x1ac] ss:$16 sps:$4 sm:$0xff]   ;;  %v5773_v48 = vld [vmem:[#allocation10 + $0x1a8] ss:$16 sps:$4 sm:$0xff]   ;;  %3940 = vmatpush1.bf16.msra.mxu1 %v5770_v44 }
0x142b   :  { %v5778_v49 = vld [vmem:[#allocation10 + $0x1c4] ss:$16 sps:$4 sm:$0xff]   ;;  %v5819_v44 = vld [vmem:[#allocation11 + $0x1b8] sm:$0xff]  }
0x142c   :  { %3941 = vmatprep.subr.bf16.mxu1 %v5778_v49 }
0x148c   :  { %v5567_v52 = vpop.permute.xlu1 %5566 }
0x148d   :  { %v5569_v53 = vunpack.i.h.bf16 %v5567_v52  ;;  %v5568_v56 = vunpack.i.l.bf16 %v5567_v52  ;;  %v5781_v52 = vld [vmem:[#allocation10 + $0x1cc] ss:$16 sps:$4 sm:$0xff]  }
0x148f   :  { %v3550_v62 = vsel %vm508_vm1, %v3193_v46, %v5569_v53  ;;  %v3087_v63 = vsel %vm508_vm1, %v6932_v59, %v5568_v56  ;;  %v5749_v46 = vld [vmem:[#allocation10 + $0x128] ss:$16 sps:$4 sm:$0xff]   ;;  %v5784_v56 = vld [vmem:[#allocation10 + $0x1e4] ss:$16 sps:$4 sm:$0xff]  }
0x1490   :  { %v5779_v53 = vld [vmem:[#allocation10 + $0x1c8] ss:$16 sps:$4 sm:$0xff]  }
0x1494   :  { %v5572_v50 = vpop.permute.xlu0 %5571 }
0x1495   :  { %v5574_v32 = vunpack.i.h.bf16 %v5572_v50  ;;  %v5573_v60 = vunpack.i.l.bf16 %v5572_v50  ;;  %v5776_v50 = vld [vmem:[#allocation10 + $0x1c0] ss:$16 sps:$4 sm:$0xff]  }
0x1496   :  { %3942 = vmatpush1.bf16.msra.mxu1 %v5776_v50 }
0x1497   :  { %v3551_v1 = vsel %vm973_vm4, %v3550_v62, %v5574_v32  ;;  %v3088_v3 = vsel %vm973_vm4, %v3087_v63, %v5573_v60  ;;  %v5787_v32 = vld [vmem:[#allocation10 + $0x1ec] ss:$16 sps:$4 sm:$0xff]   ;;  %v5782_v60 = vld [vmem:[#allocation10 + $0x1e0] ss:$16 sps:$4 sm:$0xff]   ;;  %3943 = vmatprep.subr.bf16.mxu1 %v5784_v56 }
0x149a   :  { %3944 = vmatpush1.bf16.msra.mxu1 %v5782_v60 }
0x149c   :  { %v5577_v61 = vpop.permute.xlu1 %5576 }
0x149d   :  { %v5579_v0 = vunpack.i.h.bf16 %v5577_v61  ;;  %v5578_v7 = vunpack.i.l.bf16 %v5577_v61  ;;  %v5785_v61 = vld [vmem:[#allocation10 + $0x1e8] ss:$16 sps:$4 sm:$0xff]  }
0x149f   :  { %v3552_v5 = vsel %vm975_vm5, %v3551_v1, %v5579_v0  ;;  %v3089_v6 = vsel %vm975_vm5, %v3088_v3, %v5578_v7 }
0x14a0   :  { %v3570_v8 = vpack.c.bf16 %v3552_v5, %v3089_v6 }
0x14a2   :  { %5484 = vmatmul.mubr.bf16.vlgmr.msra.gmra.mrb[68].mxu0 %v3570_v8  ;;  %v4920_v8 = vld [vmem:[#allocation7 + $0x1] ss:$0 sm:$0xff] }
0x14a3   :  { %4004 = vmatprep.mubr.bf16.mxu0 %v6228_v30  ;;  %v5745_v30 = vld [vmem:[#allocation10 + $0x10c] ss:$16 sps:$4 sm:$0xff]  }
0x14a4   :  { %3972 = vmatprep.subr.bf16.mxu0 %v5745_v30  ;;  %v5792_v30 = vld [vmem:[#allocation11 + $0x148] sm:$0xff]  }
0x14a5   :  { %3973 = vmatpush1.bf16.msra.mxu0 %v5743_v36  ;;  %v5791_v36 = vld [vmem:[#allocation11 + $0x180] sm:$0xff]  }
0x14a6   :  { %3974 = vmatprep.subr.bf16.mxu0 %v5751_v51  ;;  %v5794_v51 = vld [vmem:[#allocation11 + $0x108] sm:$0xff]  }
0x14a9   :  { %3975 = vmatpush1.bf16.msra.mxu0 %v5749_v46  ;;  %v5796_v46 = vld [vmem:[#allocation11 + $0x150] sm:$0xff]  }
0x14aa   :  { %3976 = vmatprep.subr.bf16.mxu0 %v5757_v27  ;;  %v5806_v27 = vld [vmem:[#allocation11 + $0x120] sm:$0xff]  }
0x14ad   :  { %3977 = vmatpush1.bf16.msra.mxu0 %v5755_v33  ;;  %v5808_v33 = vld [vmem:[#allocation11 + $0x168] sm:$0xff]  }
0x14ae   :  { %3978 = vmatprep.subr.bf16.mxu0 %v5763_v34  ;;  %v5810_v34 = vld [vmem:[#allocation11 + $0x128] sm:$0xff]  }
0x14b1   :  { %3979 = vmatpush1.bf16.msra.mxu0 %v5761_v38  ;;  %v5812_v38 = vld [vmem:[#allocation11 + $0x170] sm:$0xff]  }
0x14b2   :  { %3980 = vmatprep.subr.bf16.mxu0 %v5769_v39  ;;  %v5814_v39 = vld [vmem:[#allocation11 + $0x130] sm:$0xff]  }
0x14b5   :  { %3981 = vmatpush1.bf16.msra.mxu0 %v5767_v45  ;;  %v5816_v45 = vld [vmem:[#allocation11 + $0x178] sm:$0xff]  }
0x14b6   :  { %3982 = vmatprep.subr.bf16.mxu0 %v5775_v20  ;;  %v5818_v20 = vld [vmem:[#allocation11 + $0x138] sm:$0xff]  }
0x14b9   :  { %3983 = vmatpush1.bf16.msra.mxu0 %v5773_v48  ;;  %v4922_v48 = vld [vmem:[%s7242_s11 + $0x4] sm:$0xf] }
0x14ba   :  { %3984 = vmatprep.subr.bf16.mxu0 %v5781_v52  ;;  %v3752_v49 = vrot.slane %v4922_v48, %v6524_v57  ;;  %v3760_v52 = vrot.slane %v4922_v48, %v6527_v58  ;;  %v3756_v50 = vrot.slane %v4922_v48, %v6518_v55 }
0x14bd   :  { %3985 = vmatpush1.bf16.msra.mxu0 %v5779_v53  ;;  %v3764_v53 = vrot.slane %v4922_v48, %v1648_v23 }
0x14be   :  { %3986 = vmatprep.subr.bf16.mxu0 %v5787_v32 }
0x14c1   :  { %3987 = vmatpush1.bf16.msra.mxu0 %v5785_v61 }
0x14c2   :  { %5175 = vmatprep.subr.bf16.mxu0 %v5789_v31 }
0x1575   :  { %v3661_v10 = vpop.f32.mrb[68].mxu0 }
0x1576   :  { %v3662_v59 = vadd.f32 %v4911_v9, %v3661_v10  ;;  %v5485_v11 = vpop.f32.mrb[69].mxu0 }
0x1577   :  { %v3664_v12 = vpop.f32.mrb[70].mxu0  ;;  %v4921_v11 = vld [vmem:[#allocation8 + $0x1] ss:$0 sm:$0xff] }
0x1578   :  { %v3665_v14 = vadd.f32 %v4911_v9, %v3664_v12  ;;  %v5486_v16 = vpop.f32.mrb[71].mxu0  ;;  %v3668_v17 = vadd.f32 %v3662_v59, %v6847_v13 }
0x157a   :  { %3674 = vadd.xlane.f32.xlu0 %v3668_v17  ;;  %v3669_v29 = vadd.f32 %v3665_v14, %v6849_v24 }
0x157c   :  { %3676 = vadd.xlane.f32.xlu1 %v3669_v29 }
0x1607   :  { %v3675_v13 = vpop.xlane.xlu0 %3674 }
0x1608   :  { %v3678_v43 = vmul.f32 0.0078125, %v3675_v13  ;;  %v5797_v13 = vld [vmem:[#allocation11 + $0x1d0] sm:$0xff]  }
0x1609   :  { %v3677_v24 = vpop.xlane.xlu1 %3676 }
0x160a   :  { %v7066_v47 = vsub.f32 %v3668_v17, %v3678_v43  ;;  %v3679_v18 = vmul.f32 0.0078125, %v3677_v24  ;;  %v5798_v43 = vld [vmem:[#allocation11 + $0x110] sm:$0xff]  }
0x160b   :  { %v5799_v24 = vld [vmem:[#allocation11 + $0x190] sm:$0xff]  }
0x160c   :  { %v7068_v19 = vsub.f32 %v3669_v29, %v3679_v18  ;;  %v3682_v22 = vmul.f32 %v7066_v47, %v7066_v47  ;;  %v5788_v29 = vld [vmem:[#allocation11 + $0x140] sm:$0xff]   ;;  %v5801_v18 = vld [vmem:[#allocation11 + $0x1d8] sm:$0xff]  }
0x160d   :  { %5153 = vmatprep.subr.bf16.mxu1 %v5788_v29 }
0x160e   :  { %3684 = vadd.xlane.f32.xlu0 %v3682_v22  ;;  %v3683_v25 = vmul.f32 %v7068_v19, %v7068_v19  ;;  %v5803_v22 = vld [vmem:[#allocation11 + $0x198] sm:$0xff]  }
0x1612   :  { %3686 = vadd.xlane.f32.xlu0 %v3683_v25  ;;  %v5804_v25 = vld [vmem:[#allocation11 + $0x160] sm:$0xff]  }
0x169b   :  { %v3685_v62 = vpop.xlane.xlu0 %3684 }
0x169c   :  { %v3688_v63 = vmul.f32 0.0078125, %v3685_v62 }
0x169e   :  { %v3690_v0 = vadd.f32 1e-12, %v3688_v63 }
0x169f   :  { %v3687_v7 = vpop.xlane.xlu0 %3686 }
0x16a0   :  { %5928 = vrsqrt.f32 %v3690_v0  ;;  %v3689_v1 = vmul.f32 0.0078125, %v3687_v7 }
0x16a2   :  { %v3691_v3 = vadd.f32 1e-12, %v3689_v1 }
0x16a4   :  { %5930 = vrsqrt.f32 %v3691_v3 }
0x16aa   :  { %v5929_v5 = vpop.eup %5928 }
0x16ab   :  { %v3694_v6 = vmul.f32 %v5929_v5, %v7066_v47  ;;  %v5800_v47 = vld [vmem:[#allocation11 + $0x158] sm:$0xff]  }
0x16ad   :  { %v3702_v59 = vmul.f32 %v4920_v8, %v3694_v6 }
0x16ae   :  { %v5931_v9 = vpop.eup %5930 }
0x16af   :  { %v3695_v10 = vmul.f32 %v5931_v9, %v7068_v19  ;;  %v7076_v14 = vadd.f32 %v4921_v11, %v3702_v59  ;;  %v5802_v19 = vld [vmem:[#allocation11 + $0x118] sm:$0xff]  }
0x16b1   :  { %v3703_v12 = vmul.f32 %v4920_v8, %v3695_v10 }
0x16b3   :  { %v7078_v16 = vadd.f32 %v4921_v11, %v3703_v12 }
0x16b5   :  { %v3745_v17 = vpack.c.bf16 %v7078_v16, %v7076_v14 }
0x16b7   :  { %3962 = vmatmul.mubr.bf16.vlgmr.msra.gmra.mrb[96].mxu1 %v3745_v17  ;;  %4005 = vmatmul.mubr.bf16.vlgmr.msra.gmra.mrb[72].mxu0 %v3745_v17 }
0x16b8   :  { %5154 = vmatpush3.bf16.msra.mxu1 %v5790_v35  ;;  %5176 = vmatpush3.bf16.msra.mxu0 %v5791_v36 }
0x16b9   :  { %5155 = vmatprep.subr.bf16.mxu1 %v5792_v30  ;;  %5177 = vmatprep.subr.bf16.mxu0 %v5793_v40 }
0x16bc   :  { %5156 = vmatpush3.bf16.msra.mxu1 %v5794_v51  ;;  %5178 = vmatpush3.bf16.msra.mxu0 %v5795_v41 }
0x16bd   :  { %5157 = vmatprep.subr.bf16.mxu1 %v5796_v46  ;;  %5179 = vmatprep.subr.bf16.mxu0 %v5797_v13 }
0x16c0   :  { %5158 = vmatpush3.bf16.msra.mxu1 %v5798_v43  ;;  %5180 = vmatpush3.bf16.msra.mxu0 %v5799_v24 }
0x16c1   :  { %5159 = vmatprep.subr.bf16.mxu1 %v5800_v47  ;;  %5181 = vmatprep.subr.bf16.mxu0 %v5801_v18 }
0x16c4   :  { %5160 = vmatpush3.bf16.msra.mxu1 %v5802_v19  ;;  %5182 = vmatpush3.bf16.msra.mxu0 %v5803_v22 }
0x16c5   :  { %5161 = vmatprep.subr.bf16.mxu1 %v5804_v25  ;;  %5183 = vmatprep.subr.bf16.mxu0 %v5805_v26 }
0x16c8   :  { %5162 = vmatpush3.bf16.msra.mxu1 %v5806_v27  ;;  %5184 = vmatpush3.bf16.msra.mxu0 %v5807_v28 }
0x16c9   :  { %5163 = vmatprep.subr.bf16.mxu1 %v5808_v33  ;;  %5185 = vmatprep.subr.bf16.mxu0 %v5809_v21 }
0x16cc   :  { %5164 = vmatpush3.bf16.msra.mxu1 %v5810_v34  ;;  %5186 = vmatpush3.bf16.msra.mxu0 %v5811_v37 }
0x16cd   :  { %5165 = vmatprep.subr.bf16.mxu1 %v5812_v38  ;;  %5187 = vmatprep.subr.bf16.mxu0 %v5813_v2 }
0x16d0   :  { %5166 = vmatpush3.bf16.msra.mxu1 %v5814_v39  ;;  %5188 = vmatpush3.bf16.msra.mxu0 %v5815_v42 }
0x16d1   :  { %5167 = vmatprep.subr.bf16.mxu1 %v5816_v45  ;;  %5189 = vmatprep.subr.bf16.mxu0 %v5817_v15 }
0x16d4   :  { %5168 = vmatpush3.bf16.msra.mxu1 %v5818_v20  ;;  %5190 = vmatpush3.bf16.msra.mxu0 %v5819_v44 }
0x16d5   :  { %5487 = vmatprep.subr.bf16.mxu1 %v6227_v4  ;;  %5507 = vmatprep.subr.bf16.mxu0 %v6227_v4 }
0x178a   :  { %v3963_v56 = vpop.f32.mrb[96].mxu1  ;;  %v4006_v32 = vpop.f32.mrb[72].mxu0 }
0x178b   :  { %v7092_v60 = vadd.f32 %v3963_v56, %v3752_v49  ;;  %v7094_v61 = vadd.f32 %v4006_v32, %v3760_v52  ;;  %v3965_v62 = vpop.f32.mrb[97].mxu1  ;;  %v4008_v63 = vpop.f32.mrb[73].mxu0 }
0x178c   :  { %v7096_v0 = vadd.f32 %v3965_v62, %v3756_v50  ;;  %v7098_v7 = vadd.f32 %v4008_v63, %v3764_v53  ;;  %v3967_v57 = vpop.f32.mrb[98].mxu1  ;;  %v4010_v1 = vpop.f32.mrb[74].mxu0 }
0x178d   :  { %v4015_v55 = vmul.f32 %v7092_v60, %v7092_v60  ;;  %v4017_v54 = vmul.f32 %v7094_v61, %v7094_v61  ;;  %v7104_v58 = vadd.f32 %v3967_v57, %v3752_v49  ;;  %v7106_v23 = vadd.f32 %v4010_v1, %v3760_v52  ;;  %v3969_v3 = vpop.f32.mrb[99].mxu1  ;;  %v4012_v5 = vpop.f32.mrb[75].mxu0 }
0x178e   :  { %v4016_v6 = vmul.f32 %v7096_v0, %v7096_v0  ;;  %v4018_v8 = vmul.f32 %v7098_v7, %v7098_v7  ;;  %v7112_v9 = vadd.f32 %v3969_v3, %v3756_v50  ;;  %v7114_v10 = vadd.f32 %v4012_v5, %v3764_v53 }
0x178f   :  { %v4023_v59 = vmul.f32 %v4015_v55, %v7092_v60  ;;  %v4025_v11 = vmul.f32 %v4017_v54, %v7094_v61  ;;  %v4019_v12 = vmul.f32 %v7104_v58, %v7104_v58  ;;  %v4021_v17 = vmul.f32 %v7106_v23, %v7106_v23 }
0x1790   :  { %v4024_v29 = vmul.f32 %v4016_v6, %v7096_v0  ;;  %v4026_v31 = vmul.f32 %v4018_v8, %v7098_v7  ;;  %v4020_v35 = vmul.f32 %v7112_v9, %v7112_v9  ;;  %v4022_v36 = vmul.f32 %v7114_v10, %v7114_v10 }
0x1791   :  { %v4031_v30 = vmul.f32 0.044715, %v4023_v59  ;;  %v4033_v40 = vmul.f32 0.044715, %v4025_v11  ;;  %v4027_v51 = vmul.f32 %v4019_v12, %v7104_v58  ;;  %v4029_v41 = vmul.f32 %v4021_v17, %v7106_v23 }
0x1792   :  { %v4032_v46 = vmul.f32 0.044715, %v4024_v29  ;;  %v4034_v13 = vmul.f32 0.044715, %v4026_v31  ;;  %v4028_v43 = vmul.f32 %v4020_v35, %v7112_v9  ;;  %v4030_v24 = vmul.f32 %v4022_v36, %v7114_v10 }
0x1793   :  { %v4039_v47 = vadd.f32 %v4031_v30, %v7092_v60  ;;  %v4041_v18 = vadd.f32 %v4033_v40, %v7094_v61  ;;  %v4035_v19 = vmul.f32 0.044715, %v4027_v51  ;;  %v4037_v22 = vmul.f32 0.044715, %v4029_v41 }
0x1794   :  { %v4040_v25 = vadd.f32 %v4032_v46, %v7096_v0  ;;  %v4042_v26 = vadd.f32 %v4034_v13, %v7098_v7  ;;  %v4036_v27 = vmul.f32 0.044715, %v4028_v43  ;;  %v4038_v28 = vmul.f32 0.044715, %v4030_v24 }
0x1795   :  { %v4047_v33 = vmul.f32 0.7978846, %v4039_v47  ;;  %v4049_v21 = vmul.f32 0.7978846, %v4041_v18  ;;  %v4043_v34 = vadd.f32 %v4035_v19, %v7104_v58  ;;  %v4045_v37 = vadd.f32 %v4037_v22, %v7106_v23 }
0x1796   :  { %v4048_v38 = vmul.f32 0.7978846, %v4040_v25  ;;  %v4050_v2 = vmul.f32 0.7978846, %v4042_v26  ;;  %v4044_v39 = vadd.f32 %v4036_v27, %v7112_v9  ;;  %v4046_v42 = vadd.f32 %v4038_v28, %v7114_v10 }
0x1797   :  { %5932 = vtanh.f32 %v4047_v33  ;;  %v4051_v45 = vmul.f32 0.7978846, %v4043_v34  ;;  %v4053_v15 = vmul.f32 0.7978846, %v4045_v37 }
0x1798   :  { %5934 = vtanh.f32 %v4049_v21  ;;  %v4052_v20 = vmul.f32 0.7978846, %v4044_v39  ;;  %v4054_v44 = vmul.f32 0.7978846, %v4046_v42  ;;  %v5820_v39 = vld [vmem:[%s7247_s16] sm:$0xff]  }
0x1799   :  { %5936 = vtanh.f32 %v4048_v38 }
0x179a   :  { %5938 = vtanh.f32 %v4050_v2 }
0x179b   :  { %5940 = vtanh.f32 %v4051_v45 }
0x179c   :  { %5942 = vtanh.f32 %v4053_v15 }
0x179d   :  { %5944 = vtanh.f32 %v4052_v20 }
0x179e   :  { %5946 = vtanh.f32 %v4054_v44 }
0x17a1   :  { %v5933_v48 = vpop.eup %5932 }
0x17a2   :  { %v5935_v49 = vpop.eup %5934  ;;  %v4063_v52 = vadd.f32 1.0, %v5933_v48 }
0x17a3   :  { %v5937_v50 = vpop.eup %5936  ;;  %v4065_v53 = vadd.f32 1.0, %v5935_v49 }
0x17a4   :  { %v5939_v56 = vpop.eup %5938  ;;  %v4064_v32 = vadd.f32 1.0, %v5937_v50  ;;  %v4071_v1 = vmul.f32 0.5, %v4063_v52  ;;  %v5822_v52 = vld [vmem:[%s7247_s16 + $0x10] sm:$0xff]   ;;  %v5823_v50 = vld [vmem:[%s7247_s16 + $0x18] sm:$0xff]  }
0x17a5   :  { %v5941_v62 = vpop.eup %5940  ;;  %v4066_v63 = vadd.f32 1.0, %v5939_v56  ;;  %v4073_v3 = vmul.f32 0.5, %v4065_v53  ;;  %v5824_v53 = vld [vmem:[%s7247_s16 + $0x20] sm:$0xff]   ;;  %v5825_v56 = vld [vmem:[%s7247_s16 + $0x28] sm:$0xff]  }
0x17a6   :  { %v5943_v57 = vpop.eup %5942  ;;  %v4067_v55 = vadd.f32 1.0, %v5941_v62  ;;  %v4072_v11 = vmul.f32 0.5, %v4064_v32  ;;  %v4079_v31 = vmul.f32 %v4071_v1, %v7092_v60  ;;  %v5826_v32 = vld [vmem:[%s7247_s16 + $0x30] sm:$0xff]   ;;  %v5827_v62 = vld [vmem:[%s7247_s16 + $0x38] sm:$0xff]  }
0x17a7   :  { %v5945_v54 = vpop.eup %5944  ;;  %v4069_v5 = vadd.f32 1.0, %v5943_v57  ;;  %v4074_v29 = vmul.f32 0.5, %v4066_v63  ;;  %v4081_v30 = vmul.f32 %v4073_v3, %v7094_v61  ;;  %v5828_v63 = vld [vmem:[%s7269_s12] sm:$0xff]   ;;  %v5829_v57 = vld [vmem:[%s7269_s12 + $0x8] sm:$0xff]   ;;  %v5830_v1 = vld [vmem:[%s7269_s12 + $0x10] sm:$0xff]  }
0x17a8   :  { %v5947_v6 = vpop.eup %5946  ;;  %v4075_v8 = vmul.f32 0.5, %v4067_v55  ;;  %v4068_v59 = vadd.f32 1.0, %v5945_v54  ;;  %v4080_v41 = vmul.f32 %v4072_v11, %v7096_v0  ;;  %v5831_v55 = vld [vmem:[%s7269_s12 + $0x18] sm:$0xff]  }
0x17a9   :  { %v4077_v12 = vmul.f32 0.5, %v4069_v5  ;;  %v4070_v17 = vadd.f32 1.0, %v5947_v6  ;;  %v4082_v43 = vmul.f32 %v4074_v29, %v7098_v7  ;;  %v4956_v7 = vld [vmem:[%s7244_s13 + $0x1] ss:$0 sm:$0xff]  ;;  %v4989_v29 = vld [vmem:[#allocation13 + $0x1] ss:$0 sm:$0xff] }
0x17aa   :  { %v4083_v35 = vmul.f32 %v4075_v8, %v7104_v58  ;;  %v4076_v36 = vmul.f32 0.5, %v4068_v59 }
0x17ab   :  { %v4085_v40 = vmul.f32 %v4077_v12, %v7106_v23  ;;  %v4078_v51 = vmul.f32 0.5, %v4070_v17 }
0x17ac   :  { %v4084_v46 = vmul.f32 %v4076_v36, %v7112_v9  ;;  %v4152_v13 = vpack.c.bf16 %v4083_v35, %v4079_v31 }
0x17ad   :  { %v4086_v24 = vmul.f32 %v4078_v51, %v7114_v10  ;;  %v4154_v47 = vpack.c.bf16 %v4085_v40, %v4081_v30  ;;  %v4990_v30 = vld [vmem:[#allocation14 + $0x1] ss:$0 sm:$0xff] }
0x17ae   :  { %v4153_v18 = vpack.c.bf16 %v4084_v46, %v4080_v41 }
0x17af   :  { %v4155_v60 = vpack.c.bf16 %v4086_v24, %v4082_v43  ;;  %v5832_v43 = vld [vmem:[%s7269_s12 + $0x20] sm:$0xff]   ;;  %v5833_v24 = vld [vmem:[%s7269_s12 + $0x28] sm:$0xff]  }
0x17b0   :  { %4388 = vmatprep.mubr.bf16.mxu1 %v4153_v18  ;;  %v5835_v18 = vld [vmem:[%s7269_s12 + $0x38] sm:$0xff]  }
0x17b1   :  { %4429 = vmatprep.mubr.bf16.mxu0 %v4155_v60  ;;  %4389 = vmatmul.mubr.bf16.vlgmr.msra.gmra.mrb[100].mxu1 %v4152_v13  ;;  %v4991_v60 = vld [vmem:[#allocation16] ss:$0 sm:$0xff] }
0x17b2   :  { %4430 = vmatmul.mubr.bf16.vlgmr.msra.gmra.mrb[76].mxu0 %v4154_v47  ;;  %5503 = vmatprep.mubr.msk.bf16.mxu1 %vm6229_vm0, %v6227_v4  ;;  %v5834_v47 = vld [vmem:[%s7269_s12 + $0x30] sm:$0xff]  }
0x17b3   :  { %5523 = vmatprep.mubr.msk.bf16.mxu0 %vm6229_vm0, %v6227_v4  ;;  %5488 = vmatpush3.bf16.msra.mxu1 %v5820_v39 }
0x17b4   :  { %5489 = vmatprep.subr.bf16.mxu1 %v6227_v4  ;;  %5508 = vmatpush3.bf16.msra.mxu0 %v5828_v63 }
0x17b5   :  { %5509 = vmatprep.subr.bf16.mxu0 %v6227_v4 }
0x17b8   :  { %5510 = vmatpush3.bf16.msra.mxu0 %v5829_v57 }
0x17b9   :  { %5511 = vmatprep.subr.bf16.mxu0 %v6227_v4 }
0x17bc   :  { %5512 = vmatpush3.bf16.msra.mxu0 %v5830_v1 }
0x17bd   :  { %5513 = vmatprep.subr.bf16.mxu0 %v6227_v4 }
0x17c0   :  { %5514 = vmatpush3.bf16.msra.mxu0 %v5831_v55 }
0x17c1   :  { %5515 = vmatprep.subr.bf16.mxu0 %v6227_v4 }
0x17c4   :  { %5516 = vmatpush3.bf16.msra.mxu0 %v5832_v43 }
0x17c5   :  { %5517 = vmatprep.subr.bf16.mxu0 %v6227_v4 }
0x17c8   :  { %5518 = vmatpush3.bf16.msra.mxu0 %v5833_v24 }
0x17c9   :  { %5519 = vmatprep.subr.bf16.mxu0 %v6227_v4 }
0x17cc   :  { %5520 = vmatpush3.bf16.msra.mxu0 %v5834_v47 }
0x17cd   :  { %5521 = vmatprep.subr.bf16.mxu0 %v6227_v4 }
0x17d0   :  { %5522 = vmatpush3.bf16.msra.mxu0 %v5835_v18 }
0x1884   :  { %v5169_v61 = vpop.f32.mrb[100].mxu1 }
0x1885   :  { %v5191_v0 = vpop.f32.mrb[76].mxu0  ;;  %v5170_v58 = vpop.f32.mrb[101].mxu1 }
0x1886   :  { %v5171_v23 = vadd.f32 %v5170_v58, %v5169_v61  ;;  %v5192_v9 = vpop.f32.mrb[77].mxu0  ;;  %v5172_v10 = vpop.f32.mrb[102].mxu1 }
0x1887   :  { %v5193_v19 = vadd.f32 %v5192_v9, %v5191_v0  ;;  %v5194_v22 = vpop.f32.mrb[78].mxu0  ;;  %v5173_v25 = vpop.f32.mrb[103].mxu1 }
0x1888   :  { %v4391_v26 = vadd.f32 %v5171_v23, %v4956_v7  ;;  %v5174_v27 = vadd.f32 %v5173_v25, %v5172_v10  ;;  %v5195_v28 = vpop.f32.mrb[79].mxu0 }
0x1889   :  { %v5196_v33 = vadd.f32 %v5195_v28, %v5194_v22 }
0x188a   :  { %v4432_v21 = vadd.f32 %v5193_v19, %v4391_v26  ;;  %v4394_v34 = vadd.f32 %v5174_v27, %v4956_v7  ;;  %v5000_v19 = vld [vmem:[#allocation17] ss:$0 sm:$0xff] }
0x188c   :  { %v4435_v37 = vadd.f32 %v5196_v33, %v4394_v34  ;;  %v4438_v38 = vadd.f32 %v4432_v21, %v7076_v14 }
0x188e   :  { %4444 = vadd.xlane.f32.xlu1 %v4438_v38  ;;  %v4439_v2 = vadd.f32 %v4435_v37, %v7078_v16  ;;  %v5821_v16 = vld [vmem:[%s7247_s16 + $0x8] sm:$0xff]  }
0x188f   :  { %5490 = vmatpush3.bf16.msra.mxu1 %v5821_v16 }
0x1890   :  { %4446 = vadd.xlane.f32.xlu0 %v4439_v2  ;;  %5491 = vmatprep.subr.bf16.mxu1 %v6227_v4 }
0x1893   :  { %5492 = vmatpush3.bf16.msra.mxu1 %v5822_v52 }
0x1894   :  { %5493 = vmatprep.subr.bf16.mxu1 %v6227_v4 }
0x1897   :  { %5494 = vmatpush3.bf16.msra.mxu1 %v5823_v50 }
0x1898   :  { %5495 = vmatprep.subr.bf16.mxu1 %v6227_v4 }
0x189b   :  { %5496 = vmatpush3.bf16.msra.mxu1 %v5824_v53 }
0x189c   :  { %5497 = vmatprep.subr.bf16.mxu1 %v6227_v4 }
0x189f   :  { %5498 = vmatpush3.bf16.msra.mxu1 %v5825_v56 }
0x18a0   :  { %5499 = vmatprep.subr.bf16.mxu1 %v6227_v4 }
0x18a3   :  { %5500 = vmatpush3.bf16.msra.mxu1 %v5826_v32 }
0x18a4   :  { %5501 = vmatprep.subr.bf16.mxu1 %v6227_v4 }
0x18a7   :  { %5502 = vmatpush3.bf16.msra.mxu1 %v5827_v62 }
0x191b   :  { %v4445_v42 = vpop.xlane.xlu1 %4444 }
0x191c   :  { %v4448_v45 = vmul.f32 0.0078125, %v4445_v42 }
0x191d   :  { %v4447_v15 = vpop.xlane.xlu0 %4446 }
0x191e   :  { %v4450_v20 = vsub.f32 %v4438_v38, %v4448_v45  ;;  %v4449_v44 = vmul.f32 0.0078125, %v4447_v15 }
0x1920   :  { %v4451_v48 = vsub.f32 %v4439_v2, %v4449_v44  ;;  %v4452_v49 = vmul.f32 %v4450_v20, %v4450_v20 }
0x1922   :  { %4454 = vadd.xlane.f32.xlu1 %v4452_v49  ;;  %v4453_v14 = vmul.f32 %v4451_v48, %v4451_v48 }
0x1924   :  { %4456 = vadd.xlane.f32.xlu0 %v4453_v14 }
0x19af   :  { %v4455_v54 = vpop.xlane.xlu1 %4454 }
0x19b0   :  { %v4458_v3 = vmul.f32 0.0078125, %v4455_v54 }
0x19b1   :  { %v4457_v5 = vpop.xlane.xlu0 %4456 }
0x19b2   :  { %v4460_v6 = vadd.f32 1e-12, %v4458_v3  ;;  %v4459_v8 = vmul.f32 0.0078125, %v4457_v5 }
0x19b4   :  { %5948 = vrsqrt.f32 %v4460_v6  ;;  %v4461_v59 = vadd.f32 1e-12, %v4459_v8 }
0x19b6   :  { %5950 = vrsqrt.f32 %v4461_v59 }
0x19be   :  { %v5949_v11 = vpop.eup %5948 }
0x19bf   :  { %v4464_v12 = vmul.f32 %v5949_v11, %v4450_v20 }
0x19c0   :  { %v5951_v17 = vpop.eup %5950 }
0x19c1   :  { %v4465_v31 = vmul.f32 %v5951_v17, %v4451_v48  ;;  %v4472_v35 = vmul.f32 %v4989_v29, %v4464_v12 }
0x19c3   :  { %v4473_v36 = vmul.f32 %v4989_v29, %v4465_v31  ;;  %v4480_v51 = vadd.f32 %v4990_v30, %v4472_v35 }
0x19c5   :  { %v4481_v40 = vadd.f32 %v4990_v30, %v4473_v36 }
0x19c7   :  { %v4483_v41 = vrot.slane %v4481_v40, 7 }
0x19c9   :  { %v4486_v46 = vsel %vm4485_vm6, %v4480_v51, %v4483_v41 }
0x19ca   :  { %v4503_v13 = vpack.c.bf16 %v4486_v46, %v4486_v46 }
0x19cc   :  { %5504 = vmatmul.mubr.bf16.vlgmr.msra.gmra.mrb[104].mxu1 %v4503_v13 }
0x1a9f   :  { %v4593_v61 = vpop.f32.mrb[104].mxu1 }
0x1aa0   :  { %v4594_v0 = vadd.f32 %v4991_v60, %v4593_v61  ;;  %v5505_v7 = vpop.f32.mrb[105].mxu1 }
0x1aa1   :  { %v4596_v58 = vpop.f32.mrb[106].mxu1 }
0x1aa2   :  { %5952 = vtanh.f32 %v4594_v0  ;;  %v5506_v23 = vpop.f32.mrb[107].mxu1 }
0x1aac   :  { %v5953_v9 = vpop.eup %5952 }
0x1aad   :  { %v4616_v10 = vpack.c.bf16 %v5953_v9, %v5953_v9 }
0x1aaf   :  { %5524 = vmatmul.mubr.bf16.vlgmr.msra.gmra.mrb[80].mxu0 %v4616_v10 }
0x1b82   :  { %v4706_v22 = vpop.f32.mrb[80].mxu0 }
0x1b83   :  { %v4707_v4 = vadd.f32 %v5000_v19, %v4706_v22  ;;  %v5525_v25 = vpop.f32.mrb[81].mxu0 }
0x1b84   :  { %v4709_v26 = vpop.f32.mrb[82].mxu0 }
0x1b85   :  { %4712 = vst [vmem:[#allocation19] sm:$0x3] %v4707_v4  ;;  %v5526_v27 = vpop.f32.mrb[83].mxu0 }
0x1b86   :  { %6185 = shalt.err (!%p6182_p0)
}
0x1b87   :  { %s7270_s27 = sld [smem:[#allocation33_spill]] }
0x1b8d   :  { %s6186_s5 = scalar_lea.hbm %s7270_s27, 32 }
0x1b8e   :  { %p6187_p1 = scmp.ne.s32.totalorder %s7270_s27, %s6186_s5  ;;  %p6190_p2 = scmp.lt.u32.totalorder %s6186_s5, %s7270_s27 }
0x1b90   :  { %p6192_p3 = pnand %p6190_p2, %p6187_p1 }
0x1b92   :  { %6195 = shalt.err (!%p6192_p3)
}
0x1b93   :  { %4722 = dma.vmem_to_hbm [thread:$0]  %s4720_s2, 32, %s7270_s27, [#allocation4]  }
0x1b94   :  { %6208 = dma.done.wait [#allocation4], 32  }
0x1b95   :  { %6209 = vsyncadd [#allocation4], 4294967264 }
0x1b96   :  { %4726 = vsyncpa [#allocation3], 1 }
0x1b97   :  { %4727 = vsyncpa [#allocation6], 1 }
0x1b98   :  { %4728 = vsyncpa [#allocation9], 1 }
0x1b99   :  { %4729 = vsyncpa [#allocation12], 1 }
0x1b9a   :  { %4730 = vsyncpa [#allocation15], 1 }
0x1b9b   :  { %4731 = vsyncpa [#allocation18], 1 }
0x1b9c   :  { %4732 = vsyncpa [#allocation4], 1 }

</bundles_post_ra>
